<compile_context>
chip_gen: v7x
topology: tpu7x:2x2x1
jax: 0.10.0
libtpu: 0.0.40
codegen_flags: <defaults>
</compile_context>

<pallas_src>
import functools

import numpy as np
import jax
import jax.numpy as jnp
from jax.experimental import pallas as pl
from jax.experimental.pallas import tpu as pltpu

KSIZE = 7
PAD = 3


# ---------------------------------------------------------------------------
# Generation-aware VMEM budgets & small static helpers.
# ---------------------------------------------------------------------------
def _vmem_budgets():
    try:
        cap = int(pltpu.get_tpu_info().vmem_capacity_bytes)
    except Exception:  # pragma: no cover - conservative fallback (v7x per-TC)
        cap = 64 * 1024 * 1024
    vmem_limit = min((cap * 3) // 4, 96 * 1024 * 1024)   # 96 MiB v5e/v6e, 48 MiB v7x
    tile_budget = vmem_limit // 3                         # double-buffered stats tile
    fuse_budget = (vmem_limit * 7) // 10                  # per-step estimate, fused/conv
    return vmem_limit, tile_budget, fuse_budget


def _chunk_channels(C, itemsize):
    # sublane-packing aware chunk: 8 rows for f32, 16 for bf16, 32 for int8
    return max(1, min(C, 8 * max(1, 4 // itemsize)))


def _largest_divisor_leq(n, cap):
    cap = max(1, min(n, cap))
    for d in range(cap, 0, -1):
        if n % d == 0:
            return d
    return 1


def _choose_image_block(n_images, per_image_bytes, budget, cap=8):
    bmax = max(1, min(cap, budget // max(1, per_image_bytes)))
    if n_images >= 2:                    # keep >= 2 grid steps so both v7x TCs work
        bmax = min(bmax, max(1, n_images // 2))
    return _largest_divisor_leq(n_images, bmax)


def _fused_per_image_bytes(C, H, W, in_item, out_item):
    Hp, Wp = H + 2 * PAD, W + 2 * PAD
    CH = _chunk_channels(C, in_item)
    return (2 * C * H * W * in_item        # double-buffered input block
            + 2 * H * W * out_item         # double-buffered output block
            + 2 * Hp * Wp * 4              # padded avg/max scratch slabs
            + 10 * H * Wp * 4              # conv accumulators / shifted temps
            + 2 * (CH + 1) * H * W * 4)    # channel-reduce temporaries


# ---------------------------------------------------------------------------
# Shared in-kernel pieces.
# ---------------------------------------------------------------------------
def _channel_mean_max(x_ref, g):
    """Mean / max over the channel axis of image `g` of a (B, C, H, W) ref.

    Channels are loaded in CH-sized chunks; the axis-0 reduce of a (CH, H, W)
    chunk is pure VPU elementwise work (no cross-lane reduce).  Accumulation is
    always f32."""
    _, C, H, W = x_ref.shape
    f32 = jnp.float32
    CH = _chunk_channels(C, jnp.dtype(x_ref.dtype).itemsize)
    nfull, rem = divmod(C, CH)

    s = m = None
    if nfull > 0:
        first = x_ref[g, pl.ds(0, CH), :, :].astype(f32)        # (CH, H, W)
        s = jnp.sum(first, axis=0)
        m = jnp.max(first, axis=0)
        if nfull > 1:
            def body(i, carry):
                s_acc, m_acc = carry
                base = pl.multiple_of(i * CH, CH)
                blk = x_ref[g, pl.ds(base, CH), :, :].astype(f32)
                return (s_acc + jnp.sum(blk, axis=0),
                        jnp.maximum(m_acc, jnp.max(blk, axis=0)))
            s, m = jax.lax.fori_loop(1, nfull, body, (s, m), unroll=nfull <= 8)
    if rem > 0:
        blk = x_ref[g, pl.ds(nfull * CH, rem), :, :].astype(f32)
        rs, rm = jnp.sum(blk, axis=0), jnp.max(blk, axis=0)
        s = rs if s is None else s + rs
        m = rm if m is None else jnp.maximum(m, rm)
    return s * (1.0 / C), m


def _packed_conv_sigmoid(nb, H, W, get_maps, w_ref, o_ref, a_pad_ref, m_pad_ref):
    """7x7 conv (2->1, zero pad 3, no bias) + sigmoid over `nb` images that are
    lane-packed side by side into the (Hp, nb*Wp) padded scratch slabs."""
    f32 = jnp.float32
    Hp, Wp = H + 2 * PAD, W + 2 * PAD
    Wt = nb * Wp                 # packed slab width (one Wp-wide band per image)
    Wo = Wt - 2 * PAD            # width over which all 7 horizontal taps stay in-slab

    zcol = jnp.zeros((Hp, PAD), f32)
    zrow = jnp.zeros((PAD, W), f32)
    for g in range(nb):
        base = g * Wp
        avg, mx = get_maps(g)    # each (H, W) f32
        for ref in (a_pad_ref, m_pad_ref):
            # zero only the 3-wide border strips of this image's band
            ref[:, base:base + PAD] = zcol
            ref[:, base + PAD + W:base + Wp] = zcol
            ref[0:PAD, base + PAD:base + PAD + W] = zrow
            ref[PAD + H:Hp, base + PAD:base + PAD + W] = zrow
        a_pad_ref[PAD:PAD + H, base + PAD:base + PAD + W] = avg
        m_pad_ref[PAD:PAD + H, base + PAD:base + PAD + W] = mx

    # 4 partial accumulators (avg/max x even/odd vertical tap) for VALU ILP.
    acc = [jnp.zeros((H, Wo), f32) for _ in range(4)]
    for kj in range(KSIZE):
        # one lane-offset load per horizontal tap and per map (14 total),
        # hoisted out of the vertical loop; inner loop is sublane slices + FMAs
        a_sh = a_pad_ref[:, kj:kj + Wo]           # (Hp, Wo)
        m_sh = m_pad_ref[:, kj:kj + Wo]
        for ki in range(KSIZE):
            wa = w_ref[ki * KSIZE + kj]                    # weight[0, 0, ki, kj]
            wm = w_ref[KSIZE * KSIZE + ki * KSIZE + kj]    # weight[0, 1, ki, kj]
            p = ki & 1
            acc[p] = acc[p] + wa * a_sh[ki:ki + H, :]
            acc[2 + p] = acc[2 + p] + wm * m_sh[ki:ki + H, :]

    out = jax.nn.sigmoid((acc[0] + acc[1]) + (acc[2] + acc[3]))
    for g in range(nb):
        o_ref[g, 0, :, :] = out[:, g * Wp:g * Wp + W].astype(o_ref.dtype)


# ---------------------------------------------------------------------------
# Kernel A (preferred): fully fused stats + conv + sigmoid.
# ---------------------------------------------------------------------------
def _fused_kernel(x_ref, w_ref, o_ref, a_pad_ref, m_pad_ref):
    B, _, H, W = x_ref.shape
    _packed_conv_sigmoid(B, H, W, lambda g: _channel_mean_max(x_ref, g),
                         w_ref, o_ref, a_pad_ref, m_pad_ref)


def _fused(x, w_flat, vmem_limit, B):
    N, C, H, W = x.shape
    Hp, Wp = H + 2 * PAD, W + 2 * PAD
    return pl.pallas_call(
        _fused_kernel,
        out_shape=jax.ShapeDtypeStruct((N, 1, H, W), x.dtype),
        grid_spec=pltpu.PrefetchScalarGridSpec(
            num_scalar_prefetch=0,
            grid=(N // B,),
            in_specs=[
                pl.BlockSpec((B, C, H, W), lambda i: (i, 0, 0, 0)),
                pl.BlockSpec(memory_space=pltpu.MemorySpace.SMEM),
            ],
            out_specs=pl.BlockSpec((B, 1, H, W), lambda i: (i, 0, 0, 0)),
            scratch_shapes=[pltpu.VMEM((Hp, B * Wp), jnp.float32),
                            pltpu.VMEM((Hp, B * Wp), jnp.float32)],
        ),
        compiler_params=pltpu.CompilerParams(
            dimension_semantics=("parallel",),
            vmem_limit_bytes=vmem_limit),
    )(x, w_flat)


# ---------------------------------------------------------------------------
# Kernel B1 (fallback): fused channel mean + max on a lane-dense (C, T) block.
# ---------------------------------------------------------------------------
def _channel_stats_kernel(x_ref, o_ref):
    # x_ref: (C, T) block of one image, flattened spatially
    # o_ref: (2, T): row 0 = mean over C, row 1 = max over C
    C, _ = x_ref.shape
    f32 = jnp.float32
    CH = _chunk_channels(C, jnp.dtype(x_ref.dtype).itemsize)
    nfull, rem = divmod(C, CH)

    s = m = None
    if nfull > 0:
        # (CH, T) elementwise partial accumulators; one cross-sublane reduce at
        # the end instead of one per loop iteration.
        first = x_ref[pl.ds(0, CH), :].astype(f32)
        s_p, m_p = first, first
        if nfull > 1:
            def body(i, carry):
                s_acc, m_acc = carry
                base = pl.multiple_of(i * CH, CH)
                blk = x_ref[pl.ds(base, CH), :].astype(f32)
                return s_acc + blk, jnp.maximum(m_acc, blk)
            s_p, m_p = jax.lax.fori_loop(1, nfull, body, (s_p, m_p),
                                         unroll=nfull <= 8)
        s = jnp.sum(s_p, axis=0, keepdims=True)
        m = jnp.max(m_p, axis=0, keepdims=True)
    if rem > 0:
        blk = x_ref[pl.ds(nfull * CH, rem), :].astype(f32)
        rs = jnp.sum(blk, axis=0, keepdims=True)
        rm = jnp.max(blk, axis=0, keepdims=True)
        s = rs if s is None else s + rs
        m = rm if m is None else jnp.maximum(m, rm)

    # single dense (2, T) store instead of two single-sublane masked stores
    o_ref[...] = jnp.concatenate([s * (1.0 / C), m], axis=0).astype(o_ref.dtype)


def _pick_spatial_tile(HW, per_lane_bytes, tile_budget, n_images):
    if HW <= 128:
        return HW
    if HW * per_lane_bytes <= tile_budget and (n_images >= 2 or HW < 256):
        return HW
    max_lanes = max(128, tile_budget // max(1, per_lane_bytes))
    t = max(128, (min(max_lanes, HW) // 128) * 128)
    if n_images == 1 and HW >= 256:
        # keep >= 2 spatial tiles so both v7x TensorCores get work
        t = min(t, max(128, ((HW // 2) // 128) * 128))
    return t


def _channel_stats(x, vmem_limit, tile_budget):
    """(N, C, H, W) -> (N, 2, H, W) stack of [mean_C, max_C] in x's float dtype."""
    N, C, H, W = x.shape
    HW = H * W
    in_item = jnp.dtype(x.dtype).itemsize
    stats_dtype = x.dtype if jnp.issubdtype(x.dtype, jnp.floating) else jnp.float32
    out_item = jnp.dtype(stats_dtype).itemsize
    CH = _chunk_channels(C, in_item)
    per_lane = 2 * C * in_item + 4 * out_item + 2 * CH * 4 + 16
    T = _pick_spatial_tile(HW, per_lane, tile_budget, N)

    x_flat = x.reshape(N, C, HW)   # free wrapper-side reshape -> lane-dense view
    stats = pl.pallas_call(
        _channel_stats_kernel,
        out_shape=jax.ShapeDtypeStruct((N, 2, HW), stats_dtype),
        grid_spec=pltpu.PrefetchScalarGridSpec(
            num_scalar_prefetch=0,
            grid=(N, pl.cdiv(HW, T)),
            in_specs=[pl.BlockSpec((pl.Squeezed(), C, T), lambda n, t: (n, 0, t))],
            out_specs=pl.BlockSpec((pl.Squeezed(), 2, T), lambda n, t: (n, 0, t)),
        ),
        compiler_params=pltpu.CompilerParams(
            dimension_semantics=("parallel", "parallel"),
            vmem_limit_bytes=vmem_limit),
    )(x_flat)
    return stats.reshape(N, 2, H, W)


# ---------------------------------------------------------------------------
# Kernel B2 (fallback): conv + sigmoid on the precomputed 2-channel maps.
# ---------------------------------------------------------------------------
def _conv_sigmoid_kernel(maps_ref, w_ref, o_ref, a_pad_ref, m_pad_ref):
    B, _, H, W = maps_ref.shape

    def get_maps(g):
        return (maps_ref[g, 0, :, :].astype(jnp.float32),
                maps_ref[g, 1, :, :].astype(jnp.float32))

    _packed_conv_sigmoid(B, H, W, get_maps, w_ref, o_ref, a_pad_ref, m_pad_ref)


def _conv_sigmoid(stats, w_flat, out_dtype, vmem_limit, step_budget):
    N, _, H, W = stats.shape
    Hp, Wp = H + 2 * PAD, W + 2 * PAD
    s_item = jnp.dtype(stats.dtype).itemsize
    o_item = jnp.dtype(out_dtype).itemsize
    per_image = (4 * H * W * s_item + 2 * H * W * o_item
                 + 2 * Hp * Wp * 4 + 10 * H * Wp * 4)
    B = _choose_image_block(N, per_image, step_budget)
    # TODO(synk): halo H-tiling of the conv for maps too large to fit one image
    # in VMEM (tightest on v7x's 64 MiB per-TC VMEM).
    return pl.pallas_call(
        _conv_sigmoid_kernel,
        out_shape=jax.ShapeDtypeStruct((N, 1, H, W), out_dtype),
        grid_spec=pltpu.PrefetchScalarGridSpec(
            num_scalar_prefetch=0,
            grid=(N // B,),
            in_specs=[
                pl.BlockSpec((B, 2, H, W), lambda i: (i, 0, 0, 0)),
                pl.BlockSpec(memory_space=pltpu.MemorySpace.SMEM),
            ],
            out_specs=pl.BlockSpec((B, 1, H, W), lambda i: (i, 0, 0, 0)),
            scratch_shapes=[pltpu.VMEM((Hp, B * Wp), jnp.float32),
                            pltpu.VMEM((Hp, B * Wp), jnp.float32)],
        ),
        compiler_params=pltpu.CompilerParams(
            dimension_semantics=("parallel",),
            vmem_limit_bytes=vmem_limit),
    )(stats, w_flat)


# ---------------------------------------------------------------------------
# Public entry point + reference.
# ---------------------------------------------------------------------------
@functools.partial(jax.jit, static_argnames=("force_unfused",))
def spatial_attention(x, weight, *, force_unfused=False):
    """x: (N, C, H, W), weight: (1, 2, 7, 7) -> sigmoid(conv7x7([mean_C, max_C]))."""
    N, C, H, W = x.shape
    vmem_limit, tile_budget, fuse_budget = _vmem_budgets()
    w_flat = weight.reshape(-1).astype(jnp.float32)

    in_item = jnp.dtype(x.dtype).itemsize
    per_image = _fused_per_image_bytes(C, H, W, in_item, in_item)

    if (not force_unfused) and per_image <= fuse_budget:
        B = _choose_image_block(N, per_image, fuse_budget)
        return _fused(x, w_flat, vmem_limit, B)

    # Fallback for very large C*H*W: lane-dense channel stats (stored in x.dtype),
    # then the 7x7 conv + sigmoid on the small 2-channel maps.
    stats = _channel_stats(x, vmem_limit, tile_budget)
    return _conv_sigmoid(stats, w_flat, x.dtype, vmem_limit, fuse_budget)


def spatial_attention_reference(x, weight):
    # pure-JAX reference of the PyTorch forward
    avg = jnp.mean(x, axis=1, keepdims=True)
    mx = jnp.max(x, axis=1, keepdims=True)
    cat = jnp.concatenate([avg, mx], axis=1)
    out = jax.lax.conv_general_dilated(
        cat, weight, window_strides=(1, 1),
        padding=((PAD, PAD), (PAD, PAD)),
        dimension_numbers=("NCHW", "OIHW", "NCHW"))
    return jax.nn.sigmoid(out)


if __name__ == "__main__":
    key = jax.random.PRNGKey(0)
    kx, kw, kx2, kx3 = jax.random.split(key, 4)

    # deterministic synthetic conv1 weight: Conv2d(2, 1, 7, bias=False)
    weight = jax.random.normal(kw, (1, 2, KSIZE, KSIZE), dtype=jnp.float32) * 0.1

    # 1) small shapes consistent with the module: batch=2, channels=4, spatial=16
    x1 = jax.random.normal(kx, (2, 4, 16, 16), dtype=jnp.float32)
    ref1 = spatial_attention_reference(x1, weight)
    out1 = jax.block_until_ready(spatial_attention(x1, weight))            # fused path
    assert out1.shape == (2, 1, 16, 16), out1.shape
    np.testing.assert_allclose(np.asarray(out1), np.asarray(ref1), rtol=1e-5, atol=1e-5)
    out1u = jax.block_until_ready(spatial_attention(x1, weight, force_unfused=True))
    np.testing.assert_allclose(np.asarray(out1u), np.asarray(ref1), rtol=1e-5, atol=1e-5)

    # 2) N=1 with odd spatial dims: full-dim blocks, ragged spatial tiles, and the
    #    >=2-grid-step split on the unfused stats kernel
    x2 = jax.random.normal(kx2, (1, 6, 24, 40), dtype=jnp.float32)
    ref2 = spatial_attention_reference(x2, weight)
    out2 = jax.block_until_ready(spatial_attention(x2, weight))            # fused path
    np.testing.assert_allclose(np.asarray(out2), np.asarray(ref2), rtol=1e-5, atol=1e-5)
    out2u = jax.block_until_ready(spatial_attention(x2, weight, force_unfused=True))
    np.testing.assert_allclose(np.asarray(out2u), np.asarray(ref2), rtol=1e-5, atol=1e-5)

    # 3) bf16 input: exercises the bf16 stats intermediate and 16-row channel chunks
    x3 = jax.random.normal(kx3, (2, 20, 16, 16), dtype=jnp.float32).astype(jnp.bfloat16)
    ref3 = spatial_attention_reference(x3.astype(jnp.float32), weight)
    out3 = jax.block_until_ready(spatial_attention(x3, weight, force_unfused=True))
    assert out3.dtype == jnp.bfloat16
    np.testing.assert_allclose(np.asarray(out3, dtype=np.float32), np.asarray(ref3),
                               rtol=2e-2, atol=2e-2)

    print("KERNEL_OK")
</pallas_src>

<mosaic_0001>
module attributes {stable_mosaic.version = 11 : i64} {
  func.func @_fused_kernel(%arg0: i32, %arg1: memref<1x4x16x16xf32, #tpu.memory_space<vmem>>, %arg2: memref<98xf32, #tpu.memory_space<smem>>, %arg3: memref<1x1x16x16xf32, #tpu.memory_space<vmem>>, %arg4: memref<22x22xf32, #tpu.memory_space<vmem>>, %arg5: memref<22x22xf32, #tpu.memory_space<vmem>>) attributes {dimension_semantics = [#tpu.dimension_semantics<parallel>], iteration_bounds = array<i64: 2>, scalar_prefetch = 0 : i64, scratch_operands = 2 : i64, tpu.core_type = #tpu.core_type<tc>, window_params = [{transform_indices = @transform_0, window_bounds = array<i64: 1, 4, 16, 16>}, {transform_indices = @transform_1, window_bounds = array<i64: 98>}, {transform_indices = @transform_2, window_bounds = array<i64: 1, 1, 16, 16>}]} {
    %cst = arith.constant 0.000000e+00 : f32
    %0 = vector.broadcast %cst : f32 to vector<22x3xf32>
    %cst_0 = arith.constant 0.000000e+00 : f32
    %1 = vector.broadcast %cst_0 : f32 to vector<3x16xf32>
    %c0 = arith.constant 0 : index
    %c0_1 = arith.constant 0 : index
    %c0_2 = arith.constant 0 : index
    %c0_3 = arith.constant 0 : index
    %2 = vector.load %arg1[%c0, %c0_1, %c0_2, %c0_3] : memref<1x4x16x16xf32, #tpu.memory_space<vmem>>, vector<1x4x16x16xf32>
    %3 = vector.shape_cast %2 : vector<1x4x16x16xf32> to vector<4x16x16xf32>
    %cst_4 = arith.constant dense<0.000000e+00> : vector<16x16xf32>
    %4 = vector.multi_reduction <add>, %3, %cst_4 [0] : vector<4x16x16xf32> to vector<16x16xf32>
    %cst_5 = arith.constant dense<0xFF800000> : vector<16x16xf32>
    %5 = vector.multi_reduction <maximumf>, %3, %cst_5 [0] : vector<4x16x16xf32> to vector<16x16xf32>
    %cst_6 = arith.constant 2.500000e-01 : f32
    %6 = vector.broadcast %cst_6 : f32 to vector<16x16xf32>
    %7 = arith.mulf %4, %6 : vector<16x16xf32>
    %c0_7 = arith.constant 0 : index
    %c0_8 = arith.constant 0 : index
    %8 = vector.load %arg4[%c0_7, %c0_8] : memref<22x22xf32, #tpu.memory_space<vmem>>, vector<22x3xf32>
    tpu.vector_store %arg4[%c0_7, %c0_8], %0 {strides = array<i32>} : memref<22x22xf32, #tpu.memory_space<vmem>>, vector<22x3xf32>,
    %c0_9 = arith.constant 0 : index
    %c19 = arith.constant 19 : index
    %9 = vector.load %arg4[%c0_9, %c19] : memref<22x22xf32, #tpu.memory_space<vmem>>, vector<22x3xf32>
    tpu.vector_store %arg4[%c0_9, %c19], %0 {strides = array<i32>} : memref<22x22xf32, #tpu.memory_space<vmem>>, vector<22x3xf32>,
    %c0_10 = arith.constant 0 : index
    %c3 = arith.constant 3 : index
    %10 = vector.load %arg4[%c0_10, %c3] : memref<22x22xf32, #tpu.memory_space<vmem>>, vector<3x16xf32>
    tpu.vector_store %arg4[%c0_10, %c3], %1 {strides = array<i32>} : memref<22x22xf32, #tpu.memory_space<vmem>>, vector<3x16xf32>,
    %c19_11 = arith.constant 19 : index
    %c3_12 = arith.constant 3 : index
    %11 = vector.load %arg4[%c19_11, %c3_12] : memref<22x22xf32, #tpu.memory_space<vmem>>, vector<3x16xf32>
    tpu.vector_store %arg4[%c19_11, %c3_12], %1 {strides = array<i32>} : memref<22x22xf32, #tpu.memory_space<vmem>>, vector<3x16xf32>,
    %c0_13 = arith.constant 0 : index
    %c0_14 = arith.constant 0 : index
    %12 = vector.load %arg5[%c0_13, %c0_14] : memref<22x22xf32, #tpu.memory_space<vmem>>, vector<22x3xf32>
    tpu.vector_store %arg5[%c0_13, %c0_14], %0 {strides = array<i32>} : memref<22x22xf32, #tpu.memory_space<vmem>>, vector<22x3xf32>,
    %c0_15 = arith.constant 0 : index
    %c19_16 = arith.constant 19 : index
    %13 = vector.load %arg5[%c0_15, %c19_16] : memref<22x22xf32, #tpu.memory_space<vmem>>, vector<22x3xf32>
    tpu.vector_store %arg5[%c0_15, %c19_16], %0 {strides = array<i32>} : memref<22x22xf32, #tpu.memory_space<vmem>>, vector<22x3xf32>,
    %c0_17 = arith.constant 0 : index
    %c3_18 = arith.constant 3 : index
    %14 = vector.load %arg5[%c0_17, %c3_18] : memref<22x22xf32, #tpu.memory_space<vmem>>, vector<3x16xf32>
    tpu.vector_store %arg5[%c0_17, %c3_18], %1 {strides = array<i32>} : memref<22x22xf32, #tpu.memory_space<vmem>>, vector<3x16xf32>,
    %c19_19 = arith.constant 19 : index
    %c3_20 = arith.constant 3 : index
    %15 = vector.load %arg5[%c19_19, %c3_20] : memref<22x22xf32, #tpu.memory_space<vmem>>, vector<3x16xf32>
    tpu.vector_store %arg5[%c19_19, %c3_20], %1 {strides = array<i32>} : memref<22x22xf32, #tpu.memory_space<vmem>>, vector<3x16xf32>,
    %c3_21 = arith.constant 3 : index
    %c3_22 = arith.constant 3 : index
    %16 = vector.load %arg4[%c3_21, %c3_22] : memref<22x22xf32, #tpu.memory_space<vmem>>, vector<16x16xf32>
    tpu.vector_store %arg4[%c3_21, %c3_22], %7 {strides = array<i32>} : memref<22x22xf32, #tpu.memory_space<vmem>>, vector<16x16xf32>,
    %c3_23 = arith.constant 3 : index
    %c3_24 = arith.constant 3 : index
    %17 = vector.load %arg5[%c3_23, %c3_24] : memref<22x22xf32, #tpu.memory_space<vmem>>, vector<16x16xf32>
    tpu.vector_store %arg5[%c3_23, %c3_24], %5 {strides = array<i32>} : memref<22x22xf32, #tpu.memory_space<vmem>>, vector<16x16xf32>,
    %cst_25 = arith.constant 0.000000e+00 : f32
    %18 = vector.broadcast %cst_25 : f32 to vector<16x16xf32>
    %cst_26 = arith.constant 0.000000e+00 : f32
    %19 = vector.broadcast %cst_26 : f32 to vector<16x16xf32>
    %cst_27 = arith.constant 0.000000e+00 : f32
    %20 = vector.broadcast %cst_27 : f32 to vector<16x16xf32>
    %cst_28 = arith.constant 0.000000e+00 : f32
    %21 = vector.broadcast %cst_28 : f32 to vector<16x16xf32>
    %c0_29 = arith.constant 0 : index
    %c0_30 = arith.constant 0 : index
    %22 = vector.load %arg4[%c0_29, %c0_30] : memref<22x22xf32, #tpu.memory_space<vmem>>, vector<22x16xf32>
    %c0_31 = arith.constant 0 : index
    %c0_32 = arith.constant 0 : index
    %23 = vector.load %arg5[%c0_31, %c0_32] : memref<22x22xf32, #tpu.memory_space<vmem>>, vector<22x16xf32>
    %c0_33 = arith.constant 0 : index
    %24 = memref.load %arg2[%c0_33] : memref<98xf32, #tpu.memory_space<smem>>
    %c49 = arith.constant 49 : index
    %25 = memref.load %arg2[%c49] : memref<98xf32, #tpu.memory_space<smem>>
    %26 = vector.extract_strided_slice %22 {offsets = [0, 0], sizes = [16, 16], strides = [1, 1]} : vector<22x16xf32> to vector<16x16xf32>
    %27 = vector.broadcast %24 : f32 to vector<16x16xf32>
    %28 = arith.mulf %27, %26 : vector<16x16xf32>
    %29 = arith.addf %18, %28 : vector<16x16xf32>
    %30 = vector.extract_strided_slice %23 {offsets = [0, 0], sizes = [16, 16], strides = [1, 1]} : vector<22x16xf32> to vector<16x16xf32>
    %31 = vector.broadcast %25 : f32 to vector<16x16xf32>
    %32 = arith.mulf %31, %30 : vector<16x16xf32>
    %33 = arith.addf %20, %32 : vector<16x16xf32>
    %c7 = arith.constant 7 : index
    %34 = memref.load %arg2[%c7] : memref<98xf32, #tpu.memory_space<smem>>
    %c56 = arith.constant 56 : index
    %35 = memref.load %arg2[%c56] : memref<98xf32, #tpu.memory_space<smem>>
    %36 = vector.extract_strided_slice %22 {offsets = [1, 0], sizes = [16, 16], strides = [1, 1]} : vector<22x16xf32> to vector<16x16xf32>
    %37 = vector.broadcast %34 : f32 to vector<16x16xf32>
    %38 = arith.mulf %37, %36 : vector<16x16xf32>
    %39 = arith.addf %19, %38 : vector<16x16xf32>
    %40 = vector.extract_strided_slice %23 {offsets = [1, 0], sizes = [16, 16], strides = [1, 1]} : vector<22x16xf32> to vector<16x16xf32>
    %41 = vector.broadcast %35 : f32 to vector<16x16xf32>
    %42 = arith.mulf %41, %40 : vector<16x16xf32>
    %43 = arith.addf %21, %42 : vector<16x16xf32>
    %c14 = arith.constant 14 : index
    %44 = memref.load %arg2[%c14] : memref<98xf32, #tpu.memory_space<smem>>
    %c63 = arith.constant 63 : index
    %45 = memref.load %arg2[%c63] : memref<98xf32, #tpu.memory_space<smem>>
    %46 = vector.extract_strided_slice %22 {offsets = [2, 0], sizes = [16, 16], strides = [1, 1]} : vector<22x16xf32> to vector<16x16xf32>
    %47 = vector.broadcast %44 : f32 to vector<16x16xf32>
    %48 = arith.mulf %47, %46 : vector<16x16xf32>
    %49 = arith.addf %29, %48 : vector<16x16xf32>
    %50 = vector.extract_strided_slice %23 {offsets = [2, 0], sizes = [16, 16], strides = [1, 1]} : vector<22x16xf32> to vector<16x16xf32>
    %51 = vector.broadcast %45 : f32 to vector<16x16xf32>
    %52 = arith.mulf %51, %50 : vector<16x16xf32>
    %53 = arith.addf %33, %52 : vector<16x16xf32>
    %c21 = arith.constant 21 : index
    %54 = memref.load %arg2[%c21] : memref<98xf32, #tpu.memory_space<smem>>
    %c70 = arith.constant 70 : index
    %55 = memref.load %arg2[%c70] : memref<98xf32, #tpu.memory_space<smem>>
    %56 = vector.extract_strided_slice %22 {offsets = [3, 0], sizes = [16, 16], strides = [1, 1]} : vector<22x16xf32> to vector<16x16xf32>
    %57 = vector.broadcast %54 : f32 to vector<16x16xf32>
    %58 = arith.mulf %57, %56 : vector<16x16xf32>
    %59 = arith.addf %39, %58 : vector<16x16xf32>
    %60 = vector.extract_strided_slice %23 {offsets = [3, 0], sizes = [16, 16], strides = [1, 1]} : vector<22x16xf32> to vector<16x16xf32>
    %61 = vector.broadcast %55 : f32 to vector<16x16xf32>
    %62 = arith.mulf %61, %60 : vector<16x16xf32>
    %63 = arith.addf %43, %62 : vector<16x16xf32>
    %c28 = arith.constant 28 : index
    %64 = memref.load %arg2[%c28] : memref<98xf32, #tpu.memory_space<smem>>
    %c77 = arith.constant 77 : index
    %65 = memref.load %arg2[%c77] : memref<98xf32, #tpu.memory_space<smem>>
    %66 = vector.extract_strided_slice %22 {offsets = [4, 0], sizes = [16, 16], strides = [1, 1]} : vector<22x16xf32> to vector<16x16xf32>
    %67 = vector.broadcast %64 : f32 to vector<16x16xf32>
    %68 = arith.mulf %67, %66 : vector<16x16xf32>
    %69 = arith.addf %49, %68 : vector<16x16xf32>
    %70 = vector.extract_strided_slice %23 {offsets = [4, 0], sizes = [16, 16], strides = [1, 1]} : vector<22x16xf32> to vector<16x16xf32>
    %71 = vector.broadcast %65 : f32 to vector<16x16xf32>
    %72 = arith.mulf %71, %70 : vector<16x16xf32>
    %73 = arith.addf %53, %72 : vector<16x16xf32>
    %c35 = arith.constant 35 : index
    %74 = memref.load %arg2[%c35] : memref<98xf32, #tpu.memory_space<smem>>
    %c84 = arith.constant 84 : index
    %75 = memref.load %arg2[%c84] : memref<98xf32, #tpu.memory_space<smem>>
    %76 = vector.extract_strided_slice %22 {offsets = [5, 0], sizes = [16, 16], strides = [1, 1]} : vector<22x16xf32> to vector<16x16xf32>
    %77 = vector.broadcast %74 : f32 to vector<16x16xf32>
    %78 = arith.mulf %77, %76 : vector<16x16xf32>
    %79 = arith.addf %59, %78 : vector<16x16xf32>
    %80 = vector.extract_strided_slice %23 {offsets = [5, 0], sizes = [16, 16], strides = [1, 1]} : vector<22x16xf32> to vector<16x16xf32>
    %81 = vector.broadcast %75 : f32 to vector<16x16xf32>
    %82 = arith.mulf %81, %80 : vector<16x16xf32>
    %83 = arith.addf %63, %82 : vector<16x16xf32>
    %c42 = arith.constant 42 : index
    %84 = memref.load %arg2[%c42] : memref<98xf32, #tpu.memory_space<smem>>
    %c91 = arith.constant 91 : index
    %85 = memref.load %arg2[%c91] : memref<98xf32, #tpu.memory_space<smem>>
    %86 = vector.extract_strided_slice %22 {offsets = [6, 0], sizes = [16, 16], strides = [1, 1]} : vector<22x16xf32> to vector<16x16xf32>
    %87 = vector.broadcast %84 : f32 to vector<16x16xf32>
    %88 = arith.mulf %87, %86 : vector<16x16xf32>
    %89 = arith.addf %69, %88 : vector<16x16xf32>
    %90 = vector.extract_strided_slice %23 {offsets = [6, 0], sizes = [16, 16], strides = [1, 1]} : vector<22x16xf32> to vector<16x16xf32>
    %91 = vector.broadcast %85 : f32 to vector<16x16xf32>
    %92 = arith.mulf %91, %90 : vector<16x16xf32>
    %93 = arith.addf %73, %92 : vector<16x16xf32>
    %c0_34 = arith.constant 0 : index
    %c1 = arith.constant 1 : index
    %94 = vector.load %arg4[%c0_34, %c1] : memref<22x22xf32, #tpu.memory_space<vmem>>, vector<22x16xf32>
    %c0_35 = arith.constant 0 : index
    %c1_36 = arith.constant 1 : index
    %95 = vector.load %arg5[%c0_35, %c1_36] : memref<22x22xf32, #tpu.memory_space<vmem>>, vector<22x16xf32>
    %c1_37 = arith.constant 1 : index
    %96 = memref.load %arg2[%c1_37] : memref<98xf32, #tpu.memory_space<smem>>
    %c50 = arith.constant 50 : index
    %97 = memref.load %arg2[%c50] : memref<98xf32, #tpu.memory_space<smem>>
    %98 = vector.extract_strided_slice %94 {offsets = [0, 0], sizes = [16, 16], strides = [1, 1]} : vector<22x16xf32> to vector<16x16xf32>
    %99 = vector.broadcast %96 : f32 to vector<16x16xf32>
    %100 = arith.mulf %99, %98 : vector<16x16xf32>
    %101 = arith.addf %89, %100 : vector<16x16xf32>
    %102 = vector.extract_strided_slice %95 {offsets = [0, 0], sizes = [16, 16], strides = [1, 1]} : vector<22x16xf32> to vector<16x16xf32>
    %103 = vector.broadcast %97 : f32 to vector<16x16xf32>
    %104 = arith.mulf %103, %102 : vector<16x16xf32>
    %105 = arith.addf %93, %104 : vector<16x16xf32>
    %c8 = arith.constant 8 : index
    %106 = memref.load %arg2[%c8] : memref<98xf32, #tpu.memory_space<smem>>
    %c57 = arith.constant 57 : index
    %107 = memref.load %arg2[%c57] : memref<98xf32, #tpu.memory_space<smem>>
    %108 = vector.extract_strided_slice %94 {offsets = [1, 0], sizes = [16, 16], strides = [1, 1]} : vector<22x16xf32> to vector<16x16xf32>
    %109 = vector.broadcast %106 : f32 to vector<16x16xf32>
    %110 = arith.mulf %109, %108 : vector<16x16xf32>
    %111 = arith.addf %79, %110 : vector<16x16xf32>
    %112 = vector.extract_strided_slice %95 {offsets = [1, 0], sizes = [16, 16], strides = [1, 1]} : vector<22x16xf32> to vector<16x16xf32>
    %113 = vector.broadcast %107 : f32 to vector<16x16xf32>
    %114 = arith.mulf %113, %112 : vector<16x16xf32>
    %115 = arith.addf %83, %114 : vector<16x16xf32>
    %c15 = arith.constant 15 : index
    %116 = memref.load %arg2[%c15] : memref<98xf32, #tpu.memory_space<smem>>
    %c64 = arith.constant 64 : index
    %117 = memref.load %arg2[%c64] : memref<98xf32, #tpu.memory_space<smem>>
    %118 = vector.extract_strided_slice %94 {offsets = [2, 0], sizes = [16, 16], strides = [1, 1]} : vector<22x16xf32> to vector<16x16xf32>
    %119 = vector.broadcast %116 : f32 to vector<16x16xf32>
    %120 = arith.mulf %119, %118 : vector<16x16xf32>
    %121 = arith.addf %101, %120 : vector<16x16xf32>
    %122 = vector.extract_strided_slice %95 {offsets = [2, 0], sizes = [16, 16], strides = [1, 1]} : vector<22x16xf32> to vector<16x16xf32>
    %123 = vector.broadcast %117 : f32 to vector<16x16xf32>
    %124 = arith.mulf %123, %122 : vector<16x16xf32>
    %125 = arith.addf %105, %124 : vector<16x16xf32>
    %c22 = arith.constant 22 : index
    %126 = memref.load %arg2[%c22] : memref<98xf32, #tpu.memory_space<smem>>
    %c71 = arith.constant 71 : index
    %127 = memref.load %arg2[%c71] : memref<98xf32, #tpu.memory_space<smem>>
    %128 = vector.extract_strided_slice %94 {offsets = [3, 0], sizes = [16, 16], strides = [1, 1]} : vector<22x16xf32> to vector<16x16xf32>
    %129 = vector.broadcast %126 : f32 to vector<16x16xf32>
    %130 = arith.mulf %129, %128 : vector<16x16xf32>
    %131 = arith.addf %111, %130 : vector<16x16xf32>
    %132 = vector.extract_strided_slice %95 {offsets = [3, 0], sizes = [16, 16], strides = [1, 1]} : vector<22x16xf32> to vector<16x16xf32>
    %133 = vector.broadcast %127 : f32 to vector<16x16xf32>
    %134 = arith.mulf %133, %132 : vector<16x16xf32>
    %135 = arith.addf %115, %134 : vector<16x16xf32>
    %c29 = arith.constant 29 : index
    %136 = memref.load %arg2[%c29] : memref<98xf32, #tpu.memory_space<smem>>
    %c78 = arith.constant 78 : index
    %137 = memref.load %arg2[%c78] : memref<98xf32, #tpu.memory_space<smem>>
    %138 = vector.extract_strided_slice %94 {offsets = [4, 0], sizes = [16, 16], strides = [1, 1]} : vector<22x16xf32> to vector<16x16xf32>
    %139 = vector.broadcast %136 : f32 to vector<16x16xf32>
    %140 = arith.mulf %139, %138 : vector<16x16xf32>
    %141 = arith.addf %121, %140 : vector<16x16xf32>
    %142 = vector.extract_strided_slice %95 {offsets = [4, 0], sizes = [16, 16], strides = [1, 1]} : vector<22x16xf32> to vector<16x16xf32>
    %143 = vector.broadcast %137 : f32 to vector<16x16xf32>
    %144 = arith.mulf %143, %142 : vector<16x16xf32>
    %145 = arith.addf %125, %144 : vector<16x16xf32>
    %c36 = arith.constant 36 : index
    %146 = memref.load %arg2[%c36] : memref<98xf32, #tpu.memory_space<smem>>
    %c85 = arith.constant 85 : index
    %147 = memref.load %arg2[%c85] : memref<98xf32, #tpu.memory_space<smem>>
    %148 = vector.extract_strided_slice %94 {offsets = [5, 0], sizes = [16, 16], strides = [1, 1]} : vector<22x16xf32> to vector<16x16xf32>
    %149 = vector.broadcast %146 : f32 to vector<16x16xf32>
    %150 = arith.mulf %149, %148 : vector<16x16xf32>
    %151 = arith.addf %131, %150 : vector<16x16xf32>
    %152 = vector.extract_strided_slice %95 {offsets = [5, 0], sizes = [16, 16], strides = [1, 1]} : vector<22x16xf32> to vector<16x16xf32>
    %153 = vector.broadcast %147 : f32 to vector<16x16xf32>
    %154 = arith.mulf %153, %152 : vector<16x16xf32>
    %155 = arith.addf %135, %154 : vector<16x16xf32>
    %c43 = arith.constant 43 : index
    %156 = memref.load %arg2[%c43] : memref<98xf32, #tpu.memory_space<smem>>
    %c92 = arith.constant 92 : index
    %157 = memref.load %arg2[%c92] : memref<98xf32, #tpu.memory_space<smem>>
    %158 = vector.extract_strided_slice %94 {offsets = [6, 0], sizes = [16, 16], strides = [1, 1]} : vector<22x16xf32> to vector<16x16xf32>
    %159 = vector.broadcast %156 : f32 to vector<16x16xf32>
    %160 = arith.mulf %159, %158 : vector<16x16xf32>
    %161 = arith.addf %141, %160 : vector<16x16xf32>
    %162 = vector.extract_strided_slice %95 {offsets = [6, 0], sizes = [16, 16], strides = [1, 1]} : vector<22x16xf32> to vector<16x16xf32>
    %163 = vector.broadcast %157 : f32 to vector<16x16xf32>
    %164 = arith.mulf %163, %162 : vector<16x16xf32>
    %165 = arith.addf %145, %164 : vector<16x16xf32>
    %c0_38 = arith.constant 0 : index
    %c2 = arith.constant 2 : index
    %166 = vector.load %arg4[%c0_38, %c2] : memref<22x22xf32, #tpu.memory_space<vmem>>, vector<22x16xf32>
    %c0_39 = arith.constant 0 : index
    %c2_40 = arith.constant 2 : index
    %167 = vector.load %arg5[%c0_39, %c2_40] : memref<22x22xf32, #tpu.memory_space<vmem>>, vector<22x16xf32>
    %c2_41 = arith.constant 2 : index
    %168 = memref.load %arg2[%c2_41] : memref<98xf32, #tpu.memory_space<smem>>
    %c51 = arith.constant 51 : index
    %169 = memref.load %arg2[%c51] : memref<98xf32, #tpu.memory_space<smem>>
    %170 = vector.extract_strided_slice %166 {offsets = [0, 0], sizes = [16, 16], strides = [1, 1]} : vector<22x16xf32> to vector<16x16xf32>
    %171 = vector.broadcast %168 : f32 to vector<16x16xf32>
    %172 = arith.mulf %171, %170 : vector<16x16xf32>
    %173 = arith.addf %161, %172 : vector<16x16xf32>
    %174 = vector.extract_strided_slice %167 {offsets = [0, 0], sizes = [16, 16], strides = [1, 1]} : vector<22x16xf32> to vector<16x16xf32>
    %175 = vector.broadcast %169 : f32 to vector<16x16xf32>
    %176 = arith.mulf %175, %174 : vector<16x16xf32>
    %177 = arith.addf %165, %176 : vector<16x16xf32>
    %c9 = arith.constant 9 : index
    %178 = memref.load %arg2[%c9] : memref<98xf32, #tpu.memory_space<smem>>
    %c58 = arith.constant 58 : index
    %179 = memref.load %arg2[%c58] : memref<98xf32, #tpu.memory_space<smem>>
    %180 = vector.extract_strided_slice %166 {offsets = [1, 0], sizes = [16, 16], strides = [1, 1]} : vector<22x16xf32> to vector<16x16xf32>
    %181 = vector.broadcast %178 : f32 to vector<16x16xf32>
    %182 = arith.mulf %181, %180 : vector<16x16xf32>
    %183 = arith.addf %151, %182 : vector<16x16xf32>
    %184 = vector.extract_strided_slice %167 {offsets = [1, 0], sizes = [16, 16], strides = [1, 1]} : vector<22x16xf32> to vector<16x16xf32>
    %185 = vector.broadcast %179 : f32 to vector<16x16xf32>
    %186 = arith.mulf %185, %184 : vector<16x16xf32>
    %187 = arith.addf %155, %186 : vector<16x16xf32>
    %c16 = arith.constant 16 : index
    %188 = memref.load %arg2[%c16] : memref<98xf32, #tpu.memory_space<smem>>
    %c65 = arith.constant 65 : index
    %189 = memref.load %arg2[%c65] : memref<98xf32, #tpu.memory_space<smem>>
    %190 = vector.extract_strided_slice %166 {offsets = [2, 0], sizes = [16, 16], strides = [1, 1]} : vector<22x16xf32> to vector<16x16xf32>
    %191 = vector.broadcast %188 : f32 to vector<16x16xf32>
    %192 = arith.mulf %191, %190 : vector<16x16xf32>
    %193 = arith.addf %173, %192 : vector<16x16xf32>
    %194 = vector.extract_strided_slice %167 {offsets = [2, 0], sizes = [16, 16], strides = [1, 1]} : vector<22x16xf32> to vector<16x16xf32>
    %195 = vector.broadcast %189 : f32 to vector<16x16xf32>
    %196 = arith.mulf %195, %194 : vector<16x16xf32>
    %197 = arith.addf %177, %196 : vector<16x16xf32>
    %c23 = arith.constant 23 : index
    %198 = memref.load %arg2[%c23] : memref<98xf32, #tpu.memory_space<smem>>
    %c72 = arith.constant 72 : index
    %199 = memref.load %arg2[%c72] : memref<98xf32, #tpu.memory_space<smem>>
    %200 = vector.extract_strided_slice %166 {offsets = [3, 0], sizes = [16, 16], strides = [1, 1]} : vector<22x16xf32> to vector<16x16xf32>
    %201 = vector.broadcast %198 : f32 to vector<16x16xf32>
    %202 = arith.mulf %201, %200 : vector<16x16xf32>
    %203 = arith.addf %183, %202 : vector<16x16xf32>
    %204 = vector.extract_strided_slice %167 {offsets = [3, 0], sizes = [16, 16], strides = [1, 1]} : vector<22x16xf32> to vector<16x16xf32>
    %205 = vector.broadcast %199 : f32 to vector<16x16xf32>
    %206 = arith.mulf %205, %204 : vector<16x16xf32>
    %207 = arith.addf %187, %206 : vector<16x16xf32>
    %c30 = arith.constant 30 : index
    %208 = memref.load %arg2[%c30] : memref<98xf32, #tpu.memory_space<smem>>
    %c79 = arith.constant 79 : index
    %209 = memref.load %arg2[%c79] : memref<98xf32, #tpu.memory_space<smem>>
    %210 = vector.extract_strided_slice %166 {offsets = [4, 0], sizes = [16, 16], strides = [1, 1]} : vector<22x16xf32> to vector<16x16xf32>
    %211 = vector.broadcast %208 : f32 to vector<16x16xf32>
    %212 = arith.mulf %211, %210 : vector<16x16xf32>
    %213 = arith.addf %193, %212 : vector<16x16xf32>
    %214 = vector.extract_strided_slice %167 {offsets = [4, 0], sizes = [16, 16], strides = [1, 1]} : vector<22x16xf32> to vector<16x16xf32>
    %215 = vector.broadcast %209 : f32 to vector<16x16xf32>
    %216 = arith.mulf %215, %214 : vector<16x16xf32>
    %217 = arith.addf %197, %216 : vector<16x16xf32>
    %c37 = arith.constant 37 : index
    %218 = memref.load %arg2[%c37] : memref<98xf32, #tpu.memory_space<smem>>
    %c86 = arith.constant 86 : index
    %219 = memref.load %arg2[%c86] : memref<98xf32, #tpu.memory_space<smem>>
    %220 = vector.extract_strided_slice %166 {offsets = [5, 0], sizes = [16, 16], strides = [1, 1]} : vector<22x16xf32> to vector<16x16xf32>
    %221 = vector.broadcast %218 : f32 to vector<16x16xf32>
    %222 = arith.mulf %221, %220 : vector<16x16xf32>
    %223 = arith.addf %203, %222 : vector<16x16xf32>
    %224 = vector.extract_strided_slice %167 {offsets = [5, 0], sizes = [16, 16], strides = [1, 1]} : vector<22x16xf32> to vector<16x16xf32>
    %225 = vector.broadcast %219 : f32 to vector<16x16xf32>
    %226 = arith.mulf %225, %224 : vector<16x16xf32>
    %227 = arith.addf %207, %226 : vector<16x16xf32>
    %c44 = arith.constant 44 : index
    %228 = memref.load %arg2[%c44] : memref<98xf32, #tpu.memory_space<smem>>
    %c93 = arith.constant 93 : index
    %229 = memref.load %arg2[%c93] : memref<98xf32, #tpu.memory_space<smem>>
    %230 = vector.extract_strided_slice %166 {offsets = [6, 0], sizes = [16, 16], strides = [1, 1]} : vector<22x16xf32> to vector<16x16xf32>
    %231 = vector.broadcast %228 : f32 to vector<16x16xf32>
    %232 = arith.mulf %231, %230 : vector<16x16xf32>
    %233 = arith.addf %213, %232 : vector<16x16xf32>
    %234 = vector.extract_strided_slice %167 {offsets = [6, 0], sizes = [16, 16], strides = [1, 1]} : vector<22x16xf32> to vector<16x16xf32>
    %235 = vector.broadcast %229 : f32 to vector<16x16xf32>
    %236 = arith.mulf %235, %234 : vector<16x16xf32>
    %237 = arith.addf %217, %236 : vector<16x16xf32>
    %c0_42 = arith.constant 0 : index
    %c3_43 = arith.constant 3 : index
    %238 = vector.load %arg4[%c0_42, %c3_43] : memref<22x22xf32, #tpu.memory_space<vmem>>, vector<22x16xf32>
    %c0_44 = arith.constant 0 : index
    %c3_45 = arith.constant 3 : index
    %239 = vector.load %arg5[%c0_44, %c3_45] : memref<22x22xf32, #tpu.memory_space<vmem>>, vector<22x16xf32>
    %c3_46 = arith.constant 3 : index
    %240 = memref.load %arg2[%c3_46] : memref<98xf32, #tpu.memory_space<smem>>
    %c52 = arith.constant 52 : index
    %241 = memref.load %arg2[%c52] : memref<98xf32, #tpu.memory_space<smem>>
    %242 = vector.extract_strided_slice %238 {offsets = [0, 0], sizes = [16, 16], strides = [1, 1]} : vector<22x16xf32> to vector<16x16xf32>
    %243 = vector.broadcast %240 : f32 to vector<16x16xf32>
    %244 = arith.mulf %243, %242 : vector<16x16xf32>
    %245 = arith.addf %233, %244 : vector<16x16xf32>
    %246 = vector.extract_strided_slice %239 {offsets = [0, 0], sizes = [16, 16], strides = [1, 1]} : vector<22x16xf32> to vector<16x16xf32>
    %247 = vector.broadcast %241 : f32 to vector<16x16xf32>
    %248 = arith.mulf %247, %246 : vector<16x16xf32>
    %249 = arith.addf %237, %248 : vector<16x16xf32>
    %c10 = arith.constant 10 : index
    %250 = memref.load %arg2[%c10] : memref<98xf32, #tpu.memory_space<smem>>
    %c59 = arith.constant 59 : index
    %251 = memref.load %arg2[%c59] : memref<98xf32, #tpu.memory_space<smem>>
    %252 = vector.extract_strided_slice %238 {offsets = [1, 0], sizes = [16, 16], strides = [1, 1]} : vector<22x16xf32> to vector<16x16xf32>
    %253 = vector.broadcast %250 : f32 to vector<16x16xf32>
    %254 = arith.mulf %253, %252 : vector<16x16xf32>
    %255 = arith.addf %223, %254 : vector<16x16xf32>
    %256 = vector.extract_strided_slice %239 {offsets = [1, 0], sizes = [16, 16], strides = [1, 1]} : vector<22x16xf32> to vector<16x16xf32>
    %257 = vector.broadcast %251 : f32 to vector<16x16xf32>
    %258 = arith.mulf %257, %256 : vector<16x16xf32>
    %259 = arith.addf %227, %258 : vector<16x16xf32>
    %c17 = arith.constant 17 : index
    %260 = memref.load %arg2[%c17] : memref<98xf32, #tpu.memory_space<smem>>
    %c66 = arith.constant 66 : index
    %261 = memref.load %arg2[%c66] : memref<98xf32, #tpu.memory_space<smem>>
    %262 = vector.extract_strided_slice %238 {offsets = [2, 0], sizes = [16, 16], strides = [1, 1]} : vector<22x16xf32> to vector<16x16xf32>
    %263 = vector.broadcast %260 : f32 to vector<16x16xf32>
    %264 = arith.mulf %263, %262 : vector<16x16xf32>
    %265 = arith.addf %245, %264 : vector<16x16xf32>
    %266 = vector.extract_strided_slice %239 {offsets = [2, 0], sizes = [16, 16], strides = [1, 1]} : vector<22x16xf32> to vector<16x16xf32>
    %267 = vector.broadcast %261 : f32 to vector<16x16xf32>
    %268 = arith.mulf %267, %266 : vector<16x16xf32>
    %269 = arith.addf %249, %268 : vector<16x16xf32>
    %c24 = arith.constant 24 : index
    %270 = memref.load %arg2[%c24] : memref<98xf32, #tpu.memory_space<smem>>
    %c73 = arith.constant 73 : index
    %271 = memref.load %arg2[%c73] : memref<98xf32, #tpu.memory_space<smem>>
    %272 = vector.extract_strided_slice %238 {offsets = [3, 0], sizes = [16, 16], strides = [1, 1]} : vector<22x16xf32> to vector<16x16xf32>
    %273 = vector.broadcast %270 : f32 to vector<16x16xf32>
    %274 = arith.mulf %273, %272 : vector<16x16xf32>
    %275 = arith.addf %255, %274 : vector<16x16xf32>
    %276 = vector.extract_strided_slice %239 {offsets = [3, 0], sizes = [16, 16], strides = [1, 1]} : vector<22x16xf32> to vector<16x16xf32>
    %277 = vector.broadcast %271 : f32 to vector<16x16xf32>
    %278 = arith.mulf %277, %276 : vector<16x16xf32>
    %279 = arith.addf %259, %278 : vector<16x16xf32>
    %c31 = arith.constant 31 : index
    %280 = memref.load %arg2[%c31] : memref<98xf32, #tpu.memory_space<smem>>
    %c80 = arith.constant 80 : index
    %281 = memref.load %arg2[%c80] : memref<98xf32, #tpu.memory_space<smem>>
    %282 = vector.extract_strided_slice %238 {offsets = [4, 0], sizes = [16, 16], strides = [1, 1]} : vector<22x16xf32> to vector<16x16xf32>
    %283 = vector.broadcast %280 : f32 to vector<16x16xf32>
    %284 = arith.mulf %283, %282 : vector<16x16xf32>
    %285 = arith.addf %265, %284 : vector<16x16xf32>
    %286 = vector.extract_strided_slice %239 {offsets = [4, 0], sizes = [16, 16], strides = [1, 1]} : vector<22x16xf32> to vector<16x16xf32>
    %287 = vector.broadcast %281 : f32 to vector<16x16xf32>
    %288 = arith.mulf %287, %286 : vector<16x16xf32>
    %289 = arith.addf %269, %288 : vector<16x16xf32>
    %c38 = arith.constant 38 : index
    %290 = memref.load %arg2[%c38] : memref<98xf32, #tpu.memory_space<smem>>
    %c87 = arith.constant 87 : index
    %291 = memref.load %arg2[%c87] : memref<98xf32, #tpu.memory_space<smem>>
    %292 = vector.extract_strided_slice %238 {offsets = [5, 0], sizes = [16, 16], strides = [1, 1]} : vector<22x16xf32> to vector<16x16xf32>
    %293 = vector.broadcast %290 : f32 to vector<16x16xf32>
    %294 = arith.mulf %293, %292 : vector<16x16xf32>
    %295 = arith.addf %275, %294 : vector<16x16xf32>
    %296 = vector.extract_strided_slice %239 {offsets = [5, 0], sizes = [16, 16], strides = [1, 1]} : vector<22x16xf32> to vector<16x16xf32>
    %297 = vector.broadcast %291 : f32 to vector<16x16xf32>
    %298 = arith.mulf %297, %296 : vector<16x16xf32>
    %299 = arith.addf %279, %298 : vector<16x16xf32>
    %c45 = arith.constant 45 : index
    %300 = memref.load %arg2[%c45] : memref<98xf32, #tpu.memory_space<smem>>
    %c94 = arith.constant 94 : index
    %301 = memref.load %arg2[%c94] : memref<98xf32, #tpu.memory_space<smem>>
    %302 = vector.extract_strided_slice %238 {offsets = [6, 0], sizes = [16, 16], strides = [1, 1]} : vector<22x16xf32> to vector<16x16xf32>
    %303 = vector.broadcast %300 : f32 to vector<16x16xf32>
    %304 = arith.mulf %303, %302 : vector<16x16xf32>
    %305 = arith.addf %285, %304 : vector<16x16xf32>
    %306 = vector.extract_strided_slice %239 {offsets = [6, 0], sizes = [16, 16], strides = [1, 1]} : vector<22x16xf32> to vector<16x16xf32>
    %307 = vector.broadcast %301 : f32 to vector<16x16xf32>
    %308 = arith.mulf %307, %306 : vector<16x16xf32>
    %309 = arith.addf %289, %308 : vector<16x16xf32>
    %c0_47 = arith.constant 0 : index
    %c4 = arith.constant 4 : index
    %310 = vector.load %arg4[%c0_47, %c4] : memref<22x22xf32, #tpu.memory_space<vmem>>, vector<22x16xf32>
    %c0_48 = arith.constant 0 : index
    %c4_49 = arith.constant 4 : index
    %311 = vector.load %arg5[%c0_48, %c4_49] : memref<22x22xf32, #tpu.memory_space<vmem>>, vector<22x16xf32>
    %c4_50 = arith.constant 4 : index
    %312 = memref.load %arg2[%c4_50] : memref<98xf32, #tpu.memory_space<smem>>
    %c53 = arith.constant 53 : index
    %313 = memref.load %arg2[%c53] : memref<98xf32, #tpu.memory_space<smem>>
    %314 = vector.extract_strided_slice %310 {offsets = [0, 0], sizes = [16, 16], strides = [1, 1]} : vector<22x16xf32> to vector<16x16xf32>
    %315 = vector.broadcast %312 : f32 to vector<16x16xf32>
    %316 = arith.mulf %315, %314 : vector<16x16xf32>
    %317 = arith.addf %305, %316 : vector<16x16xf32>
    %318 = vector.extract_strided_slice %311 {offsets = [0, 0], sizes = [16, 16], strides = [1, 1]} : vector<22x16xf32> to vector<16x16xf32>
    %319 = vector.broadcast %313 : f32 to vector<16x16xf32>
    %320 = arith.mulf %319, %318 : vector<16x16xf32>
    %321 = arith.addf %309, %320 : vector<16x16xf32>
    %c11 = arith.constant 11 : index
    %322 = memref.load %arg2[%c11] : memref<98xf32, #tpu.memory_space<smem>>
    %c60 = arith.constant 60 : index
    %323 = memref.load %arg2[%c60] : memref<98xf32, #tpu.memory_space<smem>>
    %324 = vector.extract_strided_slice %310 {offsets = [1, 0], sizes = [16, 16], strides = [1, 1]} : vector<22x16xf32> to vector<16x16xf32>
    %325 = vector.broadcast %322 : f32 to vector<16x16xf32>
    %326 = arith.mulf %325, %324 : vector<16x16xf32>
    %327 = arith.addf %295, %326 : vector<16x16xf32>
    %328 = vector.extract_strided_slice %311 {offsets = [1, 0], sizes = [16, 16], strides = [1, 1]} : vector<22x16xf32> to vector<16x16xf32>
    %329 = vector.broadcast %323 : f32 to vector<16x16xf32>
    %330 = arith.mulf %329, %328 : vector<16x16xf32>
    %331 = arith.addf %299, %330 : vector<16x16xf32>
    %c18 = arith.constant 18 : index
    %332 = memref.load %arg2[%c18] : memref<98xf32, #tpu.memory_space<smem>>
    %c67 = arith.constant 67 : index
    %333 = memref.load %arg2[%c67] : memref<98xf32, #tpu.memory_space<smem>>
    %334 = vector.extract_strided_slice %310 {offsets = [2, 0], sizes = [16, 16], strides = [1, 1]} : vector<22x16xf32> to vector<16x16xf32>
    %335 = vector.broadcast %332 : f32 to vector<16x16xf32>
    %336 = arith.mulf %335, %334 : vector<16x16xf32>
    %337 = arith.addf %317, %336 : vector<16x16xf32>
    %338 = vector.extract_strided_slice %311 {offsets = [2, 0], sizes = [16, 16], strides = [1, 1]} : vector<22x16xf32> to vector<16x16xf32>
    %339 = vector.broadcast %333 : f32 to vector<16x16xf32>
    %340 = arith.mulf %339, %338 : vector<16x16xf32>
    %341 = arith.addf %321, %340 : vector<16x16xf32>
    %c25 = arith.constant 25 : index
    %342 = memref.load %arg2[%c25] : memref<98xf32, #tpu.memory_space<smem>>
    %c74 = arith.constant 74 : index
    %343 = memref.load %arg2[%c74] : memref<98xf32, #tpu.memory_space<smem>>
    %344 = vector.extract_strided_slice %310 {offsets = [3, 0], sizes = [16, 16], strides = [1, 1]} : vector<22x16xf32> to vector<16x16xf32>
    %345 = vector.broadcast %342 : f32 to vector<16x16xf32>
    %346 = arith.mulf %345, %344 : vector<16x16xf32>
    %347 = arith.addf %327, %346 : vector<16x16xf32>
    %348 = vector.extract_strided_slice %311 {offsets = [3, 0], sizes = [16, 16], strides = [1, 1]} : vector<22x16xf32> to vector<16x16xf32>
    %349 = vector.broadcast %343 : f32 to vector<16x16xf32>
    %350 = arith.mulf %349, %348 : vector<16x16xf32>
    %351 = arith.addf %331, %350 : vector<16x16xf32>
    %c32 = arith.constant 32 : index
    %352 = memref.load %arg2[%c32] : memref<98xf32, #tpu.memory_space<smem>>
    %c81 = arith.constant 81 : index
    %353 = memref.load %arg2[%c81] : memref<98xf32, #tpu.memory_space<smem>>
    %354 = vector.extract_strided_slice %310 {offsets = [4, 0], sizes = [16, 16], strides = [1, 1]} : vector<22x16xf32> to vector<16x16xf32>
    %355 = vector.broadcast %352 : f32 to vector<16x16xf32>
    %356 = arith.mulf %355, %354 : vector<16x16xf32>
    %357 = arith.addf %337, %356 : vector<16x16xf32>
    %358 = vector.extract_strided_slice %311 {offsets = [4, 0], sizes = [16, 16], strides = [1, 1]} : vector<22x16xf32> to vector<16x16xf32>
    %359 = vector.broadcast %353 : f32 to vector<16x16xf32>
    %360 = arith.mulf %359, %358 : vector<16x16xf32>
    %361 = arith.addf %341, %360 : vector<16x16xf32>
    %c39 = arith.constant 39 : index
    %362 = memref.load %arg2[%c39] : memref<98xf32, #tpu.memory_space<smem>>
    %c88 = arith.constant 88 : index
    %363 = memref.load %arg2[%c88] : memref<98xf32, #tpu.memory_space<smem>>
    %364 = vector.extract_strided_slice %310 {offsets = [5, 0], sizes = [16, 16], strides = [1, 1]} : vector<22x16xf32> to vector<16x16xf32>
    %365 = vector.broadcast %362 : f32 to vector<16x16xf32>
    %366 = arith.mulf %365, %364 : vector<16x16xf32>
    %367 = arith.addf %347, %366 : vector<16x16xf32>
    %368 = vector.extract_strided_slice %311 {offsets = [5, 0], sizes = [16, 16], strides = [1, 1]} : vector<22x16xf32> to vector<16x16xf32>
    %369 = vector.broadcast %363 : f32 to vector<16x16xf32>
    %370 = arith.mulf %369, %368 : vector<16x16xf32>
    %371 = arith.addf %351, %370 : vector<16x16xf32>
    %c46 = arith.constant 46 : index
    %372 = memref.load %arg2[%c46] : memref<98xf32, #tpu.memory_space<smem>>
    %c95 = arith.constant 95 : index
    %373 = memref.load %arg2[%c95] : memref<98xf32, #tpu.memory_space<smem>>
    %374 = vector.extract_strided_slice %310 {offsets = [6, 0], sizes = [16, 16], strides = [1, 1]} : vector<22x16xf32> to vector<16x16xf32>
    %375 = vector.broadcast %372 : f32 to vector<16x16xf32>
    %376 = arith.mulf %375, %374 : vector<16x16xf32>
    %377 = arith.addf %357, %376 : vector<16x16xf32>
    %378 = vector.extract_strided_slice %311 {offsets = [6, 0], sizes = [16, 16], strides = [1, 1]} : vector<22x16xf32> to vector<16x16xf32>
    %379 = vector.broadcast %373 : f32 to vector<16x16xf32>
    %380 = arith.mulf %379, %378 : vector<16x16xf32>
    %381 = arith.addf %361, %380 : vector<16x16xf32>
    %c0_51 = arith.constant 0 : index
    %c5 = arith.constant 5 : index
    %382 = vector.load %arg4[%c0_51, %c5] : memref<22x22xf32, #tpu.memory_space<vmem>>, vector<22x16xf32>
    %c0_52 = arith.constant 0 : index
    %c5_53 = arith.constant 5 : index
    %383 = vector.load %arg5[%c0_52, %c5_53] : memref<22x22xf32, #tpu.memory_space<vmem>>, vector<22x16xf32>
    %c5_54 = arith.constant 5 : index
    %384 = memref.load %arg2[%c5_54] : memref<98xf32, #tpu.memory_space<smem>>
    %c54 = arith.constant 54 : index
    %385 = memref.load %arg2[%c54] : memref<98xf32, #tpu.memory_space<smem>>
    %386 = vector.extract_strided_slice %382 {offsets = [0, 0], sizes = [16, 16], strides = [1, 1]} : vector<22x16xf32> to vector<16x16xf32>
    %387 = vector.broadcast %384 : f32 to vector<16x16xf32>
    %388 = arith.mulf %387, %386 : vector<16x16xf32>
    %389 = arith.addf %377, %388 : vector<16x16xf32>
    %390 = vector.extract_strided_slice %383 {offsets = [0, 0], sizes = [16, 16], strides = [1, 1]} : vector<22x16xf32> to vector<16x16xf32>
    %391 = vector.broadcast %385 : f32 to vector<16x16xf32>
    %392 = arith.mulf %391, %390 : vector<16x16xf32>
    %393 = arith.addf %381, %392 : vector<16x16xf32>
    %c12 = arith.constant 12 : index
    %394 = memref.load %arg2[%c12] : memref<98xf32, #tpu.memory_space<smem>>
    %c61 = arith.constant 61 : index
    %395 = memref.load %arg2[%c61] : memref<98xf32, #tpu.memory_space<smem>>
    %396 = vector.extract_strided_slice %382 {offsets = [1, 0], sizes = [16, 16], strides = [1, 1]} : vector<22x16xf32> to vector<16x16xf32>
    %397 = vector.broadcast %394 : f32 to vector<16x16xf32>
    %398 = arith.mulf %397, %396 : vector<16x16xf32>
    %399 = arith.addf %367, %398 : vector<16x16xf32>
    %400 = vector.extract_strided_slice %383 {offsets = [1, 0], sizes = [16, 16], strides = [1, 1]} : vector<22x16xf32> to vector<16x16xf32>
    %401 = vector.broadcast %395 : f32 to vector<16x16xf32>
    %402 = arith.mulf %401, %400 : vector<16x16xf32>
    %403 = arith.addf %371, %402 : vector<16x16xf32>
    %c19_55 = arith.constant 19 : index
    %404 = memref.load %arg2[%c19_55] : memref<98xf32, #tpu.memory_space<smem>>
    %c68 = arith.constant 68 : index
    %405 = memref.load %arg2[%c68] : memref<98xf32, #tpu.memory_space<smem>>
    %406 = vector.extract_strided_slice %382 {offsets = [2, 0], sizes = [16, 16], strides = [1, 1]} : vector<22x16xf32> to vector<16x16xf32>
    %407 = vector.broadcast %404 : f32 to vector<16x16xf32>
    %408 = arith.mulf %407, %406 : vector<16x16xf32>
    %409 = arith.addf %389, %408 : vector<16x16xf32>
    %410 = vector.extract_strided_slice %383 {offsets = [2, 0], sizes = [16, 16], strides = [1, 1]} : vector<22x16xf32> to vector<16x16xf32>
    %411 = vector.broadcast %405 : f32 to vector<16x16xf32>
    %412 = arith.mulf %411, %410 : vector<16x16xf32>
    %413 = arith.addf %393, %412 : vector<16x16xf32>
    %c26 = arith.constant 26 : index
    %414 = memref.load %arg2[%c26] : memref<98xf32, #tpu.memory_space<smem>>
    %c75 = arith.constant 75 : index
    %415 = memref.load %arg2[%c75] : memref<98xf32, #tpu.memory_space<smem>>
    %416 = vector.extract_strided_slice %382 {offsets = [3, 0], sizes = [16, 16], strides = [1, 1]} : vector<22x16xf32> to vector<16x16xf32>
    %417 = vector.broadcast %414 : f32 to vector<16x16xf32>
    %418 = arith.mulf %417, %416 : vector<16x16xf32>
    %419 = arith.addf %399, %418 : vector<16x16xf32>
    %420 = vector.extract_strided_slice %383 {offsets = [3, 0], sizes = [16, 16], strides = [1, 1]} : vector<22x16xf32> to vector<16x16xf32>
    %421 = vector.broadcast %415 : f32 to vector<16x16xf32>
    %422 = arith.mulf %421, %420 : vector<16x16xf32>
    %423 = arith.addf %403, %422 : vector<16x16xf32>
    %c33 = arith.constant 33 : index
    %424 = memref.load %arg2[%c33] : memref<98xf32, #tpu.memory_space<smem>>
    %c82 = arith.constant 82 : index
    %425 = memref.load %arg2[%c82] : memref<98xf32, #tpu.memory_space<smem>>
    %426 = vector.extract_strided_slice %382 {offsets = [4, 0], sizes = [16, 16], strides = [1, 1]} : vector<22x16xf32> to vector<16x16xf32>
    %427 = vector.broadcast %424 : f32 to vector<16x16xf32>
    %428 = arith.mulf %427, %426 : vector<16x16xf32>
    %429 = arith.addf %409, %428 : vector<16x16xf32>
    %430 = vector.extract_strided_slice %383 {offsets = [4, 0], sizes = [16, 16], strides = [1, 1]} : vector<22x16xf32> to vector<16x16xf32>
    %431 = vector.broadcast %425 : f32 to vector<16x16xf32>
    %432 = arith.mulf %431, %430 : vector<16x16xf32>
    %433 = arith.addf %413, %432 : vector<16x16xf32>
    %c40 = arith.constant 40 : index
    %434 = memref.load %arg2[%c40] : memref<98xf32, #tpu.memory_space<smem>>
    %c89 = arith.constant 89 : index
    %435 = memref.load %arg2[%c89] : memref<98xf32, #tpu.memory_space<smem>>
    %436 = vector.extract_strided_slice %382 {offsets = [5, 0], sizes = [16, 16], strides = [1, 1]} : vector<22x16xf32> to vector<16x16xf32>
    %437 = vector.broadcast %434 : f32 to vector<16x16xf32>
    %438 = arith.mulf %437, %436 : vector<16x16xf32>
    %439 = arith.addf %419, %438 : vector<16x16xf32>
    %440 = vector.extract_strided_slice %383 {offsets = [5, 0], sizes = [16, 16], strides = [1, 1]} : vector<22x16xf32> to vector<16x16xf32>
    %441 = vector.broadcast %435 : f32 to vector<16x16xf32>
    %442 = arith.mulf %441, %440 : vector<16x16xf32>
    %443 = arith.addf %423, %442 : vector<16x16xf32>
    %c47 = arith.constant 47 : index
    %444 = memref.load %arg2[%c47] : memref<98xf32, #tpu.memory_space<smem>>
    %c96 = arith.constant 96 : index
    %445 = memref.load %arg2[%c96] : memref<98xf32, #tpu.memory_space<smem>>
    %446 = vector.extract_strided_slice %382 {offsets = [6, 0], sizes = [16, 16], strides = [1, 1]} : vector<22x16xf32> to vector<16x16xf32>
    %447 = vector.broadcast %444 : f32 to vector<16x16xf32>
    %448 = arith.mulf %447, %446 : vector<16x16xf32>
    %449 = arith.addf %429, %448 : vector<16x16xf32>
    %450 = vector.extract_strided_slice %383 {offsets = [6, 0], sizes = [16, 16], strides = [1, 1]} : vector<22x16xf32> to vector<16x16xf32>
    %451 = vector.broadcast %445 : f32 to vector<16x16xf32>
    %452 = arith.mulf %451, %450 : vector<16x16xf32>
    %453 = arith.addf %433, %452 : vector<16x16xf32>
    %c0_56 = arith.constant 0 : index
    %c6 = arith.constant 6 : index
    %454 = vector.load %arg4[%c0_56, %c6] : memref<22x22xf32, #tpu.memory_space<vmem>>, vector<22x16xf32>
    %c0_57 = arith.constant 0 : index
    %c6_58 = arith.constant 6 : index
    %455 = vector.load %arg5[%c0_57, %c6_58] : memref<22x22xf32, #tpu.memory_space<vmem>>, vector<22x16xf32>
    %c6_59 = arith.constant 6 : index
    %456 = memref.load %arg2[%c6_59] : memref<98xf32, #tpu.memory_space<smem>>
    %c55 = arith.constant 55 : index
    %457 = memref.load %arg2[%c55] : memref<98xf32, #tpu.memory_space<smem>>
    %458 = vector.extract_strided_slice %454 {offsets = [0, 0], sizes = [16, 16], strides = [1, 1]} : vector<22x16xf32> to vector<16x16xf32>
    %459 = vector.broadcast %456 : f32 to vector<16x16xf32>
    %460 = arith.mulf %459, %458 : vector<16x16xf32>
    %461 = arith.addf %449, %460 : vector<16x16xf32>
    %462 = vector.extract_strided_slice %455 {offsets = [0, 0], sizes = [16, 16], strides = [1, 1]} : vector<22x16xf32> to vector<16x16xf32>
    %463 = vector.broadcast %457 : f32 to vector<16x16xf32>
    %464 = arith.mulf %463, %462 : vector<16x16xf32>
    %465 = arith.addf %453, %464 : vector<16x16xf32>
    %c13 = arith.constant 13 : index
    %466 = memref.load %arg2[%c13] : memref<98xf32, #tpu.memory_space<smem>>
    %c62 = arith.constant 62 : index
    %467 = memref.load %arg2[%c62] : memref<98xf32, #tpu.memory_space<smem>>
    %468 = vector.extract_strided_slice %454 {offsets = [1, 0], sizes = [16, 16], strides = [1, 1]} : vector<22x16xf32> to vector<16x16xf32>
    %469 = vector.broadcast %466 : f32 to vector<16x16xf32>
    %470 = arith.mulf %469, %468 : vector<16x16xf32>
    %471 = arith.addf %439, %470 : vector<16x16xf32>
    %472 = vector.extract_strided_slice %455 {offsets = [1, 0], sizes = [16, 16], strides = [1, 1]} : vector<22x16xf32> to vector<16x16xf32>
    %473 = vector.broadcast %467 : f32 to vector<16x16xf32>
    %474 = arith.mulf %473, %472 : vector<16x16xf32>
    %475 = arith.addf %443, %474 : vector<16x16xf32>
    %c20 = arith.constant 20 : index
    %476 = memref.load %arg2[%c20] : memref<98xf32, #tpu.memory_space<smem>>
    %c69 = arith.constant 69 : index
    %477 = memref.load %arg2[%c69] : memref<98xf32, #tpu.memory_space<smem>>
    %478 = vector.extract_strided_slice %454 {offsets = [2, 0], sizes = [16, 16], strides = [1, 1]} : vector<22x16xf32> to vector<16x16xf32>
    %479 = vector.broadcast %476 : f32 to vector<16x16xf32>
    %480 = arith.mulf %479, %478 : vector<16x16xf32>
    %481 = arith.addf %461, %480 : vector<16x16xf32>
    %482 = vector.extract_strided_slice %455 {offsets = [2, 0], sizes = [16, 16], strides = [1, 1]} : vector<22x16xf32> to vector<16x16xf32>
    %483 = vector.broadcast %477 : f32 to vector<16x16xf32>
    %484 = arith.mulf %483, %482 : vector<16x16xf32>
    %485 = arith.addf %465, %484 : vector<16x16xf32>
    %c27 = arith.constant 27 : index
    %486 = memref.load %arg2[%c27] : memref<98xf32, #tpu.memory_space<smem>>
    %c76 = arith.constant 76 : index
    %487 = memref.load %arg2[%c76] : memref<98xf32, #tpu.memory_space<smem>>
    %488 = vector.extract_strided_slice %454 {offsets = [3, 0], sizes = [16, 16], strides = [1, 1]} : vector<22x16xf32> to vector<16x16xf32>
    %489 = vector.broadcast %486 : f32 to vector<16x16xf32>
    %490 = arith.mulf %489, %488 : vector<16x16xf32>
    %491 = arith.addf %471, %490 : vector<16x16xf32>
    %492 = vector.extract_strided_slice %455 {offsets = [3, 0], sizes = [16, 16], strides = [1, 1]} : vector<22x16xf32> to vector<16x16xf32>
    %493 = vector.broadcast %487 : f32 to vector<16x16xf32>
    %494 = arith.mulf %493, %492 : vector<16x16xf32>
    %495 = arith.addf %475, %494 : vector<16x16xf32>
    %c34 = arith.constant 34 : index
    %496 = memref.load %arg2[%c34] : memref<98xf32, #tpu.memory_space<smem>>
    %c83 = arith.constant 83 : index
    %497 = memref.load %arg2[%c83] : memref<98xf32, #tpu.memory_space<smem>>
    %498 = vector.extract_strided_slice %454 {offsets = [4, 0], sizes = [16, 16], strides = [1, 1]} : vector<22x16xf32> to vector<16x16xf32>
    %499 = vector.broadcast %496 : f32 to vector<16x16xf32>
    %500 = arith.mulf %499, %498 : vector<16x16xf32>
    %501 = arith.addf %481, %500 : vector<16x16xf32>
    %502 = vector.extract_strided_slice %455 {offsets = [4, 0], sizes = [16, 16], strides = [1, 1]} : vector<22x16xf32> to vector<16x16xf32>
    %503 = vector.broadcast %497 : f32 to vector<16x16xf32>
    %504 = arith.mulf %503, %502 : vector<16x16xf32>
    %505 = arith.addf %485, %504 : vector<16x16xf32>
    %c41 = arith.constant 41 : index
    %506 = memref.load %arg2[%c41] : memref<98xf32, #tpu.memory_space<smem>>
    %c90 = arith.constant 90 : index
    %507 = memref.load %arg2[%c90] : memref<98xf32, #tpu.memory_space<smem>>
    %508 = vector.extract_strided_slice %454 {offsets = [5, 0], sizes = [16, 16], strides = [1, 1]} : vector<22x16xf32> to vector<16x16xf32>
    %509 = vector.broadcast %506 : f32 to vector<16x16xf32>
    %510 = arith.mulf %509, %508 : vector<16x16xf32>
    %511 = arith.addf %491, %510 : vector<16x16xf32>
    %512 = vector.extract_strided_slice %455 {offsets = [5, 0], sizes = [16, 16], strides = [1, 1]} : vector<22x16xf32> to vector<16x16xf32>
    %513 = vector.broadcast %507 : f32 to vector<16x16xf32>
    %514 = arith.mulf %513, %512 : vector<16x16xf32>
    %515 = arith.addf %495, %514 : vector<16x16xf32>
    %c48 = arith.constant 48 : index
    %516 = memref.load %arg2[%c48] : memref<98xf32, #tpu.memory_space<smem>>
    %c97 = arith.constant 97 : index
    %517 = memref.load %arg2[%c97] : memref<98xf32, #tpu.memory_space<smem>>
    %518 = vector.extract_strided_slice %454 {offsets = [6, 0], sizes = [16, 16], strides = [1, 1]} : vector<22x16xf32> to vector<16x16xf32>
    %519 = vector.broadcast %516 : f32 to vector<16x16xf32>
    %520 = arith.mulf %519, %518 : vector<16x16xf32>
    %521 = arith.addf %501, %520 : vector<16x16xf32>
    %522 = vector.extract_strided_slice %455 {offsets = [6, 0], sizes = [16, 16], strides = [1, 1]} : vector<22x16xf32> to vector<16x16xf32>
    %523 = vector.broadcast %517 : f32 to vector<16x16xf32>
    %524 = arith.mulf %523, %522 : vector<16x16xf32>
    %525 = arith.addf %505, %524 : vector<16x16xf32>
    %526 = arith.addf %521, %511 : vector<16x16xf32>
    %527 = arith.addf %525, %515 : vector<16x16xf32>
    %528 = arith.addf %526, %527 : vector<16x16xf32>
    %529 = arith.negf %528 : vector<16x16xf32>
    %530 = math.exp %529 : vector<16x16xf32>
    %cst_60 = arith.constant 1.000000e+00 : f32
    %531 = vector.broadcast %cst_60 : f32 to vector<16x16xf32>
    %532 = arith.addf %531, %530 : vector<16x16xf32>
    %533 = arith.divf %531, %532 : vector<16x16xf32>
    %c0_61 = arith.constant 0 : index
    %c0_62 = arith.constant 0 : index
    %c0_63 = arith.constant 0 : index
    %c0_64 = arith.constant 0 : index
    %534 = vector.load %arg3[%c0_61, %c0_62, %c0_63, %c0_64] : memref<1x1x16x16xf32, #tpu.memory_space<vmem>>, vector<1x1x16x16xf32>
    %535 = vector.shape_cast %534 : vector<1x1x16x16xf32> to vector<16x16xf32>
    %536 = vector.shape_cast %533 : vector<16x16xf32> to vector<1x1x16x16xf32>
    tpu.vector_store %arg3[%c0_61, %c0_62, %c0_63, %c0_64], %536 {strides = array<i32>} : memref<1x1x16x16xf32, #tpu.memory_space<vmem>>, vector<1x1x16x16xf32>,
    return
  }
  func.func @transform_0(%arg0: i32) -> (i32, i32, i32, i32) {
    %c0_i32 = arith.constant 0 : i32
    %c0_i32_0 = arith.constant 0 : i32
    %c0_i32_1 = arith.constant 0 : i32
    %c0_i32_2 = arith.constant 0 : i32
    return %arg0, %c0_i32, %c0_i32_0, %c0_i32_1 : i32, i32, i32, i32
  }
  func.func @transform_1(%arg0: i32) -> i32 {
    %c0_i32 = arith.constant 0 : i32
    %c0_i32_0 = arith.constant 0 : i32
    return %c0_i32 : i32
  }
  func.func @transform_2(%arg0: i32) -> (i32, i32, i32, i32) {
    %c0_i32 = arith.constant 0 : i32
    %c0_i32_0 = arith.constant 0 : i32
    %c0_i32_1 = arith.constant 0 : i32
    %c0_i32_2 = arith.constant 0 : i32
    return %arg0, %c0_i32, %c0_i32_0, %c0_i32_1 : i32, i32, i32, i32
  }
}

</mosaic_0001>

<bundles_post_ra>
// kernel: spatial_attention.1
= control target key start
LH: loop header
LB: loop body
LE: loop exit
PB: predicated region body
PF: predicated region fallthrough
CT: control target
= control target key end

     0   :  { %7 = vsyncpa [#allocation5], 0  ;;  %s4524_s0 = inlined_call_operand.hbm [shape: f32[2,4,16,16], index: 0, kind: input, shape index: {}]   ;;  %s4525_s1 = inlined_call_operand.vmem [shape: f32[98], index: 1, kind: input, shape index: {}]   ;;  %s4526_s2 = inlined_call_operand.hbm [shape: f32[2,1,16,16], index: 2, kind: output, shape index: {}]  }
   0x1   :  { %9 = vsyncpa [#allocation5 + $0x1], 0 }
   0x2   :  { %10 = vsyncpa [#allocation7], 0 }
   0x3   :  { %11 = vsyncpa [#allocation6], 0 }
   0x4   :  { %13 = vsyncpa [#allocation6 + $0x1], 0  ;;  %s2729_s9 = smov 0   ;;  %s2731_s10 = smov 0  }
   0x5   :  { %s2733_s11 = smov 0   ;;  %s2735_s12 = smov 0  }
   0x6 LB: > { %s2750_s13 = sadd.s32 4294967295, %s2697_s12   ;;  %s2376_s14 = sadd.s32 4294967294, %s2697_s12   ;;  %s2697_s12 = sphi %s2735_s12, %s4718_s12   ;;  %s2693_s11 = sphi %s2733_s11, %s4717_s11   ;;  %s2689_s10 = sphi %s2731_s10, %s4716_s10   ;;  %s2685_s9 = sphi %s2729_s9, %s4715_s9  }
   0x7   : > { %s2754_s15 = sadd.s32 1, %s2697_s12   ;;  %s26_s16 = sadd.s32 1, %s2693_s11 }
   0x8   : > { %s23_s17 = ssub.s32 %s2697_s12, %s2754_s15  ;;  %p33_p0 = scmp.ne.s32.totalorder %s2693_s11, %s2689_s10 }
   0x9   : > { %p24_p1 = scmp.eq.s32.totalorder %s23_s17, 0  ;;  %p34_p2 = scmp.eq.s32.totalorder %s2697_s12, 0 }
   0xa   : > { %p39_p3 = scmp.ne.s32.totalorder %s2689_s10, %s2685_s9  ;;  %p4528_p4 = scmp.eq.s32.totalorder %s2750_s13, 0 }
   0xb   : > { %s2766_s18 = scalar_select %p24_p1, %s2693_s11, %s26_s16  }
   0xc   : > { %p2768_p5 = por %p34_p2, %p33_p0  ;;  %p2774_p6 = por %p4528_p4, %p39_p3 }
   0xd   : > { %p84_p7 = scmp.eq.s32.totalorder %s2750_s13, 1  ;;  %p90_p8 = scmp.eq.s32.totalorder %s2376_s14, 1 }
   0xe   : > { %s4533_s20 = scalar_select %p2774_p6, 1, 0 }
   0xf   : > { %p2377_p9 = scmp.ge.s32.totalorder %s2697_s12, 1  ;;  %p97_p10 = scmp.lt.s32.totalorder %s2697_s12, 3 }
  0x10   : > { %p2781_p11 = por %p84_p7, %p33_p0  ;;  %p2785_p12 = por %p90_p8, %p39_p3 }
  0x11   : > { %p2789_p13 = pnand %p2377_p9, %p97_p10  ;;  %s110_s26 = sshll.u32 %s4525_s1, 4  ;;  %s111_s26 = int_to_ptr.vmem [resolvable:$true] %s110_s26 }
  0x12   : > { %s4534_s21 = scalar_select %p2781_p11, 1, 0 }
  0x13   : > { %s4535_s22 = scalar_select %p2785_p12, 1, 0 }
  0x14   : > { %p2501_p1 = pneg %p2789_p13  ;;  %p2514_p2 = scmp.lt.s32.totalorder %s2697_s12, 2 }
  0x15   : > { %s121_s28 = sand.u32 1, %s2693_s11   ;;  %s2582_s3 = scalar_lea.vmem %s111_s26, 16 }
  0x16   : > { %p2802_p7 = pnand %p2501_p1, %p4528_p4  ;;  %p2809_p3 = pnand %p2514_p2, %p2768_p5 }
  0x17   : > { %s2380_s30 = sshll.u32 %s121_s28, 6  ;;  %p2583_p8 = scmp.ne.s32.totalorder %s111_s26, %s2582_s3 }
  0x18   : > { %p2584_p9 = pneg %p2802_p7  ;;  %p2590_p12 = scmp.lt.s32.totalorder %s111_s26, %s111_s26 }
  0x19   : > { %p2591_p11 = scmp.lt.s32.totalorder %s2582_s3, %s2582_s3 }
  0x1a   : > { %p2585_p10 = pnand %p2584_p9, %p2583_p8 }
  0x1b   : > { %p2592_p1 = por %p2591_p11, %p2590_p12 }
  0x1c   : > { %p2586_p0 = pneg %p2585_p10 }
  0x1e   : > { %p2593_p4 = pnand %p2592_p1, %p2586_p0 }
  0x20   : > { %2596 = shalt.err (!%p2593_p4)
}
  0x21   : > { %s2699_s4 = smov [#allocation8]   ;;  %s2491_s5 = sshll.u32 %s2697_s12, 10 }
  0x22   : > { %2504 = dma.vmem_to_smem (!%p2802_p7), %s111_s26, 16, %s2699_s4, [#allocation7]  }
  0x23   : > { %s125_s6 = scalar_lea.vmem [#allocation4], %s2380_s30  ;;  %s2821_s16 = scalar_lea.hbm %s4524_s0, %s2491_s5 }
  0x24   : > { %s132_s7 = sshll.u32 %s125_s6, 4  ;;  %s2825_s17 = scalar_lea.sflag [#allocation5], %s121_s28  ;;  %s2823_s7 = int_to_ptr.vmem [resolvable:$true] %s132_s7 }
  0x25   : > { %s2597_s19 = scalar_lea.hbm %s2821_s16, 1024  ;;  %p2599_p5 = pneg %p2809_p3 }
  0x26   : > { %p2598_p4 = scmp.ne.s32.totalorder %s2821_s16, %s2597_s19  ;;  %s2602_s26 = scalar_lea.hbm %s4524_s0, 2048 }
  0x27   : > { %p2603_p0 = scmp.lt.u32.totalorder %s2821_s16, %s4524_s0  ;;  %p2604_p2 = scmp.lt.u32.totalorder %s2602_s26, %s2597_s19 }
  0x28   : > { %p2600_p11 = pnand %p2599_p5, %p2598_p4  ;;  %p2606_p8 = scmp.lt.u32.totalorder %s2597_s19, %s2821_s16 }
  0x29   : > { %p2605_p7 = por %p2604_p2, %p2603_p0 }
  0x2a   : > { %p2601_p12 = pneg %p2600_p11 }
  0x2b   : > { %p2607_p9 = por %p2606_p8, %p2605_p7 }
  0x2d   : > { %p2608_p10 = pnand %p2607_p9, %p2601_p12 }
  0x2f   : > { %2611 = shalt.err (!%p2608_p10)
}
  0x30   : > { %s2612_s28 = scalar_lea.vmem %s2823_s7, 1024  ;;  %s2700_s3 = smov [#allocation4]  }
  0x31   : > { %p2613_p1 = scmp.ne.s32.totalorder %s2823_s7, %s2612_s28  ;;  %s2617_s4 = sshll.u32 %s2700_s3, 4  ;;  %s2618_s4 = int_to_ptr.vmem [resolvable:$false] %s2617_s4 }
  0x32   : > { %s2619_s5 = scalar_lea.vmem %s2618_s4, 2048  ;;  %p2620_p6 = scmp.lt.s32.totalorder %s2823_s7, %s2618_s4 }
  0x33   : > { %p2615_p4 = pnand %p2613_p1, %p2599_p5  ;;  %p2621_p0 = scmp.lt.s32.totalorder %s2619_s5, %s2612_s28 }
  0x35   : > { %p2616_p11 = pneg %p2615_p4  ;;  %p2622_p2 = por %p2621_p0, %p2620_p6 }
  0x37   : > { %p2623_p7 = pnand %p2622_p2, %p2616_p11 }
  0x39   : > { %2626 = shalt.err (!%p2623_p7)
}
  0x3a   : > { %s2701_s6 = smov 128   ;;  %s2702_s8 = smov 8  }
  0x3b   : > { %2508 = dma.hbm_to_vmem [thread:$0]  (!%p2809_p3), %s2821_s16, 1024, %s2823_s7, %s2825_s17, %s2701_s6, %s2701_s6, %s2702_s8  }
  0x3c   : > { %144 = sbr.rel (%p2789_p13) target bundleno = 779 (0x30b), region = 28 }
  0x43   : > { %s2856_s14 = sand.u32 1, %s2689_s10   ;;  %p4539_p6 = scmp.ne.s32.totalorder %s4533_s20, 0 }
  0x44   : > { %s2384_s19 = sshll.u32 %s2856_s14, 6  ;;  %s147_s24 = scalar_lea.sflag [#allocation5], %s2856_s14 }
  0x45   : > { %s150_s25 = scalar_lea.vmem [#allocation4], %s2384_s19 }
  0x46   : > { %2672 = dma.done.wait (%p4539_p6), %s147_s24, 1024  }
  0x47   : > { %2674 = vsyncadd (%p4539_p6), %s147_s24, 4294966272  ;;  %p4540_p5 = scmp.eq.s32.totalorder %s2750_s13, 0 }
  0x49   : > { %2676 = dma.done.wait (%p4540_p5), [#allocation7], 16   ;;  %p4541_p3 = pmov %p4540_p5 }
  0x4b   : > { %2678 = vsyncadd (%p4541_p3), [#allocation7], 4294967280 }
  0x4c   : > { %159 = sfence }
  0x4d   : > { %v176_v0 = vld [vmem:[%s150_s25] sm:$0xff]  ;;  %v178_v1 = vld [vmem:[%s150_s25 + $0x10] sm:$0xff]  ;;  %vm184_vm0 = vcmask 130048   ;;  %vm215_vm1 = vcmask 23552   ;;  %v177_v8 = vld [vmem:[%s150_s25 + $0x8] sm:$0xff]  ;;  %s2703_s20 = smov 3  }
  0x4e   : > { %v180_v2 = vld [vmem:[%s150_s25 + $0x20] sm:$0xff]  ;;  %v182_v3 = vld [vmem:[%s150_s25 + $0x30] sm:$0xff]  ;;  %v186_v4 = vsel %vm184_vm0, %v178_v1, 0.0  ;;  %v199_v5 = vsel %vm184_vm0, %v176_v0, -inf  ;;  %v200_v6 = vsel %vm184_vm0, %v178_v1, -inf  ;;  %v185_v11 = vsel %vm184_vm0, %v176_v0, 0.0 }
  0x4f   : > { %v201_v7 = vsel %vm184_vm0, %v180_v2, -inf  ;;  %v203_v10 = vsel %vm184_vm0, %v182_v3, -inf  ;;  %v179_v12 = vld [vmem:[%s150_s25 + $0x18] sm:$0xff]  ;;  %v181_v13 = vld [vmem:[%s150_s25 + $0x28] sm:$0xff]  ;;  %v192_v15 = vsel %vm184_vm0, %v177_v8, 0.0  ;;  %v206_v18 = vsel %vm184_vm0, %v177_v8, -inf }
  0x50   : > { %v202_v9 = vmax.f32 %v199_v5, %v201_v7  ;;  %v183_v14 = vld [vmem:[%s150_s25 + $0x38] sm:$0xff]  ;;  %v204_v16 = vmax.f32 %v200_v6, %v203_v10  ;;  %v193_v17 = vsel %vm184_vm0, %v179_v12, 0.0  ;;  %v207_v19 = vsel %vm184_vm0, %v179_v12, -inf  ;;  %s2401_s23 = sld [smem:[#allocation8 + $0x32]]  ;;  %s2403_s29 = sld [smem:[#allocation8 + $0x39]] }
  0x51   : > { %v208_v20 = vsel %vm184_vm0, %v181_v13, -inf  ;;  %v210_v21 = vsel %vm184_vm0, %v183_v14, -inf  ;;  %v187_v22 = vadd.f32 %v186_v4, %v185_v11  ;;  %v188_v23 = vsel %vm184_vm0, %v180_v2, 0.0  ;;  %s2900_s7 = sld [smem:[#allocation8 + $0x33]]  ;;  %s2405_s16 = sld [smem:[#allocation8 + $0x40]] }
  0x52   : > { %v205_v24 = vmax.f32 %v202_v9, %v204_v16  ;;  %v209_v25 = vmax.f32 %v206_v18, %v208_v20  ;;  %v211_v26 = vmax.f32 %v207_v19, %v210_v21  ;;  %v190_v27 = vsel %vm184_vm0, %v182_v3, 0.0  ;;  %s2705_s17 = smov 127   ;;  %s2417_s26 = sld [smem:[#allocation8 + $0x3a]] }
  0x53   : > { %v189_v28 = vadd.f32 %v188_v23, %v187_v22  ;;  %v194_v29 = vadd.f32 %v193_v17, %v192_v15  ;;  %v195_v30 = vsel %vm184_vm0, %v181_v13, 0.0  ;;  %v197_v31 = vsel %vm184_vm0, %v183_v14, 0.0  ;;  %s2407_s27 = sld [smem:[#allocation8 + $0x47]]  ;;  %s2409_s30 = sld [smem:[#allocation8 + $0x4e]] }
  0x54   : > { %249 = vrot.lane.b32.xlu1 %v205_v24, %s2703_s20  ;;  %v212_v32 = vmax.f32 %v209_v25, %v211_v26  ;;  %vm220_vm2 = vcmask 179352   ;;  %vm225_vm3 = vcmask 149528   ;;  %v2704_v35 = vmov 0.0   ;;  %s2706_s28 = smov 126   ;;  %s2411_s3 = sld [smem:[#allocation8 + $0x55]] }
  0x55   : > { %v191_v33 = vadd.f32 %v190_v27, %v189_v28  ;;  %v196_v34 = vadd.f32 %v195_v30, %v194_v29  ;;  %228 = vst.msk [vmem:[#allocation3] sm:$0xff] %vm215_vm1, %v2704_v35  ;;  %229 = vst.msk [vmem:[#allocation3 + $0x8] sm:$0xff] %vm215_vm1, %v2704_v35  ;;  %vm218_vm4 = vcmask 21504   ;;  %vm223_vm5 = vcmask 177304   ;;  %s2413_s4 = sld [smem:[#allocation8 + $0x5c]]  ;;  %s2419_s5 = sld [smem:[#allocation8 + $0x41]] }
  0x56   : > { %216 = vst.msk [vmem:[#allocation2] sm:$0xff] %vm215_vm1, %v2704_v35  ;;  %217 = vst.msk [vmem:[#allocation2 + $0x8] sm:$0xff] %vm215_vm1, %v2704_v35  ;;  %vm244_vm6 = vcmask 154648   ;;  %v487_v42 = vstv %s2401_s23  ;;  %v521_v47 = vstv %s2403_s29  ;;  %vm300_vm7 = vcmask 1045504   ;;  %s2421_s6 = sld [smem:[#allocation8 + $0x48]]  ;;  %s2425_s8 = sld [smem:[#allocation8 + $0x56]] }
  0x57   : > { %231 = vst.msk [vmem:[#allocation3] sm:$0xff] %vm220_vm2, %v2704_v35  ;;  %232 = vst.msk [vmem:[#allocation3 + $0x8] sm:$0xff] %vm220_vm2, %v2704_v35  ;;  %v213_v36 = vmul.f32 0.25, %v191_v33  ;;  %v198_v37 = vadd.f32 %v197_v31, %v196_v34  ;;  %v781_v50 = vstv %s2900_s7  ;;  %v2915_v53 = vstv %s2405_s16  ;;  %s2423_s19 = sld [smem:[#allocation8 + $0x4f]]  ;;  %s3029_s24 = sld [smem:[#allocation8 + $0x1]] }
  0x58   : > { %230 = vst.msk [vmem:[#allocation3 + $0x10] sm:$0x3f] %vm218_vm4, %v2704_v35  ;;  %219 = vst.msk [vmem:[#allocation2 + $0x10] sm:$0x3f] %vm218_vm4, %v2704_v35  ;;  %251 = vrot.lane.b32.xlu1 %v212_v32, %s2703_s20  ;;  %v815_v56 = vstv %s2417_s26  ;;  %vm373_vm8 = vcmask 1043456   ;;  %vm446_vm9 = vcmask 1041408  }
  0x59   : > { %221 = vst.msk [vmem:[#allocation2] sm:$0xff] %vm220_vm2, %v2704_v35  ;;  %222 = vst.msk [vmem:[#allocation2 + $0x8] sm:$0xff] %vm220_vm2, %v2704_v35  ;;  %238 = vrot.lane.b32.xlu0 %v213_v36, %s2703_s20  ;;  %v214_v38 = vmul.f32 0.25, %v198_v37  ;;  %v2929_v60 = vstv %s2407_s27  ;;  %v2941_v2 = vstv %s2409_s30  ;;  %s2402_s25 = sld [smem:[#allocation8 + $0x8]]  ;;  %s2416_s23 = sld [smem:[#allocation8 + $0x9]]  ;;  %vm2239_vm10 = vcmask 1046528  }
  0x5a   : > { %234 = vst.msk [vmem:[#allocation3] sm:$0x7] %vm225_vm3, %v2704_v35  ;;  %226 = vst.msk [vmem:[#allocation2] sm:$0x7] %vm225_vm3, %v2704_v35  ;;  %v2956_v9 = vstv %s2411_s3  ;;  %s2406_s29 = sld [smem:[#allocation8 + $0x16]]  ;;  %s2410_s7 = sld [smem:[#allocation8 + $0x24]] }
  0x5b   : > { %233 = vst.msk [vmem:[#allocation3 + $0x10] sm:$0x3f] %vm223_vm5, %v2704_v35  ;;  %224 = vst.msk [vmem:[#allocation2 + $0x10] sm:$0x3f] %vm223_vm5, %v2704_v35  ;;  %v2971_v16 = vstv %s2413_s4  ;;  %v2985_v22 = vstv %s2419_s5  ;;  %s2420_s16 = sld [smem:[#allocation8 + $0x17]]  ;;  %s2424_s26 = sld [smem:[#allocation8 + $0x25]] }
  0x5c   : > { %235 = vst.msk [vmem:[#allocation3 + $0x13] sm:$0x7] %vm225_vm3, %v2704_v35  ;;  %227 = vst.msk [vmem:[#allocation2 + $0x13] sm:$0x7] %vm225_vm3, %v2704_v35  ;;  %v2997_v27 = vstv %s2421_s6  ;;  %v3013_v34 = vstv %s2425_s8  ;;  %s2404_s27 = sld [smem:[#allocation8 + $0xf]]  ;;  %s2408_s30 = sld [smem:[#allocation8 + $0x1d]] }
  0x5d   : > { %240 = vrot.lane.b32.xlu0 %v214_v38, %s2703_s20  ;;  %v948_v37 = vstv %s2423_s19  ;;  %s3077_s20 = sld [smem:[#allocation8 + $0x2]]  ;;  %s2412_s3 = sld [smem:[#allocation8 + $0x2b]] }
  0x5e   : > { %s2418_s4 = sld [smem:[#allocation8 + $0x10]]  ;;  %s2422_s5 = sld [smem:[#allocation8 + $0x1e]] }
  0x5f   : > { %s2426_s6 = sld [smem:[#allocation8 + $0x2c]]  ;;  %s2427_s8 = sld [smem:[#allocation8 + $0x5d]] }
  0x60   : > { %s3263_s19 = sld [smem:[#allocation8 + $0x34]]  ;;  %p4712_p12 = scmp.ne.s32.totalorder %s4534_s21, 0 }
  0xc6   : > { %v250_v39 = vpop.permute.xlu1 %249 }
  0xc7   : > { %255 = vst.msk [vmem:[#allocation3 + $0x3] sm:$0xff] %vm244_vm6, %v250_v39 }
  0xca   : > { %v252_v40 = vpop.permute.xlu1 %251 }
  0xcb   : > { %256 = vst.msk [vmem:[#allocation3 + $0xb] sm:$0xff] %vm244_vm6, %v252_v40  ;;  %v239_v41 = vpop.permute.xlu0 %238 }
  0xcc   : > { %245 = vst.msk [vmem:[#allocation2 + $0x3] sm:$0xff] %vm244_vm6, %v239_v41 }
  0xce   : > { %v2902_v43 = vld [vmem:[#allocation3] sm:$0xff] }
  0xcf   : > { %v488_v44 = vmul.f32 %v487_v42, %v2902_v43  ;;  %v241_v45 = vpop.permute.xlu0 %240  ;;  %v522_v51 = vmul.f32 %v521_v47, %v2902_v43  ;;  %v782_v52 = vmul.f32 %v781_v50, %v2902_v43  ;;  %v563_v57 = vmul.f32 %v2915_v53, %v2902_v43 }
  0xd0   : > { %246 = vst.msk [vmem:[#allocation2 + $0xb] sm:$0xff] %vm244_vm6, %v241_v45  ;;  %v655_v7 = vmul.f32 %v2941_v2, %v2902_v43  ;;  %v816_v8 = vmul.f32 %v815_v56, %v2902_v43  ;;  %v747_v21 = vmul.f32 %v2971_v16, %v2902_v43  ;;  %v857_v28 = vmul.f32 %v2985_v22, %v2902_v43 }
  0xd1   : > { %492 = vrot.lane.b32.xlu0 %v488_v44, %s2705_s17  ;;  %v569_v0 = vrot.slane %v563_v57, 2 }
  0xd2   : > { %v2906_v46 = vld [vmem:[#allocation3 + $0x8] sm:$0xff]  ;;  %v2917_v54 = vld [vmem:[#allocation3 + $0x10] sm:$0x3f]  ;;  %v661_v14 = vrot.slane %v655_v7, 4  ;;  %v753_v26 = vrot.slane %v747_v21, 6  ;;  %v863_v33 = vrot.slane %v857_v28, 2  ;;  %v676_v28 = vstv %s2410_s7 }
  0xd3   : > { %v489_v48 = vmul.f32 %v487_v42, %v2906_v46  ;;  %v523_v49 = vmul.f32 %v521_v47, %v2906_v46  ;;  %v2921_v55 = vmul.f32 %v2915_v53, %v2906_v46  ;;  %v524_v58 = vmul.f32 %v521_v47, %v2917_v54  ;;  %s2435_s7 = sld [smem:[#allocation8 + $0x49]] }
  0xd4   : > { %v817_v59 = vmul.f32 %v815_v56, %v2906_v46  ;;  %v2934_v62 = vmul.f32 %v2929_v60, %v2906_v46  ;;  %v611_v63 = vmul.f32 %v2929_v60, %v2917_v54  ;;  %v783_v1 = vmul.f32 %v781_v50, %v2906_v46 }
  0xd5   : > { %494 = vrot.lane.b32.xlu1 %v489_v48, %s2705_s17  ;;  %530 = vrot.lane.b32.xlu0 %v523_v49, %s2705_s17  ;;  %v570_v61 = vrot.slane %v2921_v55, 2  ;;  %v2949_v6 = vmul.f32 %v2941_v2, %v2906_v46  ;;  %v2964_v12 = vmul.f32 %v2956_v9, %v2906_v46  ;;  %v703_v13 = vmul.f32 %v2956_v9, %v2917_v54 }
  0xd6   : > { %v616_v4 = vrot.slane %v2934_v62, 2  ;;  %v618_v5 = vrot.slane %v611_v63, 2  ;;  %v818_v15 = vmul.f32 %v815_v56, %v2917_v54  ;;  %v2979_v20 = vmul.f32 %v2971_v16, %v2906_v46 }
  0xd7   : > { %v571_v3 = vsel %vm300_vm7, %v569_v0, %v570_v61  ;;  %v662_v11 = vrot.slane %v2949_v6, 4  ;;  %v708_v18 = vrot.slane %v2964_v12, 4  ;;  %v710_v19 = vrot.slane %v703_v13, 4  ;;  %v3083_v7 = vld [vmem:[#allocation2 + $0x10] sm:$0x3f] }
  0xd8   : > { %v619_v10 = vsel %vm300_vm7, %v616_v4, %v618_v5  ;;  %v754_v24 = vrot.slane %v2979_v20, 6  ;;  %v2993_v25 = vmul.f32 %v2985_v22, %v2906_v46  ;;  %v905_v29 = vmul.f32 %v2997_v27, %v2917_v54 }
  0xd9   : > { %528 = vrot.lane.b32.xlu1 %v522_v51, %s2705_s17  ;;  %786 = vrot.lane.b32.xlu0 %v782_v52, %s2706_s28  ;;  %v663_v17 = vsel %vm373_vm8, %v661_v14, %v662_v11  ;;  %v711_v23 = vsel %vm373_vm8, %v708_v18, %v710_v19  ;;  %v3009_v32 = vmul.f32 %v2997_v27, %v2906_v46  ;;  %v768_v12 = vstv %s3077_s20  ;;  %s2432_s20 = sld [smem:[#allocation8 + $0x11]] }
  0xda   : > { %v755_v30 = vsel %vm446_vm9, %v753_v26, %v754_v24  ;;  %v864_v31 = vrot.slane %v2993_v25, 2  ;;  %v912_v35 = vrot.slane %v905_v29, 2  ;;  %v997_v36 = vmul.f32 %v3013_v34, %v2917_v54 }
  0xdb   : > { %v910_v39 = vrot.slane %v3009_v32, 2  ;;  %v565_v40 = vmul.f32 %v2915_v53, %v2917_v54  ;;  %v3024_v41 = vmul.f32 %v948_v37, %v2906_v46  ;;  %v949_v42 = vmul.f32 %v948_v37, %v2902_v43 }
  0xdc   : > { %v865_v38 = vsel %vm300_vm7, %v863_v33, %v864_v31  ;;  %v1004_v44 = vrot.slane %v997_v36, 4  ;;  %v3037_v49 = vmul.f32 %v3013_v34, %v2906_v46  ;;  %v609_v51 = vmul.f32 %v2929_v60, %v2902_v43 }
  0xdd   : > { %532 = vrot.lane.b32.xlu1 %v524_v58, %s2705_s17  ;;  %824 = vrot.lane.b32.xlu0 %v817_v59, %s2706_s28  ;;  %v913_v45 = vsel %vm300_vm7, %v910_v39, %v912_v35  ;;  %v572_v47 = vrot.slane %v565_v40, 2  ;;  %v956_v48 = vrot.slane %v3024_v41, 4  ;;  %v955_v50 = vrot.slane %v949_v42, 4  ;;  %v3054_v58 = vld [vmem:[#allocation2] sm:$0xff] }
  0xde   : > { %v1002_v56 = vrot.slane %v3037_v49, 4  ;;  %v657_v57 = vmul.f32 %v2941_v2, %v2917_v54  ;;  %v615_v59 = vrot.slane %v609_v51, 2  ;;  %v474_v60 = vstv %s3029_s24  ;;  %s2430_s24 = sld [smem:[#allocation8 + $0xa]] }
  0xdf   : > { %v573_v52 = vsel %vm300_vm7, %v570_v61, %v572_v47  ;;  %v957_v53 = vsel %vm373_vm8, %v955_v50, %v956_v48  ;;  %v475_v0 = vmul.f32 %v474_v60, %v3054_v58  ;;  %v3070_v2 = vstv %s2402_s25  ;;  %s2707_s25 = smov 125  }
  0xe0   : > { %v617_v55 = vsel %vm300_vm7, %v615_v59, %v616_v4  ;;  %v1005_v61 = vsel %vm373_vm8, %v1002_v56, %v1004_v44  ;;  %v664_v63 = vrot.slane %v657_v57, 4  ;;  %v503_v4 = vmul.f32 %v3070_v2, %v3054_v58 }
  0xe1   : > { %788 = vrot.lane.b32.xlu1 %v783_v1, %s2706_s28  ;;  %574 = vrot.lane.b32.xlu0 %v571_v3, %s2705_s17  ;;  %v701_v1 = vmul.f32 %v2956_v9, %v2902_v43  ;;  %v749_v3 = vmul.f32 %v2971_v16, %v2917_v54  ;;  %v859_v9 = vmul.f32 %v2985_v22, %v2917_v54  ;;  %v3133_v33 = vstv %s2420_s16  ;;  %s2436_s16 = sld [smem:[#allocation8 + $0x1f]] }
  0xe2   : > { %v665_v62 = vsel %vm373_vm8, %v662_v11, %v664_v63  ;;  %v903_v14 = vmul.f32 %v2997_v27, %v2902_v43  ;;  %v634_v50 = vstv %s2408_s30  ;;  %s2439_s30 = sld [smem:[#allocation8 + $0x57]] }
  0xe3   : > { %v866_v13 = vrot.slane %v859_v9, 2 }
  0xe5   : > { %822 = vrot.lane.b32.xlu1 %v816_v8, %s2706_s28  ;;  %622 = vrot.lane.b32.xlu0 %v619_v10, %s2705_s17  ;;  %v756_v8 = vrot.slane %v749_v3, 6  ;;  %v505_v10 = vmul.f32 %v3070_v2, %v3083_v7  ;;  %v867_v16 = vsel %vm300_vm7, %v864_v31, %v866_v13  ;;  %v3128_v31 = vmul.f32 %v676_v28, %v3083_v7 }
  0xe6   : > { %v836_v13 = vstv %s2418_s4  ;;  %s2441_s4 = sld [smem:[#allocation8 + $0x5e]] }
  0xe7   : > { %v757_v11 = vsel %vm446_vm9, %v754_v24, %v756_v8  ;;  %v995_v24 = vmul.f32 %v3013_v34, %v2902_v43  ;;  %v3137_v34 = vld [vmem:[#allocation2 + $0x8] sm:$0xff]  ;;  %v726_v8 = vstv %s2412_s3  ;;  %s2440_s3 = sld [smem:[#allocation8 + $0x2d]] }
  0xe8   : > { %v476_v36 = vmul.f32 %v474_v60, %v3137_v34  ;;  %v504_v41 = vmul.f32 %v3070_v2, %v3137_v34  ;;  %v635_v60 = vmul.f32 %v634_v50, %v3054_v58  ;;  %v677_v2 = vmul.f32 %v676_v28, %v3054_v58 }
  0xe9   : > { %826 = vrot.lane.b32.xlu1 %v818_v15, %s2706_s28  ;;  %666 = vrot.lane.b32.xlu0 %v663_v17, %s2705_s17  ;;  %v769_v15 = vmul.f32 %v768_v12, %v3054_v58  ;;  %v796_v17 = vstv %s2416_s23  ;;  %v1001_v29 = vrot.slane %v995_v24, 4  ;;  %s2431_s23 = sld [smem:[#allocation8 + $0x3b]] }
  0xea   : > { %v797_v20 = vmul.f32 %v796_v17, %v3054_v58  ;;  %v799_v25 = vmul.f32 %v796_v17, %v3083_v7  ;;  %v798_v57 = vmul.f32 %v796_v17, %v3137_v34 }
  0xeb   : > { %v1003_v32 = vsel %vm373_vm8, %v1001_v29, %v1002_v56 }
  0xed   : > { %624 = vrot.lane.b32.xlu1 %v618_v5, %s2705_s17  ;;  %714 = vrot.lane.b32.xlu0 %v711_v23, %s2705_s17  ;;  %v707_v5 = vrot.slane %v701_v1, 4  ;;  %v584_v23 = vstv %s2406_s29  ;;  %v641_v1 = vrot.slane %v635_v60, 4  ;;  %s2434_s29 = sld [smem:[#allocation8 + $0x18]] }
  0xee   : > { %v3119_v26 = vmul.f32 %v584_v23, %v3083_v7  ;;  %v585_v49 = vmul.f32 %v584_v23, %v3054_v58 }
  0xef   : > { %v709_v6 = vsel %vm373_vm8, %v707_v5, %v708_v18  ;;  %v951_v18 = vmul.f32 %v948_v37, %v2917_v54  ;;  %v3145_v37 = vmul.f32 %v3133_v33, %v3083_v7 }
  0xf0   : > { %v591_v59 = vrot.slane %v585_v49, 2 }
  0xf1   : > { %716 = vrot.lane.b32.xlu1 %v710_v19, %s2705_s17  ;;  %758 = vrot.lane.b32.xlu0 %v755_v30, %s2705_s17  ;;  %v909_v19 = vrot.slane %v903_v14, 2  ;;  %v958_v22 = vrot.slane %v951_v18, 4  ;;  %v594_v30 = vrot.slane %v3119_v26, 2  ;;  %v888_v40 = vrot.slane %v3145_v37, 2 }
  0xf2   : > { %v837_v18 = vmul.f32 %v836_v13, %v3054_v58  ;;  %v879_v26 = vmul.f32 %v3133_v33, %v3054_v58 }
  0xf3   : > { %v911_v21 = vsel %vm300_vm7, %v909_v19, %v910_v39  ;;  %v959_v27 = vsel %vm373_vm8, %v956_v48, %v958_v22  ;;  %v542_v39 = vstv %s2404_s27  ;;  %v770_v48 = vmul.f32 %v768_v12, %v3137_v34  ;;  %s2438_s27 = sld [smem:[#allocation8 + $0x26]] }
  0xf4   : > { %v545_v56 = vmul.f32 %v542_v39, %v3083_v7  ;;  %v838_v19 = vmul.f32 %v836_v13, %v3137_v34  ;;  %v843_v24 = vrot.slane %v837_v18, 2 }
  0xf5   : > { %918 = vrot.lane.b32.xlu1 %v912_v35, %s2706_s28  ;;  %868 = vrot.lane.b32.xlu0 %v865_v38, %s2706_s28  ;;  %v686_v35 = vrot.slane %v3128_v31, 4  ;;  %v3147_v38 = vstv %s2424_s26  ;;  %s2437_s26 = sld [smem:[#allocation8 + $0x50]] }
  0xf6   : > { %v3158_v42 = vmul.f32 %v3147_v38, %v3083_v7  ;;  %v552_v63 = vrot.slane %v545_v56, 2 }
  0xf8   : > { %v980_v47 = vrot.slane %v3158_v42, 4 }
  0xf9   : > { %1010 = vrot.lane.b32.xlu1 %v1004_v44, %s2706_s28  ;;  %916 = vrot.lane.b32.xlu0 %v913_v45, %s2706_s28  ;;  %v543_v44 = vmul.f32 %v542_v39, %v3054_v58  ;;  %v544_v45 = vmul.f32 %v542_v39, %v3137_v34 }
  0xfb   : > { %v549_v51 = vrot.slane %v543_v44, 2 }
  0xfd   : > { %576 = vrot.lane.b32.xlu1 %v573_v52, %s2705_s17  ;;  %960 = vrot.lane.b32.xlu0 %v957_v53, %s2706_s28  ;;  %v550_v52 = vrot.slane %v544_v45, 2  ;;  %v586_v53 = vmul.f32 %v584_v23, %v3137_v34  ;;  %v729_v23 = vmul.f32 %v726_v8, %v3083_v7 }
 0x101   : > { %620 = vrot.lane.b32.xlu1 %v617_v55, %s2705_s17  ;;  %1008 = vrot.lane.b32.xlu0 %v1005_v61, %s2706_s28  ;;  %v551_v55 = vsel %vm300_vm7, %v549_v51, %v550_v52  ;;  %v592_v61 = vrot.slane %v586_v53, 2  ;;  %v972_v51 = vmul.f32 %v3147_v38, %v3137_v34 }
 0x103   : > { %v593_v3 = vsel %vm300_vm7, %v591_v59, %v592_v61  ;;  %v595_v9 = vsel %vm300_vm7, %v592_v61, %v594_v30 }
 0x105   : > { %668 = vrot.lane.b32.xlu1 %v665_v62, %s2705_s17  ;;  %479 = vrot.lane.b32.xlu0 %v475_v0, %s2705_s17  ;;  %v636_v0 = vmul.f32 %v634_v50, %v3137_v34  ;;  %v678_v62 = vmul.f32 %v676_v28, %v3137_v34 }
 0x107   : > { %v642_v5 = vrot.slane %v636_v0, 4 }
 0x109   : > { %712 = vrot.lane.b32.xlu1 %v709_v6, %s2705_s17  ;;  %509 = vrot.lane.b32.xlu0 %v503_v4, %s2705_s17  ;;  %v553_v4 = vsel %vm300_vm7, %v550_v52, %v552_v63  ;;  %v637_v6 = vmul.f32 %v634_v50, %v3083_v7  ;;  %v643_v12 = vsel %vm373_vm8, %v641_v1, %v642_v5  ;;  %v1020_v52 = vstv %s2426_s6  ;;  %s3431_s6 = sld [smem:[#allocation8 + $0x35]] }
 0x10a   : > { %v971_v50 = vmul.f32 %v3147_v38, %v3054_v58  ;;  %v978_v63 = vrot.slane %v972_v51, 4  ;;  %v1021_v38 = vmul.f32 %v1020_v52, %v3054_v58 }
 0x10b   : > { %v644_v14 = vrot.slane %v637_v6, 4 }
 0x10c   : > { %v977_v61 = vrot.slane %v971_v50, 4  ;;  %v1027_v6 = vrot.slane %v1021_v38, 6 }
 0x10d   : > { %760 = vrot.lane.b32.xlu1 %v757_v11, %s2705_s17  ;;  %513 = vrot.lane.b32.xlu0 %v505_v10, %s2705_s17  ;;  %v683_v10 = vrot.slane %v677_v2, 4  ;;  %v684_v11 = vrot.slane %v678_v62, 4  ;;  %v1022_v62 = vmul.f32 %v1020_v52, %v3137_v34 }
 0x10f   : > { %v685_v17 = vsel %vm373_vm8, %v683_v10, %v684_v11  ;;  %v687_v29 = vsel %vm373_vm8, %v684_v11, %v686_v35  ;;  %v1028_v37 = vrot.slane %v1022_v62, 6  ;;  %v1023_v10 = vmul.f32 %v1020_v52, %v3083_v7 }
 0x110   : > { %v1109_v52 = vstv %s2431_s23  ;;  %s2449_s23 = sld [smem:[#allocation8 + $0x4a]] }
 0x111   : > { %870 = vrot.lane.b32.xlu1 %v867_v16, %s2706_s28  ;;  %773 = vrot.lane.b32.xlu0 %v769_v15, %s2706_s28  ;;  %v727_v15 = vmul.f32 %v726_v8, %v3054_v58  ;;  %v728_v16 = vmul.f32 %v726_v8, %v3137_v34  ;;  %v1040_v8 = vstv %s2427_s8  ;;  %s2444_s8 = sld [smem:[#allocation8 + $0xb]] }
 0x112   : > { %v1041_v11 = vmul.f32 %v1040_v8, %v2902_v43  ;;  %v1043_v18 = vmul.f32 %v1040_v8, %v2917_v54 }
 0x113   : > { %v734_v22 = vrot.slane %v728_v16, 6 }
 0x115   : > { %914 = vrot.lane.b32.xlu1 %v911_v21, %s2706_s28  ;;  %803 = vrot.lane.b32.xlu0 %v797_v20, %s2706_s28  ;;  %v645_v20 = vsel %vm373_vm8, %v642_v5, %v644_v14  ;;  %v733_v21 = vrot.slane %v727_v15, 6  ;;  %v979_v5 = vsel %vm373_vm8, %v977_v61, %v978_v63  ;;  %v981_v14 = vsel %vm373_vm8, %v978_v63, %v980_v47 }
 0x116   : > { %v1029_v15 = vsel %vm446_vm9, %v1027_v6, %v1028_v37  ;;  %v1111_v61 = vmul.f32 %v1109_v52, %v2906_v46  ;;  %v1110_v63 = vmul.f32 %v1109_v52, %v2902_v43 }
 0x117   : > { %v735_v28 = vsel %vm446_vm9, %v733_v21, %v734_v22 }
 0x119   : > { %962 = vrot.lane.b32.xlu1 %v959_v27, %s2706_s28  ;;  %807 = vrot.lane.b32.xlu0 %v799_v25, %s2706_s28  ;;  %v844_v25 = vrot.slane %v838_v19, 2  ;;  %v880_v27 = vmul.f32 %v3133_v33, %v3137_v34  ;;  %v1047_v19 = vrot.slane %v1041_v11, 6 }
 0x11b   : > { %v845_v39 = vsel %vm300_vm7, %v843_v24, %v844_v25  ;;  %v886_v44 = vrot.slane %v880_v27, 2 }
 0x11d   : > { %1006 = vrot.lane.b32.xlu1 %v1003_v32, %s2706_s28  ;;  %600 = vrot.lane.b32.xlu0 %v594_v30, %s2705_s17  ;;  %v736_v30 = vrot.slane %v729_v23, 6  ;;  %v839_v32 = vmul.f32 %v836_v13, %v3083_v7  ;;  %v889_v1 = vsel %vm300_vm7, %v886_v44, %v888_v40  ;;  %v1050_v23 = vrot.slane %v1043_v18, 6 }
 0x11f   : > { %v737_v33 = vsel %vm446_vm9, %v734_v22, %v736_v30  ;;  %v846_v45 = vrot.slane %v839_v32, 2 }
 0x121   : > { %692 = vrot.lane.b32.xlu0 %v686_v35, %s2705_s17  ;;  %481 = vrot.lane.b32.xlu1 %v476_v36, %s2705_s17  ;;  %v928_v36 = vstv %s2422_s5  ;;  %v847_v53 = vsel %vm300_vm7, %v844_v25, %v846_v45  ;;  %s3420_s5 = sld [smem:[#allocation8 + $0x4]] }
 0x122   : > { %v930_v31 = vmul.f32 %v928_v36, %v3137_v34  ;;  %v931_v59 = vmul.f32 %v928_v36, %v3083_v7 }
 0x124   : > { %v938_v2 = vrot.slane %v931_v59, 4 }
 0x125   : > { %894 = vrot.lane.b32.xlu0 %v888_v40, %s2706_s28  ;;  %511 = vrot.lane.b32.xlu1 %v504_v41, %s2705_s17  ;;  %v885_v41 = vrot.slane %v879_v26, 2  ;;  %v1042_v40 = vmul.f32 %v1040_v8, %v2906_v46 }
 0x127   : > { %v887_v49 = vsel %vm300_vm7, %v885_v41, %v886_v44  ;;  %v1048_v16 = vrot.slane %v1042_v40, 6 }
 0x129   : > { %986 = vrot.lane.b32.xlu0 %v980_v47, %s2706_s28  ;;  %775 = vrot.lane.b32.xlu1 %v770_v48, %s2706_s28  ;;  %v929_v48 = vmul.f32 %v928_v36, %v3054_v58  ;;  %v1049_v42 = vsel %vm446_vm9, %v1047_v19, %v1048_v16  ;;  %v1051_v27 = vsel %vm446_vm9, %v1048_v16, %v1050_v23 }
 0x12b   : > { %v935_v56 = vrot.slane %v929_v48, 4  ;;  %v1130_v48 = vstv %s2432_s20  ;;  %s2448_s20 = sld [smem:[#allocation8 + $0x19]] }
 0x12d   : > { %554 = vrot.lane.b32.xlu0 %v551_v55, %s2705_s17  ;;  %805 = vrot.lane.b32.xlu1 %v798_v57, %s2706_s28  ;;  %v936_v57 = vrot.slane %v930_v31, 4 }
 0x12f   : > { %v937_v0 = vsel %vm373_vm8, %v935_v56, %v936_v57  ;;  %v1132_v56 = vmul.f32 %v1130_v48, %v3137_v34 }
 0x131   : > { %596 = vrot.lane.b32.xlu0 %v593_v3, %s2705_s17  ;;  %556 = vrot.lane.b32.xlu1 %v553_v4, %s2705_s17 }
 0x135   : > { %646 = vrot.lane.b32.xlu0 %v643_v12, %s2705_s17  ;;  %598 = vrot.lane.b32.xlu1 %v595_v9, %s2705_s17  ;;  %v939_v9 = vsel %vm373_vm8, %v936_v57, %v938_v2  ;;  %v1138_v2 = vrot.slane %v1132_v56, 2 }
 0x139   : > { %688 = vrot.lane.b32.xlu0 %v685_v17, %s2705_s17  ;;  %648 = vrot.lane.b32.xlu1 %v645_v20, %s2705_s17  ;;  %v1030_v17 = vrot.slane %v1023_v10, 6 }
 0x13b   : > { %v1031_v47 = vsel %vm446_vm9, %v1028_v37, %v1030_v17  ;;  %v1112_v37 = vmul.f32 %v1109_v52, %v2917_v54  ;;  %v1222_v52 = vstv %s2436_s16  ;;  %s2453_s16 = sld [smem:[#allocation8 + $0x58]] }
 0x13d   : > { %738 = vrot.lane.b32.xlu0 %v735_v28, %s2705_s17  ;;  %690 = vrot.lane.b32.xlu1 %v687_v29, %s2705_s17  ;;  %v1075_v28 = vstv %s3263_s19  ;;  %s2446_s19 = sld [smem:[#allocation8 + $0x12]] }
 0x13e   : > { %v1076_v32 = vmul.f32 %v1075_v28, %v2902_v43  ;;  %v1077_v45 = vmul.f32 %v1075_v28, %v2906_v46  ;;  %v1196_v28 = vstv %s2435_s7  ;;  %s2452_s7 = sld [smem:[#allocation8 + $0x27]] }
 0x141   : > { %848 = vrot.lane.b32.xlu0 %v845_v39, %s2706_s28  ;;  %740 = vrot.lane.b32.xlu1 %v737_v33, %s2705_s17  ;;  %s3249_s17 = sld [smem:[#allocation8 + $0x3]]  ;;  %v1090_v39 = vstv %s2430_s24  ;;  %s2445_s24 = sld [smem:[#allocation8 + $0x3c]] }
 0x142   : > { %v1091_v33 = vmul.f32 %v1090_v39, %v3054_v58  ;;  %v1093_v50 = vmul.f32 %v1090_v39, %v3083_v7  ;;  %v1092_v51 = vmul.f32 %v1090_v39, %v3137_v34  ;;  %v1198_v39 = vmul.f32 %v1196_v28, %v2906_v46 }
 0x143   : > { %v3218_v35 = vpop.permute.xlu0 %492 }
 0x145   : > { %890 = vrot.lane.b32.xlu0 %v887_v49, %s2706_s28  ;;  %850 = vrot.lane.b32.xlu1 %v847_v53, %s2706_s28  ;;  %v1131_v53 = vmul.f32 %v1130_v48, %v3054_v58 }
 0x147   : > { %v3229_v60 = vpop.permute.xlu1 %494  ;;  %v3231_v55 = vpop.permute.xlu0 %530  ;;  %v1062_v22 = vstv %s3249_s17  ;;  %s2708_s17 = smov 124  }
 0x148   : > { %v1063_v26 = vmul.f32 %v1062_v22, %v3054_v58  ;;  %v1064_v36 = vmul.f32 %v1062_v22, %v3137_v34 }
 0x149   : > { %940 = vrot.lane.b32.xlu0 %v937_v0, %s2706_s28  ;;  %892 = vrot.lane.b32.xlu1 %v889_v1, %s2706_s28  ;;  %v1172_v0 = vstv %s2434_s29  ;;  %v1137_v1 = vrot.slane %v1131_v53, 2  ;;  %s2451_s29 = sld [smem:[#allocation8 + $0x51]] }
 0x14a   : > { %v1173_v40 = vmul.f32 %v1172_v0, %v3054_v58  ;;  %v1174_v10 = vmul.f32 %v1172_v0, %v3137_v34 }
 0x14b   : > { %v3241_v3 = vpop.permute.xlu1 %528  ;;  %v3243_v4 = vpop.permute.xlu0 %786  ;;  %v1139_v11 = vsel %vm300_vm7, %v1137_v1, %v1138_v2  ;;  %v1224_v1 = vmul.f32 %v1222_v52, %v3137_v34 }
 0x14c   : > { %4542 = vst [vmem:[#allocation13_spill] sm:$0xff] %v3243_v4 }
 0x14d   : > { %982 = vrot.lane.b32.xlu0 %v979_v5, %s2706_s28  ;;  %942 = vrot.lane.b32.xlu1 %v939_v9, %s2706_s28  ;;  %v1133_v5 = vmul.f32 %v1130_v48, %v3083_v7 }
 0x14f   : > { %v3254_v13 = vpop.permute.xlu1 %532  ;;  %v3256_v12 = vpop.permute.xlu0 %824 }
 0x151   : > { %1032 = vrot.lane.b32.xlu0 %v1029_v15, %s2706_s28  ;;  %984 = vrot.lane.b32.xlu1 %v981_v14, %s2706_s28  ;;  %v1140_v15 = vrot.slane %v1133_v5, 2 }
 0x153   : > { %v3267_v20 = vpop.permute.xlu1 %788  ;;  %v3269_v21 = vpop.permute.xlu0 %574  ;;  %v1141_v23 = vsel %vm300_vm7, %v1138_v2, %v1140_v15 }
 0x154   : > { %4543 = vst [vmem:[#allocation14_spill] sm:$0xff] %v3267_v20 }
 0x155   : > { %1052 = vrot.lane.b32.xlu0 %v1049_v42, %s2706_s28  ;;  %1034 = vrot.lane.b32.xlu1 %v1031_v47, %s2706_s28  ;;  %v1179_v42 = vrot.slane %v1173_v40, 2  ;;  %v1180_v47 = vrot.slane %v1174_v10, 2  ;;  %v1242_v40 = vstv %s2437_s26  ;;  %v1264_v10 = vstv %s2438_s27  ;;  %s2454_s26 = sld [smem:[#allocation8 + $0x2e]]  ;;  %s3566_s27 = sld [smem:[#allocation8 + $0x3f]] }
 0x156   : > { %v1244_v15 = vmul.f32 %v1242_v40, %v2906_v46 }
 0x157   : > { %v3276_v24 = vpop.permute.xlu1 %822  ;;  %v3278_v25 = vpop.permute.xlu0 %622 }
 0x158   : > { %4544 = vst [vmem:[#allocation15_spill] sm:$0xff] %v3276_v24 }
 0x159   : > { %1067 = vrot.lane.b32.xlu0 %v1063_v26, %s2707_s25  ;;  %1054 = vrot.lane.b32.xlu1 %v1051_v27, %s2706_s28  ;;  %s2433_s28 = sld [smem:[#allocation8 + $0x42]]  ;;  %v1175_v27 = vmul.f32 %v1172_v0, %v3083_v7  ;;  %v1223_v0 = vmul.f32 %v1222_v52, %v3054_v58 }
 0x15b   : > { %v3285_v29 = vpop.permute.xlu1 %826  ;;  %v3287_v30 = vpop.permute.xlu0 %666 }
 0x15c   : > { %4545 = vst [vmem:[#allocation16_spill] sm:$0xff] %v3285_v29 }
 0x15d   : > { %1080 = vrot.lane.b32.xlu0 %v1076_v32, %s2707_s25  ;;  %1069 = vrot.lane.b32.xlu1 %v1064_v36, %s2707_s25 }
 0x15f   : > { %v3293_v41 = vpop.permute.xlu1 %624  ;;  %v3295_v44 = vpop.permute.xlu0 %714  ;;  %v1150_v38 = vstv %s2433_s28  ;;  %s2450_s28 = sld [smem:[#allocation8 + $0x20]] }
 0x160   : > { %v1152_v62 = vmul.f32 %v1150_v38, %v2906_v46  ;;  %v1151_v6 = vmul.f32 %v1150_v38, %v2902_v43  ;;  %v1153_v16 = vmul.f32 %v1150_v38, %v2917_v54 }
 0x161   : > { %1097 = vrot.lane.b32.xlu0 %v1091_v33, %s2707_s25  ;;  %1082 = vrot.lane.b32.xlu1 %v1077_v45, %s2707_s25  ;;  %v1199_v33 = vmul.f32 %v1196_v28, %v2917_v54  ;;  %v1181_v45 = vsel %vm300_vm7, %v1179_v42, %v1180_v47 }
 0x162   : > { %v1158_v14 = vrot.slane %v1152_v62, 2  ;;  %v1157_v17 = vrot.slane %v1151_v6, 2  ;;  %v1160_v26 = vrot.slane %v1153_v16, 2  ;;  %v1225_v16 = vmul.f32 %v1222_v52, %v3083_v7 }
 0x163   : > { %v3301_v31 = vpop.permute.xlu1 %716  ;;  %v3303_v49 = vpop.permute.xlu0 %758 }
 0x164   : > { %v1159_v22 = vsel %vm300_vm7, %v1157_v17, %v1158_v14  ;;  %v1161_v48 = vsel %vm300_vm7, %v1158_v14, %v1160_v26  ;;  %v1230_v14 = vrot.slane %v1224_v1, 4  ;;  %v1243_v17 = vmul.f32 %v1242_v40, %v2902_v43 }
 0x165   : > { %1101 = vrot.lane.b32.xlu0 %v1093_v50, %s2707_s25  ;;  %1099 = vrot.lane.b32.xlu1 %v1092_v51, %s2707_s25  ;;  %v1182_v50 = vrot.slane %v1175_v27, 2  ;;  %v1197_v51 = vmul.f32 %v1196_v28, %v2902_v43  ;;  %v1250_v27 = vrot.slane %v1244_v15, 4  ;;  %v1232_v28 = vrot.slane %v1225_v16, 4 }
 0x166   : > { %v1314_v15 = vstv %s2440_s3  ;;  %s3581_s3 = sld [smem:[#allocation8 + $0x31]] }
 0x167   : > { %v3311_v57 = vpop.permute.xlu1 %918  ;;  %v3313_v59 = vpop.permute.xlu0 %868  ;;  %v1183_v38 = vsel %vm300_vm7, %v1180_v47, %v1182_v50  ;;  %v1203_v2 = vrot.slane %v1197_v51, 2 }
 0x168   : > { %4546 = vst [vmem:[#allocation17_spill] sm:$0xff] %v3311_v57  ;;  %4547 = vst [vmem:[#allocation18_spill] sm:$0xff] %v3313_v59 }
 0x169   : > { %1118 = vrot.lane.b32.xlu0 %v1111_v61, %s2707_s25  ;;  %1116 = vrot.lane.b32.xlu1 %v1110_v63, %s2707_s25  ;;  %v1204_v61 = vrot.slane %v1198_v39, 2  ;;  %v1206_v63 = vrot.slane %v1199_v33, 2  ;;  %v1245_v39 = vmul.f32 %v1242_v40, %v2917_v54  ;;  %v1249_v33 = vrot.slane %v1243_v17, 4 }
 0x16b   : > { %v3322_v8 = vpop.permute.xlu1 %1010  ;;  %v3324_v9 = vpop.permute.xlu0 %916  ;;  %v1207_v6 = vsel %vm300_vm7, %v1204_v61, %v1206_v63  ;;  %v1251_v52 = vsel %vm373_vm8, %v1249_v33, %v1250_v27 }
 0x16c   : > { %4548 = vst [vmem:[#allocation19_spill] sm:$0xff] %v3322_v8  ;;  %4549 = vst [vmem:[#allocation20_spill] sm:$0xff] %v3324_v9 }
 0x16d   : > { %1142 = vrot.lane.b32.xlu0 %v1139_v11, %s2707_s25  ;;  %1120 = vrot.lane.b32.xlu1 %v1112_v37, %s2707_s25  ;;  %v1205_v37 = vsel %vm300_vm7, %v1203_v2, %v1204_v61  ;;  %v1229_v11 = vrot.slane %v1223_v0, 4  ;;  %v1233_v61 = vsel %vm373_vm8, %v1230_v14, %v1232_v28  ;;  %v1267_v0 = vmul.f32 %v1264_v10, %v3083_v7 }
 0x16e   : > { %v1315_v28 = vmul.f32 %v1314_v15, %v3054_v58 }
 0x16f   : > { %v3333_v18 = vpop.permute.xlu1 %576  ;;  %v3335_v19 = vpop.permute.xlu0 %960  ;;  %v1231_v26 = vsel %vm373_vm8, %v1229_v11, %v1230_v14  ;;  %v1274_v14 = vrot.slane %v1267_v0, 4 }
 0x170   : > { %4550 = vst [vmem:[#allocation21_spill] sm:$0xff] %v3333_v18  ;;  %4551 = vst [vmem:[#allocation22_spill] sm:$0xff] %v3335_v19  ;;  %v1321_v0 = vrot.slane %v1315_v28, 6 }
 0x171   : > { %1162 = vrot.lane.b32.xlu0 %v1159_v22, %s2707_s25  ;;  %1144 = vrot.lane.b32.xlu1 %v1141_v23, %s2707_s25  ;;  %v1265_v22 = vmul.f32 %v1264_v10, %v3054_v58  ;;  %v1266_v23 = vmul.f32 %v1264_v10, %v3137_v34 }
 0x173   : > { %v3342_v32 = vpop.permute.xlu1 %620  ;;  %v3344_v36 = vpop.permute.xlu0 %1008  ;;  %v1272_v51 = vrot.slane %v1266_v23, 4 }
 0x174   : > { %4552 = vst [vmem:[#allocation23_spill] sm:$0xff] %v3342_v32  ;;  %4553 = vst [vmem:[#allocation24_spill] sm:$0xff] %v3344_v36 }
 0x175   : > { %1184 = vrot.lane.b32.xlu0 %v1181_v45, %s2707_s25  ;;  %1164 = vrot.lane.b32.xlu1 %v1161_v48, %s2707_s25 }
 0x177   : > { %v3353_v53 = vpop.permute.xlu1 %668  ;;  %v3355_v56 = vpop.permute.xlu0 %479 }
 0x178   : > { %4554 = vst [vmem:[#allocation25_spill] sm:$0xff] %v3353_v53 }
 0x179   : > { %1188 = vrot.lane.b32.xlu0 %v1182_v50, %s2707_s25  ;;  %1186 = vrot.lane.b32.xlu1 %v1183_v38, %s2707_s25  ;;  %v1271_v50 = vrot.slane %v1265_v22, 4  ;;  %v1252_v38 = vrot.slane %v1245_v39, 4 }
 0x17b   : > { %v3362_v62 = vpop.permute.xlu1 %712  ;;  %v3364_v5 = vpop.permute.xlu0 %509  ;;  %v1273_v40 = vsel %vm373_vm8, %v1271_v50, %v1272_v51  ;;  %v1253_v11 = vsel %vm373_vm8, %v1250_v27, %v1252_v38  ;;  %v1316_v27 = vmul.f32 %v1314_v15, %v3137_v34  ;;  %v1334_v38 = vstv %s2441_s4  ;;  %s3583_s4 = sld [smem:[#allocation8 + $0x4d]] }
 0x17c   : > { %4555 = vst [vmem:[#allocation26_spill] sm:$0xff] %v3362_v62 }
 0x17d   : > { %1210 = vrot.lane.b32.xlu0 %v1207_v6, %s2707_s25  ;;  %1208 = vrot.lane.b32.xlu1 %v1205_v37, %s2707_s25 }
 0x17f   : > { %v3373_v42 = vpop.permute.xlu1 %760  ;;  %v3375_v47 = vpop.permute.xlu0 %513 }
 0x180   : > { %4556 = vst [vmem:[#allocation27_spill] sm:$0xff] %v3373_v42 }
 0x181   : > { %1234 = vrot.lane.b32.xlu0 %v1231_v26, %s2707_s25  ;;  %1212 = vrot.lane.b32.xlu1 %v1206_v63, %s2707_s25  ;;  %v1288_v63 = vstv %s2439_s30  ;;  %v1275_v26 = vsel %vm373_vm8, %v1272_v51, %v1274_v14  ;;  %v1322_v51 = vrot.slane %v1316_v27, 6  ;;  %s3573_s30 = sld [smem:[#allocation8 + $0x5f]] }
 0x182   : > { %v1290_v6 = vmul.f32 %v1288_v63, %v2906_v46  ;;  %v1291_v37 = vmul.f32 %v1288_v63, %v2917_v54  ;;  %v1289_v10 = vmul.f32 %v1288_v63, %v2902_v43  ;;  %v1317_v63 = vmul.f32 %v1314_v15, %v3083_v7 }
 0x183   : > { %v3383_v45 = vpop.permute.xlu1 %870  ;;  %v3385_v48 = vpop.permute.xlu0 %773  ;;  %v1337_v15 = vmul.f32 %v1334_v38, %v2917_v54 }
 0x184   : > { %4557 = vst [vmem:[#allocation28_spill] sm:$0xff] %v3383_v45  ;;  %4558 = vst [vmem:[#allocation29_spill] sm:$0xff] %v3385_v48  ;;  %v1296_v22 = vrot.slane %v1290_v6, 4  ;;  %v1298_v23 = vrot.slane %v1291_v37, 4  ;;  %v1295_v39 = vrot.slane %v1289_v10, 4  ;;  %v1336_v6 = vmul.f32 %v1334_v38, %v2906_v46 }
 0x185   : > { %1254 = vrot.lane.b32.xlu0 %v1251_v52, %s2707_s25  ;;  %1236 = vrot.lane.b32.xlu1 %v1233_v61, %s2707_s25  ;;  %v1335_v37 = vmul.f32 %v1334_v38, %v2902_v43  ;;  %v1324_v10 = vrot.slane %v1317_v63, 6 }
 0x186   : > { %v1299_v52 = vsel %vm373_vm8, %v1296_v22, %v1298_v23  ;;  %v1297_v61 = vsel %vm373_vm8, %v1295_v39, %v1296_v22  ;;  %v1342_v22 = vrot.slane %v1336_v6, 6  ;;  %v1344_v39 = vrot.slane %v1337_v15, 6 }
 0x187   : > { %v3392_v1 = vpop.permute.xlu1 %914  ;;  %v3394_v2 = vpop.permute.xlu0 %803  ;;  %v1341_v46 = vrot.slane %v1335_v37, 6  ;;  %v1325_v28 = vsel %vm446_vm9, %v1322_v51, %v1324_v10  ;;  %v3458_v37 = vld [vmem:[#allocation3] sm:$0xff]  ;;  %v1384_v10 = vstv %s2444_s8  ;;  %s3598_s8 = sld [smem:[#allocation8 + $0x46]] }
 0x188   : > { %4559 = vst [vmem:[#allocation30_spill] sm:$0xff] %v3392_v1  ;;  %4560 = vst [vmem:[#allocation31_spill] sm:$0xff] %v3394_v2  ;;  %v1345_v38 = vsel %vm446_vm9, %v1342_v22, %v1344_v39  ;;  %v1424_v39 = vstv %s2446_s19  ;;  %s3600_s19 = sld [smem:[#allocation8 + $0x54]] }
 0x189   : > { %1276 = vrot.lane.b32.xlu0 %v1273_v40, %s2707_s25  ;;  %1256 = vrot.lane.b32.xlu1 %v1253_v11, %s2707_s25  ;;  %v1343_v27 = vsel %vm446_vm9, %v1341_v46, %v1342_v22  ;;  %v3467_v46 = vld [vmem:[#allocation3 + $0x8] sm:$0xff]  ;;  %v1427_v45 = vmul.f32 %v1424_v39, %v3083_v7 }
 0x18b   : > { %v3403_v16 = vpop.permute.xlu1 %962  ;;  %v3405_v17 = vpop.permute.xlu0 %807 }
 0x18c   : > { %4561 = vst [vmem:[#allocation32_spill] sm:$0xff] %v3403_v16  ;;  %4562 = vst [vmem:[#allocation33_spill] sm:$0xff] %v3405_v17  ;;  %v1426_v16 = vmul.f32 %v1424_v39, %v3137_v34 }
 0x18d   : > { %1280 = vrot.lane.b32.xlu0 %v1274_v14, %s2707_s25  ;;  %1278 = vrot.lane.b32.xlu1 %v1275_v26, %s2707_s25  ;;  %v1323_v14 = vsel %vm446_vm9, %v1321_v0, %v1322_v51  ;;  %v1369_v0 = vstv %s3431_s6  ;;  %s3591_s6 = sld [smem:[#allocation8 + $0x38]] }
 0x18e   : > { %v1432_v19 = vrot.slane %v1426_v16, 2 }
 0x18f   : > { %v3412_v33 = vpop.permute.xlu1 %1006  ;;  %v3414_v50 = vpop.permute.xlu0 %600 }
 0x190   : > { %4563 = vst [vmem:[#allocation34_spill] sm:$0xff] %v3412_v33  ;;  %4564 = vst [vmem:[#allocation35_spill] sm:$0xff] %v3414_v50 }
 0x191   : > { %1302 = vrot.lane.b32.xlu0 %v1299_v52, %s2707_s25  ;;  %1300 = vrot.lane.b32.xlu1 %v1297_v61, %s2707_s25  ;;  %v1356_v52 = vstv %s3420_s5  ;;  %s3585_s5 = sld [smem:[#allocation8 + $0x5b]] }
 0x192   : > { %v1357_v61 = vmul.f32 %v1356_v52, %v3054_v58  ;;  %v1358_v6 = vmul.f32 %v1356_v52, %v3137_v34 }
 0x193   : > { %v3425_v40 = vpop.permute.xlu1 %481  ;;  %v3427_v11 = vpop.permute.xlu0 %692  ;;  %v3653_v62 = vstv %s3591_s6  ;;  %s3724_s6 = sld [smem:[#allocation8 + $0x13]] }
 0x194   : > { %4565 = vst [vmem:[#allocation36_spill] sm:$0xff] %v3425_v40  ;;  %4566 = vst [vmem:[#allocation37_spill] sm:$0xff] %v3427_v11 }
 0x195   : > { %1304 = vrot.lane.b32.xlu1 %v1298_v23, %s2707_s25  ;;  %1326 = vrot.lane.b32.xlu0 %v1323_v14, %s2707_s25  ;;  %v1370_v14 = vmul.f32 %v3458_v37, %v1369_v0 }
 0x197   : > { %v3435_v43 = vpop.permute.xlu1 %511  ;;  %v3437_v26 = vpop.permute.xlu0 %894 }
 0x198   : > { %4567 = vst [vmem:[#allocation38_spill] sm:$0xff] %v3435_v43  ;;  %4568 = vst [vmem:[#allocation39_spill] sm:$0xff] %v3437_v26 }
 0x199   : > { %1328 = vrot.lane.b32.xlu1 %v1325_v28, %s2707_s25  ;;  %1346 = vrot.lane.b32.xlu0 %v1343_v27, %s2707_s25  ;;  %v1371_v28 = vmul.f32 %v3467_v46, %v1369_v0  ;;  %v1385_v27 = vmul.f32 %v1384_v10, %v3054_v58  ;;  %v1425_v0 = vmul.f32 %v1424_v39, %v3054_v58 }
 0x19b   : > { %v3444_v54 = vpop.permute.xlu1 %775  ;;  %v3446_v23 = vpop.permute.xlu0 %986  ;;  %v1431_v1 = vrot.slane %v1425_v0, 2  ;;  %v1434_v0 = vrot.slane %v1427_v45, 2 }
 0x19c   : > { %4569 = vst [vmem:[#allocation40_spill] sm:$0xff] %v3444_v54  ;;  %4570 = vst [vmem:[#allocation41_spill] sm:$0xff] %v3446_v23  ;;  %v3498_v54 = vld [vmem:[#allocation3 + $0x10] sm:$0x3f] }
 0x19d   : > { %1348 = vrot.lane.b32.xlu1 %v1345_v38, %s2707_s25  ;;  %1361 = vrot.lane.b32.xlu0 %v1357_v61, %s2708_s17  ;;  %s2447_s25 = sld [smem:[#allocation8 + $0x43]]  ;;  %v1386_v38 = vmul.f32 %v1384_v10, %v3137_v34  ;;  %v1433_v24 = vsel %vm300_vm7, %v1431_v1, %v1432_v19  ;;  %v1435_v45 = vsel %vm300_vm7, %v1432_v19, %v1434_v0 }
 0x19f   : > { %v3453_v51 = vpop.permute.xlu1 %805  ;;  %v3455_v63 = vpop.permute.xlu0 %554 }
 0x1a0   : > { %4571 = vst [vmem:[#allocation42_spill] sm:$0xff] %v3453_v51  ;;  %4572 = vst [vmem:[#allocation43_spill] sm:$0xff] %v3455_v63 }
 0x1a1   : > { %1363 = vrot.lane.b32.xlu1 %v1358_v6, %s2708_s17  ;;  %1374 = vrot.lane.b32.xlu0 %v1370_v14, %s2708_s17  ;;  %v1387_v6 = vmul.f32 %v1384_v10, %v3083_v7  ;;  %v1403_v14 = vstv %s2445_s24  ;;  %s3604_s24 = sld [smem:[#allocation8 + $0xe]] }
 0x1a2   : > { %v1404_v36 = vmul.f32 %v3458_v37, %v1403_v14  ;;  %v1405_v33 = vmul.f32 %v3467_v46, %v1403_v14  ;;  %v1406_v39 = vmul.f32 %v3498_v54, %v1403_v14 }
 0x1a3   : > { %v3463_v22 = vpop.permute.xlu1 %556  ;;  %v3465_v15 = vpop.permute.xlu0 %596  ;;  %v1444_v10 = vstv %s2447_s25  ;;  %s3606_s25 = sld [smem:[#allocation8 + $0x15]] }
 0x1a4   : > { %4573 = vst [vmem:[#allocation44_spill] sm:$0xff] %v3463_v22  ;;  %v1446_v9 = vmul.f32 %v3467_v46, %v1444_v10  ;;  %v1447_v16 = vmul.f32 %v3498_v54, %v1444_v10 }
 0x1a5   : > { %1376 = vrot.lane.b32.xlu1 %v1371_v28, %s2708_s17  ;;  %1391 = vrot.lane.b32.xlu0 %v1385_v27, %s2708_s17 }
 0x1a6   : > { %v1454_v14 = vrot.slane %v1447_v16, 2  ;;  %v1516_v16 = vstv %s2450_s28  ;;  %s3626_s28 = sld [smem:[#allocation8 + $0x5]] }
 0x1a7   : > { %v3473_v52 = vpop.permute.xlu1 %598  ;;  %v3475_v61 = vpop.permute.xlu0 %646 }
 0x1a8   : > { %4574 = vst [vmem:[#allocation45_spill] sm:$0xff] %v3473_v52  ;;  %4575 = vst [vmem:[#allocation46_spill] sm:$0xff] %v3475_v61 }
 0x1a9   : > { %1393 = vrot.lane.b32.xlu1 %v1386_v38, %s2708_s17  ;;  %1395 = vrot.lane.b32.xlu0 %v1387_v6, %s2708_s17  ;;  %v1466_v38 = vstv %s2448_s20  ;;  %v1445_v6 = vmul.f32 %v3458_v37, %v1444_v10  ;;  %s3609_s20 = sld [smem:[#allocation8 + $0x1c]] }
 0x1aa   : > { %v1468_v26 = vmul.f32 %v1466_v38, %v3137_v34  ;;  %v1469_v48 = vmul.f32 %v1466_v38, %v3083_v7 }
 0x1ab   : > { %v3483_v28 = vpop.permute.xlu1 %648  ;;  %v3485_v27 = vpop.permute.xlu0 %688  ;;  %v1451_v20 = vrot.slane %v1445_v6, 2 }
 0x1ac   : > { %4576 = vst [vmem:[#allocation47_spill] sm:$0xff] %v3483_v28  ;;  %4577 = vst [vmem:[#allocation48_spill] sm:$0xff] %v3485_v27  ;;  %v1474_v10 = vrot.slane %v1468_v26, 2  ;;  %v1476_v0 = vrot.slane %v1469_v48, 2  ;;  %v1517_v48 = vmul.f32 %v1516_v16, %v3054_v58  ;;  %v1650_v28 = vstv %s3626_s28  ;;  %s4020_s28 = sld [smem:[#allocation8 + $0xd]] }
 0x1ad   : > { %1410 = vrot.lane.b32.xlu1 %v1404_v36, %s2708_s17  ;;  %1412 = vrot.lane.b32.xlu0 %v1405_v33, %s2708_s17  ;;  %v1452_v36 = vrot.slane %v1446_v9, 2  ;;  %v1467_v33 = vmul.f32 %v1466_v38, %v3054_v58 }
 0x1af   : > { %v3494_v23 = vpop.permute.xlu1 %690  ;;  %v3496_v8 = vpop.permute.xlu0 %738  ;;  %v1453_v1 = vsel %vm300_vm7, %v1451_v20, %v1452_v36  ;;  %v1473_v9 = vrot.slane %v1467_v33, 2  ;;  %v1455_v19 = vsel %vm300_vm7, %v1452_v36, %v1454_v14  ;;  %v1477_v36 = vsel %vm300_vm7, %v1474_v10, %v1476_v0 }
 0x1b0   : > { %4578 = vst [vmem:[#allocation49_spill] sm:$0xff] %v3494_v23  ;;  %4579 = vst [vmem:[#allocation50_spill] sm:$0xff] %v3496_v8 }
 0x1b1   : > { %1414 = vrot.lane.b32.xlu1 %v1406_v39, %s2708_s17  ;;  %1436 = vrot.lane.b32.xlu0 %v1433_v24, %s2708_s17  ;;  %v1490_v24 = vstv %s2449_s23  ;;  %v1475_v20 = vsel %vm300_vm7, %v1473_v9, %v1474_v10  ;;  %v1518_v9 = vmul.f32 %v1516_v16, %v3137_v34  ;;  %s3620_s23 = sld [smem:[#allocation8 + $0x36]] }
 0x1b2   : > { %v1493_v26 = vmul.f32 %v3498_v54, %v1490_v24  ;;  %v1491_v38 = vmul.f32 %v3458_v37, %v1490_v24 }
 0x1b3   : > { %v3507_v51 = vpop.permute.xlu1 %740  ;;  %v3509_v59 = vpop.permute.xlu0 %848 }
 0x1b4   : > { %4580 = vst [vmem:[#allocation51_spill] sm:$0xff] %v3507_v51  ;;  %4581 = vst [vmem:[#allocation52_spill] sm:$0xff] %v3509_v59  ;;  %v1492_v59 = vmul.f32 %v3467_v46, %v1490_v24  ;;  %v1500_v14 = vrot.slane %v1493_v26, 2  ;;  %v1536_v24 = vstv %s2451_s29  ;;  %v1523_v26 = vrot.slane %v1517_v48, 4  ;;  %s3628_s29 = sld [smem:[#allocation8]] }
 0x1b5   : > { %1438 = vrot.lane.b32.xlu1 %v1435_v45, %s2708_s17  ;;  %1456 = vrot.lane.b32.xlu0 %v1453_v1, %s2708_s17  ;;  %v1519_v51 = vmul.f32 %v1516_v16, %v3083_v7 }
 0x1b6   : > { %v1498_v1 = vrot.slane %v1492_v59, 2  ;;  %v1538_v59 = vmul.f32 %v3467_v46, %v1536_v24 }
 0x1b7   : > { %v3516_v6 = vpop.permute.xlu1 %850  ;;  %v3518_v39 = vpop.permute.xlu0 %890  ;;  %v1526_v48 = vrot.slane %v1519_v51, 4  ;;  %v4612_v61 = vstv %s3620_s23 }
 0x1b8   : > { %4582 = vst [vmem:[#allocation53_spill] sm:$0xff] %v3516_v6  ;;  %4583 = vst [vmem:[#allocation54_spill] sm:$0xff] %v3518_v39  ;;  %v1501_v10 = vsel %vm300_vm7, %v1498_v1, %v1500_v14  ;;  %v3661_v39 = vstv %s3600_s19  ;;  %v1665_v40 = vmul.f32 %v3467_v46, %v4612_v61  ;;  %s3926_s19 = sld [smem:[#allocation8 + $0x52]] }
 0x1b9   : > { %1458 = vrot.lane.b32.xlu1 %v1455_v19, %s2708_s17  ;;  %1478 = vrot.lane.b32.xlu0 %v1475_v20, %s2708_s17  ;;  %v1497_v19 = vrot.slane %v1491_v38, 2  ;;  %v1558_v38 = vstv %s2452_s7  ;;  %s3633_s7 = sld [smem:[#allocation8 + $0x23]] }
 0x1ba   : > { %v1559_v16 = vmul.f32 %v1558_v38, %v3054_v58  ;;  %v1561_v58 = vmul.f32 %v1558_v38, %v3083_v7 }
 0x1bb   : > { %v3527_v33 = vpop.permute.xlu1 %892  ;;  %v3529_v45 = vpop.permute.xlu0 %940 }
 0x1bc   : > { %4584 = vst [vmem:[#allocation55_spill] sm:$0xff] %v3527_v33  ;;  %4585 = vst [vmem:[#allocation56_spill] sm:$0xff] %v3529_v45  ;;  %v1499_v45 = vsel %vm300_vm7, %v1497_v19, %v1498_v1  ;;  %v1524_v33 = vrot.slane %v1518_v9, 4  ;;  %v1544_v19 = vrot.slane %v1538_v59, 4  ;;  %v1565_v51 = vrot.slane %v1559_v16, 4 }
 0x1bd   : > { %1480 = vrot.lane.b32.xlu1 %v1477_v36, %s2708_s17  ;;  %1482 = vrot.lane.b32.xlu0 %v1476_v0, %s2708_s17  ;;  %v1537_v0 = vmul.f32 %v3458_v37, %v1536_v24  ;;  %v1568_v7 = vrot.slane %v1561_v58, 4  ;;  %v1608_v16 = vstv %s2454_s26  ;;  %s3646_s26 = sld [smem:[#allocation8 + $0x7]] }
 0x1be   : > { %v1525_v1 = vsel %vm373_vm8, %v1523_v26, %v1524_v33  ;;  %v1527_v26 = vsel %vm373_vm8, %v1524_v33, %v1526_v48 }
 0x1bf   : > { %v3536_v20 = vpop.permute.xlu1 %942  ;;  %v3538_v6 = vpop.permute.xlu0 %982  ;;  %v1543_v9 = vrot.slane %v1537_v0, 4 }
 0x1c0   : > { %4586 = vst [vmem:[#allocation57_spill] sm:$0xff] %v3536_v20  ;;  %4587 = vst [vmem:[#allocation58_spill] sm:$0xff] %v3538_v6  ;;  %v1539_v6 = vmul.f32 %v3498_v54, %v1536_v24 }
 0x1c1   : > { %1502 = vrot.lane.b32.xlu1 %v1499_v45, %s2708_s17  ;;  %1504 = vrot.lane.b32.xlu0 %v1501_v10, %s2708_s17  ;;  %v1560_v45 = vmul.f32 %v1558_v38, %v3137_v34  ;;  %v1545_v59 = vsel %vm373_vm8, %v1543_v9, %v1544_v19 }
 0x1c2   : > { %v1546_v24 = vrot.slane %v1539_v6, 4 }
 0x1c3   : > { %v3547_v36 = vpop.permute.xlu1 %984  ;;  %v3549_v20 = vpop.permute.xlu0 %1032  ;;  %v3718_v53 = vstv %s3646_s26  ;;  %s4111_s26 = sld [smem:[#allocation8 + $0x1b]] }
 0x1c4   : > { %4588 = vst [vmem:[#allocation59_spill] sm:$0xff] %v3547_v36  ;;  %4589 = vst [vmem:[#allocation60_spill] sm:$0xff] %v3549_v20  ;;  %v1566_v20 = vrot.slane %v1560_v45, 4  ;;  %v1547_v6 = vsel %vm373_vm8, %v1544_v19, %v1546_v24 }
 0x1c5   : > { %1506 = vrot.lane.b32.xlu1 %v1500_v14, %s2708_s17  ;;  %1528 = vrot.lane.b32.xlu0 %v1525_v1, %s2708_s17  ;;  %v1582_v14 = vstv %s2453_s16  ;;  %s3644_s16 = sld [smem:[#allocation8 + $0x2a]] }
 0x1c6   : > { %v1584_v9 = vmul.f32 %v3467_v46, %v1582_v14  ;;  %v1567_v33 = vsel %vm373_vm8, %v1565_v51, %v1566_v20  ;;  %v1585_v38 = vmul.f32 %v3498_v54, %v1582_v14  ;;  %v1583_v48 = vmul.f32 %v3458_v37, %v1582_v14  ;;  %v3594_v51 = vld [vmem:[#allocation2] sm:$0xff] }
 0x1c7   : > { %v3557_v10 = vpop.permute.xlu1 %1034  ;;  %v3559_v36 = vpop.permute.xlu0 %1052  ;;  %v1569_v24 = vsel %vm373_vm8, %v1566_v20, %v1568_v7  ;;  %v1609_v58 = vmul.f32 %v3594_v51, %v1608_v16  ;;  %v1610_v14 = vmul.f32 %v1608_v16, %v3137_v34  ;;  %v310_v20 = vstv %s3566_s27  ;;  %s3680_s27 = sld [smem:[#allocation8 + $0xc]] }
 0x1c8   : > { %4590 = vst [vmem:[#allocation61_spill] sm:$0xff] %v3557_v10  ;;  %4591 = vst [vmem:[#allocation62_spill] sm:$0xff] %v3559_v36 }
 0x1c9   : > { %1530 = vrot.lane.b32.xlu1 %v1527_v26, %s2708_s17  ;;  %1548 = vrot.lane.b32.xlu0 %v1545_v59, %s2708_s17  ;;  %v1590_v59 = vrot.slane %v1584_v9, 4  ;;  %v1592_v26 = vrot.slane %v1585_v38, 4  ;;  %v1589_v9 = vrot.slane %v1583_v48, 4  ;;  %v3616_v38 = vld [vmem:[#allocation2 + $0x10] sm:$0x3f] }
 0x1cb   : > { %v3568_v0 = vpop.permute.xlu1 %1054  ;;  %v3570_v1 = vpop.permute.xlu0 %1067  ;;  %v1591_v34 = vsel %vm373_vm8, %v1589_v9, %v1590_v59  ;;  %v1593_v48 = vsel %vm373_vm8, %v1590_v59, %v1592_v26  ;;  %v383_v9 = vstv %s3583_s4  ;;  %s3689_s4 = sld [smem:[#allocation8 + $0x44]]  ;;  %v3715_v23 = vstv %s3644_s16  ;;  %s4109_s16 = sld [smem:[#allocation8 + $0x37]] }
 0x1cc   : > { %4592 = vst [vmem:[#allocation63_spill] sm:$0xff] %v3568_v0  ;;  %4593 = vst [vmem:[#allocation64_spill] sm:$0xff] %v3570_v1  ;;  %v1615_v0 = vrot.slane %v1609_v58, 6  ;;  %v386_v2 = vmul.f32 %v3498_v54, %v383_v9 }
 0x1cd   : > { %1550 = vrot.lane.b32.xlu1 %v1547_v6, %s2708_s17  ;;  %1570 = vrot.lane.b32.xlu0 %v1567_v33, %s2708_s17 }
 0x1cf   : > { %v3587_v45 = vpop.permute.xlu1 %1069  ;;  %v3589_v19 = vpop.permute.xlu0 %1080 }
 0x1d0   : > { %4594 = vst [vmem:[#allocation65_spill] sm:$0xff] %v3587_v45  ;;  %4595 = vst [vmem:[#allocation66_spill] sm:$0xff] %v3589_v19  ;;  %v1616_v19 = vrot.slane %v1610_v14, 6  ;;  %v311_v14 = vmul.f32 %v3458_v37, %v310_v20  ;;  %v456_v45 = vstv %s3585_s5  ;;  %s2709_s5 = smov 123  }
 0x1d1   : > { %1572 = vrot.lane.b32.xlu1 %v1569_v24, %s2708_s17  ;;  %1574 = vrot.lane.b32.xlu0 %v1568_v7, %s2708_s17  ;;  %v1611_v24 = vmul.f32 %v3616_v38, %v1608_v16  ;;  %v1628_v7 = vstv %s3573_s30  ;;  %v312_v16 = vmul.f32 %v3467_v46, %v310_v20  ;;  %s3687_s30 = sld [smem:[#allocation8 + $0x3d]] }
 0x1d2   : > { %v1629_v59 = vmul.f32 %v3458_v37, %v1628_v7  ;;  %v1631_v1 = vmul.f32 %v3498_v54, %v1628_v7 }
 0x1d3   : > { %v3611_v6 = vpop.permute.xlu1 %1082  ;;  %v3613_v33 = vpop.permute.xlu0 %1097  ;;  %v1618_v10 = vrot.slane %v1611_v24, 6  ;;  %v317_v24 = vrot.slane %v311_v14, 2  ;;  %v385_v14 = vmul.f32 %v3467_v46, %v383_v9 }
 0x1d4   : > { %4596 = vst [vmem:[#allocation67_spill] sm:$0xff] %v3611_v6  ;;  %4597 = vst [vmem:[#allocation68_spill] sm:$0xff] %v3613_v33  ;;  %v3624_v6 = vmul.f32 %v3467_v46, %v1628_v7  ;;  %v313_v33 = vmul.f32 %v3498_v54, %v310_v20  ;;  %v3667_v7 = vstv %s3609_s20  ;;  %v3670_v20 = vstv %s3606_s25  ;;  %s3968_s25 = sld [smem:[#allocation8 + $0x59]]  ;;  %s3976_s20 = sld [smem:[#allocation8 + $0x2f]] }
 0x1d5   : > { %1594 = vrot.lane.b32.xlu1 %v1591_v34, %s2708_s17  ;;  %1596 = vrot.lane.b32.xlu0 %v1593_v48, %s2708_s17  ;;  %v1617_v48 = vsel %vm446_vm9, %v1615_v0, %v1616_v19  ;;  %v3664_v0 = vstv %s3604_s24  ;;  %v391_v52 = vrot.slane %v385_v14, 4  ;;  %s3933_s24 = sld [smem:[#allocation8 + $0x28]] }
 0x1d6   : > { %v1636_v58 = vrot.slane %v3624_v6, 6  ;;  %v1635_v6 = vrot.slane %v1629_v59, 6  ;;  %v384_v59 = vmul.f32 %v3458_v37, %v383_v9  ;;  %v320_v32 = vrot.slane %v313_v33, 2 }
 0x1d7   : > { %v3640_v36 = vpop.permute.xlu1 %1099  ;;  %v3642_v34 = vpop.permute.xlu0 %1101  ;;  %v3701_v33 = vstv %s3633_s7  ;;  %s4068_s7 = sld [smem:[#allocation8 + $0x6]] }
 0x1d8   : > { %4598 = vst [vmem:[#allocation69_spill] sm:$0xff] %v3640_v36  ;;  %4599 = vst [vmem:[#allocation70_spill] sm:$0xff] %v3642_v34  ;;  %v3656_v36 = vstv %s3598_s8  ;;  %v318_v34 = vrot.slane %v312_v16, 2  ;;  %v1637_v16 = vsel %vm446_vm9, %v1635_v6, %v1636_v58  ;;  %v4602_v6 = vstv %s3581_s3  ;;  %s3872_s8 = sld [smem:[#allocation8 + $0x21]] }
 0x1d9   : > { %1598 = vrot.lane.b32.xlu1 %v1592_v26, %s2708_s17  ;;  %1620 = vrot.lane.b32.xlu0 %v1617_v48, %s2708_s17  ;;  %v1619_v26 = vsel %vm446_vm9, %v1616_v19, %v1618_v10  ;;  %v1638_v48 = vrot.slane %v1631_v1, 6  ;;  %v3694_v1 = vmul.f32 %v3467_v46, %v3656_v36  ;;  %v3698_v19 = vmul.f32 %v3498_v54, %v3656_v36 }
 0x1da   : > { %v319_v10 = vsel %vm300_vm7, %v317_v24, %v318_v34  ;;  %v390_v22 = vrot.slane %v384_v59, 4  ;;  %v321_v9 = vsel %vm300_vm7, %v318_v34, %v320_v32  ;;  %v393_v32 = vrot.slane %v386_v2, 4 }
 0x1db   : > { %v3672_v17 = vpop.permute.xlu1 %1116  ;;  %v3674_v42 = vpop.permute.xlu0 %1118  ;;  %v1639_v8 = vsel %vm446_vm9, %v1636_v58, %v1638_v48  ;;  %v354_v58 = vrot.slane %v3694_v1, 2  ;;  %v421_v1 = vmul.f32 %v3467_v46, %v3661_v39  ;;  %v1678_v2 = vstv %s3680_s27  ;;  %s2710_s27 = smov 122  }
 0x1dc   : > { %4600 = vst [vmem:[#allocation71_spill] sm:$0xff] %v3672_v17  ;;  %4601 = vst [vmem:[#allocation72_spill] sm:$0xff] %v3674_v42  ;;  %v1651_v42 = vmul.f32 %v3594_v51, %v1650_v28  ;;  %v457_v17 = vmul.f32 %v3458_v37, %v456_v45  ;;  %v347_v48 = vmul.f32 %v3458_v37, %v3656_v36 }
 0x1dd   : > { %1622 = vrot.lane.b32.xlu1 %v1619_v26, %s2708_s17  ;;  %1640 = vrot.lane.b32.xlu0 %v1637_v16, %s2708_s17  ;;  %v271_v26 = vmul.f32 %v3458_v37, %v4602_v6  ;;  %v458_v16 = vmul.f32 %v3467_v46, %v456_v45  ;;  %v286_v36 = vmul.f32 %v3467_v46, %v3653_v62 }
 0x1df   : > { %v3708_v57 = vpop.permute.xlu1 %1120  ;;  %v3710_v24 = vpop.permute.xlu0 %1142  ;;  %v324_v6 = vadd.f32 %v319_v10, %v271_v26  ;;  %v464_v59 = vrot.slane %v458_v16, 6  ;;  %v3746_v16 = vmul.f32 %v3498_v54, %v3661_v39 }
 0x1e0   : > { %4603 = vst [vmem:[#allocation73_spill] sm:$0xff] %v3708_v57  ;;  %4604 = vst [vmem:[#allocation74_spill] sm:$0xff] %v3710_v24  ;;  %v459_v57 = vmul.f32 %v3498_v54, %v456_v45  ;;  %v4605_v24 = vstv %s3581_s3  ;;  %v4608_v45 = vstv %s3620_s23  ;;  %s3845_s3 = sld [smem:[#allocation8 + $0x4b]]  ;;  %s4002_s23 = sld [smem:[#allocation8 + $0x60]] }
 0x1e1   : > { %1642 = vrot.lane.b32.xlu1 %v1639_v8, %s2708_s17  ;;  %1655 = vrot.lane.b32.xlu0 %v1651_v42, %s2709_s5  ;;  %v272_v11 = vmul.f32 %v3467_v46, %v4605_v24  ;;  %v3736_v42 = vld [vmem:[#allocation2 + $0x8] sm:$0xff]  ;;  %v1664_v10 = vmul.f32 %v3458_v37, %v4608_v45  ;;  %v392_v24 = vsel %vm373_vm8, %v390_v22, %v391_v52  ;;  %v463_v45 = vrot.slane %v457_v17, 6  ;;  %s3781_s17 = sld [smem:[#allocation8 + $0x1a]] }
 0x1e2   : > { %v1652_v14 = vmul.f32 %v3736_v42, %v1650_v28  ;;  %v3755_v28 = vstv %s3687_s30  ;;  %v394_v22 = vsel %vm373_vm8, %v391_v52, %v393_v32  ;;  %v1679_v17 = vmul.f32 %v3594_v51, %v1678_v2  ;;  %s4220_s30 = sld [smem:[#allocation8 + $0x4c]] }
 0x1e3   : > { %v3732_v8 = vpop.permute.xlu1 %1144  ;;  %v3734_v34 = vpop.permute.xlu0 %1162  ;;  %v325_v26 = vadd.f32 %v321_v9, %v272_v11  ;;  %v3758_v11 = vstv %s3689_s4  ;;  %v397_v9 = vadd.f32 %v392_v24, %v324_v6  ;;  %v427_v24 = vrot.slane %v421_v1, 4  ;;  %s4279_s4 = sld [smem:[#allocation8 + $0x14]] }
 0x1e4   : > { %4606 = vst [vmem:[#allocation75_spill] sm:$0xff] %v3732_v8  ;;  %4607 = vst [vmem:[#allocation76_spill] sm:$0xff] %v3734_v34  ;;  %v466_v34 = vrot.slane %v459_v57, 6  ;;  %v4609_v8 = vrot.slane %v3698_v19, 2  ;;  %v465_v57 = vsel %vm446_vm9, %v463_v45, %v464_v59  ;;  %v353_v52 = vrot.slane %v347_v48, 2 }
 0x1e5   : > { %1657 = vrot.lane.b32.xlu1 %v1652_v14, %s2709_s5  ;;  %1668 = vrot.lane.b32.xlu0 %v1664_v10, %s2709_s5  ;;  %v398_v6 = vadd.f32 %v394_v22, %v325_v26  ;;  %v420_v32 = vmul.f32 %v3458_v37, %v3661_v39  ;;  %v3783_v61 = vadd.f32 %v465_v57, %v397_v9 }
 0x1e6   : > { %v357_v18 = vsel %vm300_vm7, %v354_v58, %v4609_v8  ;;  %v4530_v8 = vrot.slane %v3746_v16, 4  ;;  %v467_v45 = vsel %vm446_vm9, %v464_v59, %v466_v34  ;;  %v294_v26 = vmul.f32 %v3594_v51, %v3664_v0 }
 0x1e7   : > { %v3766_v14 = vpop.permute.xlu1 %1164  ;;  %v3768_v10 = vpop.permute.xlu0 %1184  ;;  %v362_v4 = vadd.f32 %v357_v18, %v286_v36  ;;  %v3790_v18 = vmul.f32 %v3736_v42, %v3664_v0  ;;  %v285_v39 = vmul.f32 %v3458_v37, %v3653_v62  ;;  %v1680_v9 = vmul.f32 %v3736_v42, %v1678_v2 }
 0x1e8   : > { %4610 = vst [vmem:[#allocation77_spill] sm:$0xff] %v3766_v14  ;;  %4611 = vst [vmem:[#allocation78_spill] sm:$0xff] %v3768_v10  ;;  %v1718_v14 = vstv %s3724_s6  ;;  %v1681_v59 = vmul.f32 %v3616_v38, %v1678_v2  ;;  %v3801_v34 = vadd.f32 %v467_v45, %v398_v6  ;;  %v430_v22 = vsel %vm373_vm8, %v427_v24, %v4530_v8  ;;  %s4341_s6 = sld [smem:[#allocation8 + $0x29]] }
 0x1e9   : > { %1670 = vrot.lane.b32.xlu1 %v1665_v40, %s2709_s5  ;;  %1685 = vrot.lane.b32.xlu0 %v1679_v17, %s2709_s5  ;;  %v355_v40 = vsel %vm300_vm7, %v353_v52, %v354_v58  ;;  %v1719_v36 = vmul.f32 %v3594_v51, %v1718_v14  ;;  %v1720_v17 = vmul.f32 %v3736_v42, %v1718_v14  ;;  %v426_v58 = vrot.slane %v420_v32, 4 }
 0x1ea   : > { %v3808_v57 = vadd.f32 %v430_v22, %v362_v4  ;;  %v287_v52 = vmul.f32 %v3498_v54, %v3653_v62  ;;  %v367_v2 = vmul.f32 %v3594_v51, %v3667_v7  ;;  %v361_v6 = vadd.f32 %v355_v40, %v285_v39 }
 0x1eb   : > { %v3795_v48 = vpop.permute.xlu1 %1186  ;;  %v3797_v1 = vpop.permute.xlu0 %1188  ;;  %v301_v45 = vrot.slane %v294_v26, 2  ;;  %v3819_v4 = vmul.f32 %v3736_v42, %v3667_v7  ;;  %v428_v32 = vsel %vm373_vm8, %v426_v58, %v427_v24  ;;  %v1699_v39 = vmul.f32 %v3467_v46, %v3755_v28 }
 0x1ec   : > { %4613 = vst [vmem:[#allocation79_spill] sm:$0xff] %v3795_v48  ;;  %4614 = vst [vmem:[#allocation80_spill] sm:$0xff] %v3797_v1  ;;  %v1721_v26 = vmul.f32 %v3616_v38, %v1718_v14  ;;  %v4617_v40 = vstv %s3628_s29  ;;  %v1725_v8 = vrot.slane %v1719_v36, 2  ;;  %v1726_v1 = vrot.slane %v1720_v17, 2 }
 0x1ed   : > { %1687 = vrot.lane.b32.xlu1 %v1680_v9, %s2709_s5  ;;  %1689 = vrot.lane.b32.xlu0 %v1681_v59, %s2709_s5  ;;  %v1698_v9 = vmul.f32 %v3458_v37, %v3755_v28  ;;  %v266_v59 = vmul.f32 %v3594_v51, %v4617_v40  ;;  %v1740_v24 = vmul.f32 %v3467_v46, %v3758_v11  ;;  %v374_v58 = vrot.slane %v367_v2, 4 }
 0x1ee   : > { %v1760_v14 = vstv %s3781_s17  ;;  %v4618_v36 = vrot.slane %v3790_v18, 2  ;;  %v329_v40 = vmul.f32 %v3594_v51, %v3670_v20  ;;  %v1739_v48 = vmul.f32 %v3458_v37, %v3758_v11  ;;  %s2481_s17 = sld [smem:[#allocation8 + $0x5a]] }
 0x1ef   : > { %v3822_v22 = vpop.permute.xlu1 %1208  ;;  %v3824_v62 = vpop.permute.xlu0 %1210  ;;  %v1700_v27 = vmul.f32 %v3498_v54, %v3755_v28  ;;  %v1727_v2 = vsel %vm300_vm7, %v1725_v8, %v1726_v1  ;;  %v1746_v43 = vrot.slane %v1740_v24, 2  ;;  %v1761_v50 = vmul.f32 %v3594_v51, %v1760_v14 }
 0x1f0   : > { %4615 = vst [vmem:[#allocation81_spill] sm:$0xff] %v3822_v22  ;;  %4616 = vst [vmem:[#allocation82_spill] sm:$0xff] %v3824_v62  ;;  %v440_v62 = vmul.f32 %v3594_v51, %v3715_v23  ;;  %v3840_v22 = vmul.f32 %v3736_v42, %v3715_v23  ;;  %v303_v17 = vsel %vm300_vm7, %v301_v45, %v4618_v36  ;;  %v1728_v45 = vrot.slane %v1721_v26, 2 }
 0x1f1   : > { %1704 = vrot.lane.b32.xlu1 %v1698_v9, %s2709_s5  ;;  %1706 = vrot.lane.b32.xlu0 %v1699_v39, %s2709_s5  ;;  %v3857_v9 = vmul.f32 %v3736_v42, %v3670_v20  ;;  %v1741_v36 = vmul.f32 %v3498_v54, %v3758_v11  ;;  %v3870_v29 = vmul.f32 %v3736_v42, %v1760_v14  ;;  %v4622_v8 = vrot.slane %v3819_v4, 4 }
 0x1f2   : > { %v447_v28 = vrot.slane %v440_v62, 6  ;;  %v4531_v26 = vrot.slane %v3840_v22, 6  ;;  %v308_v11 = vadd.f32 %v303_v17, %v266_v59  ;;  %v1767_v17 = vrot.slane %v1761_v50, 2 }
 0x1f3   : > { %v3859_v39 = vpop.permute.xlu1 %1212  ;;  %v3861_v10 = vpop.permute.xlu0 %1234  ;;  %v376_v24 = vsel %vm373_vm8, %v374_v58, %v4622_v8  ;;  %v1768_v58 = vrot.slane %v3870_v29, 2  ;;  %v1763_v8 = vmul.f32 %v3616_v38, %v1760_v14  ;;  %v1784_v50 = vstv %s3845_s3  ;;  %s2478_s3 = sld [smem:[#allocation8 + $0x22]] }
 0x1f4   : > { %4619 = vst [vmem:[#allocation83_spill] sm:$0xff] %v3859_v39  ;;  %4620 = vst [vmem:[#allocation84_spill] sm:$0xff] %v3861_v10  ;;  %v3874_v39 = vadd.f32 %v428_v32, %v361_v6  ;;  %v4621_v10 = vrot.slane %v3698_v19, 2  ;;  %v296_v6 = vmul.f32 %v3616_v38, %v3664_v0  ;;  %v1745_v32 = vrot.slane %v1739_v48, 2 }
 0x1f5   : > { %1708 = vrot.lane.b32.xlu1 %v1700_v27, %s2709_s5  ;;  %1730 = vrot.lane.b32.xlu0 %v1727_v2, %s2709_s5  ;;  %v335_v19 = vrot.slane %v329_v40, 2  ;;  %v1729_v27 = vsel %vm300_vm7, %v1726_v1, %v1728_v45  ;;  %v1748_v2 = vrot.slane %v1741_v36, 2  ;;  %v3900_v0 = vsel %vm446_vm9, %v447_v28, %v4531_v26 }
 0x1f6   : > { %v3878_v63 = vadd.f32 %v4621_v10, %v287_v52  ;;  %v336_v10 = vrot.slane %v3857_v9, 2  ;;  %v1747_v59 = vsel %vm300_vm7, %v1745_v32, %v1746_v43  ;;  %v278_v48 = vmul.f32 %v3594_v51, %v3718_v53 }
 0x1f7   : > { %v3889_v52 = vpop.permute.xlu1 %1236  ;;  %v3891_v62 = vpop.permute.xlu0 %1254  ;;  %v402_v40 = vmul.f32 %v3594_v51, %v3701_v33  ;;  %v3911_v29 = vmul.f32 %v3736_v42, %v3701_v33  ;;  %v331_v1 = vmul.f32 %v3616_v38, %v3670_v20  ;;  %v304_v14 = vrot.slane %v296_v6, 2 }
 0x1f8   : > { %4623 = vst [vmem:[#allocation85_spill] sm:$0xff] %v3889_v52  ;;  %4624 = vst [vmem:[#allocation86_spill] sm:$0xff] %v3891_v62  ;;  %v369_v9 = vmul.f32 %v3616_v38, %v3667_v7  ;;  %v3917_v45 = vadd.f32 %v376_v24, %v308_v11  ;;  %v337_v36 = vsel %vm300_vm7, %v335_v19, %v336_v10  ;;  %v1770_v6 = vrot.slane %v1763_v8, 2 }
 0x1f9   : > { %1732 = vrot.lane.b32.xlu1 %v1729_v27, %s2709_s5  ;;  %1750 = vrot.lane.b32.xlu0 %v1747_v59, %s2709_s5  ;;  %v1749_v27 = vsel %vm300_vm7, %v1746_v43, %v1748_v2  ;;  %v1786_v59 = vmul.f32 %v3467_v46, %v1784_v50  ;;  %v1769_v20 = vsel %vm300_vm7, %v1767_v17, %v1768_v58  ;;  %v1810_v11 = vstv %s3872_s8  ;;  %s2479_s8 = sld [smem:[#allocation8 + $0x53]] }
 0x1fa   : > { %v3930_v7 = vmul.f32 %v3498_v54, %v1784_v50  ;;  %v408_v24 = vrot.slane %v402_v40, 4  ;;  %v404_v19 = vmul.f32 %v3616_v38, %v3701_v33  ;;  %v442_v43 = vmul.f32 %v3616_v38, %v3715_v23 }
 0x1fb   : > { %v3920_v28 = vpop.permute.xlu1 %1256  ;;  %v3922_v32 = vpop.permute.xlu0 %1276  ;;  %v4627_v2 = vstv %s3628_s29  ;;  %v338_v17 = vrot.slane %v331_v1, 2  ;;  %v377_v8 = vrot.slane %v369_v9, 4  ;;  %v1785_v40 = vmul.f32 %v3458_v37, %v1784_v50  ;;  %s4042_s29 = sld [smem:[#allocation8 + $0x3e]] }
 0x1fc   : > { %4625 = vst [vmem:[#allocation87_spill] sm:$0xff] %v3920_v28  ;;  %4626 = vst [vmem:[#allocation88_spill] sm:$0xff] %v3922_v32  ;;  %v267_v26 = vmul.f32 %v3736_v42, %v4627_v2  ;;  %v4628_v28 = vrot.slane %v3790_v18, 2  ;;  %v409_v33 = vrot.slane %v3911_v29, 4  ;;  %v280_v23 = vmul.f32 %v3616_v38, %v3718_v53 }
 0x1fd   : > { %1752 = vrot.lane.b32.xlu1 %v1749_v27, %s2709_s5  ;;  %1772 = vrot.lane.b32.xlu0 %v1769_v20, %s2709_s5  ;;  %v1811_v27 = vmul.f32 %v3594_v51, %v1810_v11  ;;  %v1812_v1 = vmul.f32 %v3736_v42, %v1810_v11  ;;  %v343_v9 = vadd.f32 %v337_v36, %v278_v48  ;;  %v1792_v20 = vrot.slane %v1786_v59, 2 }
 0x1fe   : > { %v305_v62 = vsel %vm300_vm7, %v4628_v28, %v304_v14  ;;  %v1771_v18 = vsel %vm300_vm7, %v1768_v58, %v1770_v6  ;;  %v1794_v14 = vrot.slane %v3930_v7, 2  ;;  %v411_v50 = vrot.slane %v404_v19, 4 }
 0x1ff   : > { %v3951_v52 = vpop.permute.xlu1 %1278  ;;  %v3953_v2 = vpop.permute.xlu0 %1280  ;;  %v450_v29 = vrot.slane %v442_v43, 6  ;;  %v309_v28 = vadd.f32 %v305_v62, %v267_v26  ;;  %v279_v32 = vmul.f32 %v3736_v42, %v3718_v53  ;;  %v339_v58 = vsel %vm300_vm7, %v336_v10, %v338_v17 }
 0x200   : > { %4629 = vst [vmem:[#allocation89_spill] sm:$0xff] %v3953_v2  ;;  %v4630_v2 = vrot.slane %v3819_v4, 4  ;;  %v1791_v36 = vrot.slane %v1785_v40, 2  ;;  %v1813_v59 = vmul.f32 %v3616_v38, %v1810_v11  ;;  %v410_v26 = vsel %vm373_vm8, %v408_v24, %v409_v33 }
 0x201   : > { %1774 = vrot.lane.b32.xlu1 %v1771_v18, %s2709_s5  ;;  %1776 = vrot.lane.b32.xlu0 %v1770_v6, %s2709_s5  ;;  %v1817_v7 = vrot.slane %v1811_v27, 4  ;;  %v1818_v6 = vrot.slane %v1812_v1, 4  ;;  %v1830_v19 = vstv %s3926_s19  ;;  %v1795_v10 = vsel %vm300_vm7, %v1792_v20, %v1794_v14  ;;  %s2482_s19 = sld [smem:[#allocation8 + $0x30]] }
 0x202   : > { %v378_v48 = vsel %vm373_vm8, %v4630_v2, %v377_v8  ;;  %v1793_v4 = vsel %vm300_vm7, %v1791_v36, %v1792_v20  ;;  %v1832_v43 = vmul.f32 %v3467_v46, %v1830_v19  ;;  %v1852_v11 = vstv %s3933_s24  ;;  %s2483_s24 = sld [smem:[#allocation8 + $0x61]] }
 0x203   : > { %v3971_v62 = vpop.permute.xlu1 %1300  ;;  %v3973_v53 = vpop.permute.xlu0 %1302  ;;  %v345_v8 = vadd.f32 %v338_v17, %v280_v23  ;;  %v382_v40 = vadd.f32 %v378_v48, %v309_v28  ;;  %v344_v2 = vadd.f32 %v339_v58, %v279_v32  ;;  %v4632_v24 = vrot.slane %v3840_v22, 6 }
 0x204   : > { %4631 = vst [vmem:[#allocation90_spill] sm:$0xff] %v3973_v53  ;;  %v412_v1 = vsel %vm373_vm8, %v409_v33, %v411_v50  ;;  %v1820_v18 = vrot.slane %v1813_v59, 4  ;;  %v1831_v36 = vmul.f32 %v3458_v37, %v1830_v19  ;;  %v4633_v20 = vrot.slane %v3746_v16, 4 }
 0x205   : > { %1796 = vrot.lane.b32.xlu1 %v1793_v4, %s2709_s5  ;;  %1798 = vrot.lane.b32.xlu0 %v1795_v10, %s2709_s5  ;;  %v451_v27 = vsel %vm446_vm9, %v4632_v24, %v450_v29  ;;  %v3994_v32 = vadd.f32 %v3900_v0, %v3917_v45  ;;  %v1833_v22 = vmul.f32 %v3498_v54, %v1830_v19 }
 0x206   : > { %v436_v53 = vadd.f32 %v4633_v20, %v3878_v63  ;;  %v1853_v33 = vmul.f32 %v3594_v51, %v1852_v11  ;;  %v4004_v29 = vadd.f32 %v410_v26, %v343_v9  ;;  %v1819_v16 = vsel %vm373_vm8, %v1817_v7, %v1818_v6 }
 0x207   : > { %v3996_v17 = vpop.permute.xlu1 %1304  ;;  %v3998_v23 = vpop.permute.xlu0 %1326  ;;  %v1838_v63 = vrot.slane %v1832_v43, 4  ;;  %v1854_v28 = vmul.f32 %v3736_v42, %v1852_v11  ;;  %v4008_v0 = vadd.f32 %v411_v50, %v345_v8  ;;  %v4010_v45 = vadd.f32 %v451_v27, %v382_v40 }
 0x208   : > { %v4012_v48 = vadd.f32 %v412_v1, %v344_v2  ;;  %v538_v9 = vadd.f32 %v3231_v55, %v3808_v57  ;;  %v1821_v58 = vsel %vm373_vm8, %v1818_v6, %v1820_v18  ;;  %v1837_v59 = vrot.slane %v1831_v36, 4 }
 0x209   : > { %1800 = vrot.lane.b32.xlu1 %v1794_v14, %s2709_s5  ;;  %1822 = vrot.lane.b32.xlu0 %v1819_v16, %s2709_s5  ;;  %v1876_v26 = vstv %s3968_s25  ;;  %v1840_v19 = vrot.slane %v1833_v22, 4  ;;  %v1859_v4 = vrot.slane %v1853_v33, 4  ;;  %v1855_v10 = vmul.f32 %v3616_v38, %v1852_v11  ;;  %s2386_s25 = sshll.u32 %s2856_s14, 4 }
 0x20a   : > { %v1902_v14 = vstv %s3976_s20  ;;  %v1839_v43 = vsel %vm373_vm8, %v1837_v59, %v1838_v63  ;;  %v1860_v8 = vrot.slane %v1854_v28, 4  ;;  %v1878_v55 = vmul.f32 %v3467_v46, %v1876_v26  ;;  %s2492_s20 = sshll.u32 %s2750_s13, 8 }
 0x20b   : > { %v4022_v7 = vpop.permute.xlu1 %1328  ;;  %v4024_v50 = vpop.permute.xlu0 %1346  ;;  %v4031_v57 = vmul.f32 %v3498_v54, %v1876_v26  ;;  %v498_v6 = vadd.f32 %v3218_v35, %v3783_v61  ;;  %v4037_v40 = vadd.f32 %v3229_v60, %v3801_v34  ;;  %v1877_v11 = vmul.f32 %v3458_v37, %v1876_v26 }
 0x20c   : > { %v4046_v2 = vadd.f32 %v3241_v3, %v3874_v39  ;;  %v630_v24 = vadd.f32 %v3278_v25, %v538_v9  ;;  %v1903_v35 = vmul.f32 %v3594_v51, %v1902_v14  ;;  %v1904_v61 = vmul.f32 %v3736_v42, %v1902_v14 }
 0x20d   : > { %1824 = vrot.lane.b32.xlu1 %v1821_v58, %s2709_s5  ;;  %1842 = vrot.lane.b32.xlu0 %v1839_v43, %s2709_s5  ;;  %v1841_v27 = vsel %vm373_vm8, %v1838_v63, %v1840_v19  ;;  %v1862_v1 = vrot.slane %v1855_v10, 4  ;;  %v1905_v18 = vmul.f32 %v3616_v38, %v1902_v14  ;;  %v1922_v36 = vstv %s4002_s23  ;;  %s175_s23 = scalar_lea.vmem [#allocation9], %s2386_s25 }
 0x20e   : > { %v1861_v3 = vsel %vm373_vm8, %v1859_v4, %v1860_v8  ;;  %v1884_v39 = vrot.slane %v1878_v55, 4  ;;  %v1886_v25 = vrot.slane %v4031_v57, 4  ;;  %v4061_v20 = vmul.f32 %v3467_v46, %v1922_v36 }
 0x20f   : > { %v4051_v60 = vpop.permute.xlu1 %1348  ;;  %v4053_v34 = vpop.permute.xlu0 %1361  ;;  %v539_v22 = vadd.f32 %v3254_v13, %v436_v53  ;;  %v580_v33 = vadd.f32 %v3269_v21, %v498_v6  ;;  %v722_v16 = vadd.f32 %v3295_v44, %v630_v24  ;;  %v1883_v63 = vrot.slane %v1877_v11, 4 }
 0x210   : > { %v1909_v28 = vrot.slane %v1903_v35, 6  ;;  %v1910_v9 = vrot.slane %v1904_v61, 6  ;;  %v1923_v58 = vmul.f32 %v3458_v37, %v1922_v36  ;;  %v1972_v59 = vstv %s4020_s28  ;;  %s2291_s28 = sshll.u32 %s175_s23, 4  ;;  %s4479_s28 = int_to_ptr.vmem [resolvable:$true] %s2291_s28 }
 0x211   : > { %1844 = vrot.lane.b32.xlu1 %v1841_v27, %s2709_s5  ;;  %1864 = vrot.lane.b32.xlu0 %v1861_v3, %s2709_s5  ;;  %v672_v46 = vadd.f32 %v3287_v30, %v580_v33  ;;  %v1863_v44 = vsel %vm373_vm8, %v1860_v8, %v1862_v1  ;;  %v1912_v53 = vrot.slane %v1905_v18, 6  ;;  %v1925_v26 = vmul.f32 %v3498_v54, %v1922_v36  ;;  %v4123_v18 = vld [vmem:[#allocation3] sm:$0xff]  ;;  %v4128_v3 = vld [vmem:[#allocation3 + $0x8] sm:$0xff]  ;;  %s2627_s13 = scalar_lea.vmem %s4479_s28, 256 }
 0x212   : > { %v631_v19 = vadd.f32 %v3293_v41, %v539_v22  ;;  %v1885_v4 = vsel %vm373_vm8, %v1883_v63, %v1884_v39  ;;  %v1887_v37 = vsel %vm373_vm8, %v1884_v39, %v1886_v25  ;;  %v1930_v10 = vrot.slane %v4061_v20, 6  ;;  %v4636_v20 = vld [vmem:[#allocation35_spill] sm:$0xff]  ;;  %v4637_v33 = vld [vmem:[#allocation38_spill] sm:$0xff]  ;;  %v4638_v63 = vld [vmem:[#allocation48_spill] sm:$0xff]  ;;  %p2628_p13 = scmp.ne.s32.totalorder %s4479_s28, %s2627_s13 }
 0x213   : > { %v4073_v13 = vpop.permute.xlu1 %1363  ;;  %v4075_v21 = vpop.permute.xlu0 %1374  ;;  %v4086_v30 = vadd.f32 %v3256_v12, %v722_v16  ;;  %v4091_v14 = vmul.f32 %v3594_v51, %v1972_v59  ;;  %v4094_v41 = vmul.f32 %v3736_v42, %v1972_v59  ;;  %v1991_v43 = vstv %s4042_s29 }
 0x214   : > { %v723_v8 = vadd.f32 %v3301_v31, %v631_v19  ;;  %v518_v55 = vadd.f32 %v3364_v5, %v4004_v29  ;;  %v1911_v6 = vsel %vm446_vm9, %v1909_v28, %v1910_v9  ;;  %v1929_v12 = vrot.slane %v1923_v58, 6  ;;  %p2629_p8 = pnand %p2628_p13, %p4712_p12 }
 0x215   : > { %1866 = vrot.lane.b32.xlu1 %v1863_v44, %s2709_s5  ;;  %1868 = vrot.lane.b32.xlu0 %v1862_v1, %s2709_s5  ;;  %v764_v11 = vadd.f32 %v3303_v49, %v672_v46  ;;  %v485_v24 = vadd.f32 %v3355_v56, %v3994_v32  ;;  %v1913_v27 = vsel %vm446_vm9, %v1910_v9, %v1912_v53  ;;  %v1932_v1 = vrot.slane %v1925_v26, 6  ;;  %v4634_v32 = vld [vmem:[#allocation43_spill] sm:$0xff]  ;;  %v4639_v9 = vld [vmem:[#allocation13_spill] sm:$0xff]  ;;  %v4641_v44 = vld [vmem:[#allocation46_spill] sm:$0xff] }
 0x216   : > { %v520_v31 = vadd.f32 %v3375_v47, %v4008_v0  ;;  %v605_v49 = vadd.f32 %v3465_v15, %v518_v55  ;;  %v1931_v5 = vsel %vm446_vm9, %v1929_v12, %v1930_v10  ;;  %v4118_v56 = vmul.f32 %v3616_v38, %v1972_v59  ;;  %v4635_v0 = vld [vmem:[#allocation16_spill] sm:$0xff]  ;;  %v4643_v55 = vld [vmem:[#allocation37_spill] sm:$0xff]  ;;  %p2630_p9 = pneg %p2629_p8 }
 0x217   : > { %v4104_v35 = vpop.permute.xlu1 %1376  ;;  %v4106_v61 = vpop.permute.xlu0 %1391  ;;  %v560_v29 = vadd.f32 %v4634_v32, %v485_v24  ;;  %v4126_v36 = vmul.f32 %v4123_v18, %v1991_v43  ;;  %v4131_v47 = vmul.f32 %v4128_v3, %v1991_v43  ;;  %v1944_v15 = vstv %s4068_s7  ;;  %v4640_v59 = vld [vmem:[#allocation36_spill] sm:$0xff]  ;;  %v4644_v12 = vld [vmem:[#allocation45_spill] sm:$0xff] }
 0x218   : > { %v833_v39 = vadd.f32 %v4635_v0, %v723_v8  ;;  %v607_v22 = vadd.f32 %v4636_v20, %v520_v31  ;;  %v519_v16 = vadd.f32 %v4637_v33, %v4012_v48  ;;  %v697_v28 = vadd.f32 %v4638_v63, %v605_v49  ;;  %v4646_v49 = vld [vmem:[#allocation50_spill] sm:$0xff]  ;;  %v4649_v20 = vld [vmem:[#allocation31_spill] sm:$0xff] }
 0x219   : > { %1888 = vrot.lane.b32.xlu1 %v1885_v4, %s2709_s5  ;;  %1890 = vrot.lane.b32.xlu0 %v1887_v37, %s2709_s5  ;;  %v792_v58 = vadd.f32 %v4639_v9, %v764_v11  ;;  %v486_v46 = vadd.f32 %v4640_v59, %v4010_v45  ;;  %v652_v53 = vadd.f32 %v4641_v44, %v560_v29  ;;  %v4642_v37 = vld [vmem:[#allocation21_spill] sm:$0xff]  ;;  %v4645_v45 = vld [vmem:[#allocation44_spill] sm:$0xff]  ;;  %v1957_v63 = vstv %s4109_s16  ;;  %v4653_v44 = vld [vmem:[#allocation27_spill] sm:$0xff]  ;;  %s4477_s16 = scalar_lea.hbm %s4526_s2, %s2492_s20 }
 0x21a   : > { %v1933_v4 = vsel %vm446_vm9, %v1930_v10, %v1932_v1  ;;  %v581_v8 = vadd.f32 %v4642_v37, %v4037_v40  ;;  %v699_v48 = vadd.f32 %v4643_v55, %v607_v22  ;;  %v606_v24 = vadd.f32 %v4644_v12, %v519_v16  ;;  %v4647_v10 = vld [vmem:[#allocation25_spill] sm:$0xff]  ;;  %v4650_v22 = vld [vmem:[#allocation23_spill] sm:$0xff]  ;;  %v4656_v55 = vld [vmem:[#allocation26_spill] sm:$0xff] }
 0x21b   : > { %v4143_v26 = vpop.permute.xlu1 %1393  ;;  %v4145_v19 = vpop.permute.xlu0 %1395  ;;  %v4153_v11 = vmul.f32 %v3498_v54, %v1991_v43  ;;  %v561_v31 = vadd.f32 %v4645_v45, %v486_v46  ;;  %v744_v32 = vadd.f32 %v4646_v49, %v652_v53  ;;  %v4162_v40 = vmul.f32 %v3594_v51, %v1944_v15  ;;  %v4648_v29 = vld [vmem:[#allocation49_spill] sm:$0xff]  ;;  %v4651_v16 = vld [vmem:[#allocation47_spill] sm:$0xff]  ;;  %v4659_v49 = vld [vmem:[#allocation18_spill] sm:$0xff] }
 0x21c   : > { %v673_v1 = vadd.f32 %v4647_v10, %v581_v8  ;;  %v698_v0 = vadd.f32 %v4648_v29, %v606_v24  ;;  %v812_v54 = vadd.f32 %v4649_v20, %v697_v28  ;;  %v4168_v43 = vmul.f32 %v3736_v42, %v1944_v15  ;;  %v4652_v59 = vld [vmem:[#allocation17_spill] sm:$0xff]  ;;  %v4655_v8 = vld [vmem:[#allocation54_spill] sm:$0xff]  ;;  %v4657_v24 = vld [vmem:[#allocation51_spill] sm:$0xff] }
 0x21d   : > { %1892 = vrot.lane.b32.xlu1 %v1886_v25, %s2709_s5  ;;  %1914 = vrot.lane.b32.xlu0 %v1911_v6, %s2709_s5  ;;  %v629_v33 = vadd.f32 %v4650_v22, %v4046_v2  ;;  %v653_v57 = vadd.f32 %v4651_v16, %v561_v31  ;;  %v2054_v9 = vstv %s4111_s26  ;;  %v925_v46 = vadd.f32 %v4652_v59, %v833_v39  ;;  %v4654_v37 = vld [vmem:[#allocation33_spill] sm:$0xff]  ;;  %v4660_v29 = vld [vmem:[#allocation42_spill] sm:$0xff]  ;;  %v4663_v16 = vld [vmem:[#allocation39_spill] sm:$0xff]  ;;  %s2278_s26 = scalar_lea.sflag [#allocation6], %s2856_s14 }
 0x21e   : > { %v765_v53 = vadd.f32 %v4653_v44, %v673_v1  ;;  %v814_v28 = vadd.f32 %v4654_v37, %v699_v48  ;;  %v899_v15 = vadd.f32 %v4655_v8, %v812_v54  ;;  %v4658_v45 = vld [vmem:[#allocation29_spill] sm:$0xff]  ;;  %v874_v10 = vadd.f32 %v4659_v49, %v792_v58  ;;  %v4661_v20 = vld [vmem:[#allocation58_spill] sm:$0xff]  ;;  %v4664_v59 = vld [vmem:[#allocation55_spill] sm:$0xff] }
 0x21f   : > { %v4173_v25 = vpop.permute.xlu1 %1410  ;;  %v4175_v6 = vpop.permute.xlu0 %1412  ;;  %v721_v12 = vadd.f32 %v4656_v55, %v629_v33  ;;  %v745_v2 = vadd.f32 %v4657_v24, %v653_v57  ;;  %v779_v31 = vadd.f32 %v4658_v45, %v744_v32  ;;  %v813_v39 = vadd.f32 %v4660_v29, %v698_v0  ;;  %v4662_v32 = vld [vmem:[#allocation14_spill] sm:$0xff]  ;;  %v4665_v37 = vld [vmem:[#allocation68_spill] sm:$0xff]  ;;  %v4671_v49 = vld [vmem:[#allocation59_spill] sm:$0xff] }
 0x220   : > { %v991_v1 = vadd.f32 %v4661_v20, %v899_v15  ;;  %v4192_v48 = vmul.f32 %v4123_v18, %v1957_v63  ;;  %v4199_v33 = vmul.f32 %v4128_v3, %v1957_v63  ;;  %v4208_v58 = vmul.f32 %v3616_v38, %v2054_v9  ;;  %v4666_v15 = vld [vmem:[#allocation15_spill] sm:$0xff]  ;;  %v4667_v55 = vld [vmem:[#allocation52_spill] sm:$0xff] }
 0x221   : > { %1916 = vrot.lane.b32.xlu1 %v1913_v27, %s2709_s5  ;;  %1934 = vrot.lane.b32.xlu0 %v1931_v5, %s2709_s5  ;;  %v4202_v27 = vmul.f32 %v3594_v51, %v2054_v9  ;;  %v4205_v5 = vmul.f32 %v3736_v42, %v2054_v9  ;;  %v793_v0 = vadd.f32 %v4662_v32, %v765_v53  ;;  %v4668_v51 = vld [vmem:[#allocation40_spill] sm:$0xff]  ;;  %v4669_v38 = vld [vmem:[#allocation19_spill] sm:$0xff]  ;;  %v4670_v53 = vld [vmem:[#allocation41_spill] sm:$0xff] }
 0x222   : > { %v901_v57 = vadd.f32 %v4663_v16, %v814_v28  ;;  %v900_v44 = vadd.f32 %v4664_v59, %v813_v39  ;;  %v1106_v8 = vadd.f32 %v4665_v37, %v991_v1  ;;  %v831_v63 = vadd.f32 %v4666_v15, %v721_v12  ;;  %v4672_v39 = vld [vmem:[#allocation78_spill] sm:$0xff]  ;;  %v4676_v16 = vld [vmem:[#allocation56_spill] sm:$0xff] }
 0x223   : > { %v4194_v54 = vpop.permute.xlu1 %1414  ;;  %v4196_v22 = vpop.permute.xlu0 %1436  ;;  %v854_v24 = vadd.f32 %v4667_v55, %v779_v31  ;;  %v780_v45 = vadd.f32 %v4668_v51, %v745_v2  ;;  %v1017_v9 = vadd.f32 %v4669_v38, %v925_v46  ;;  %v4673_v31 = vld [vmem:[#allocation20_spill] sm:$0xff]  ;;  %v4674_v2 = vld [vmem:[#allocation22_spill] sm:$0xff] }
 0x224   : > { %v993_v28 = vadd.f32 %v4670_v53, %v901_v57  ;;  %v992_v29 = vadd.f32 %v4671_v49, %v900_v44  ;;  %v1193_v12 = vadd.f32 %v4672_v39, %v1106_v8  ;;  %v924_v20 = vadd.f32 %v4673_v31, %v4086_v30  ;;  %v4677_v46 = vld [vmem:[#allocation28_spill] sm:$0xff]  ;;  %v4678_v57 = vld [vmem:[#allocation69_spill] sm:$0xff]  ;;  %v4679_v44 = vld [vmem:[#allocation70_spill] sm:$0xff] }
 0x225   : > { %1936 = vrot.lane.b32.xlu1 %v1933_v4, %s2709_s5  ;;  %1979 = vrot.lane.b32.xlu0 %v4091_v14, %s2710_s27  ;;  %v966_v1 = vadd.f32 %v4674_v2, %v874_v10  ;;  %v4675_v4 = vld [vmem:[#allocation30_spill] sm:$0xff]  ;;  %v946_v59 = vadd.f32 %v4676_v16, %v854_v24  ;;  %v875_v15 = vadd.f32 %v4677_v46, %v793_v0  ;;  %v4680_v8 = vld [vmem:[#allocation88_spill] sm:$0xff]  ;;  %v4682_v49 = vld [vmem:[#allocation53_spill] sm:$0xff]  ;;  %s4326_s5 = sld [smem:[#allocation8 + $0x45]] }
 0x226   : > { %v923_v32 = vadd.f32 %v4675_v4, %v831_v63  ;;  %v1107_v55 = vadd.f32 %v4678_v57, %v992_v29  ;;  %v1108_v51 = vadd.f32 %v4679_v44, %v993_v28  ;;  %v1285_v38 = vadd.f32 %v4680_v8, %v1193_v12  ;;  %v4681_v53 = vld [vmem:[#allocation34_spill] sm:$0xff]  ;;  %v4683_v39 = vld [vmem:[#allocation60_spill] sm:$0xff]  ;;  %v4685_v31 = vld [vmem:[#allocation79_spill] sm:$0xff] }
 0x227   : > { %v4231_v14 = vpop.permute.xlu1 %1438  ;;  %v4233_v37 = vpop.permute.xlu0 %1456  ;;  %v855_v10 = vadd.f32 %v4682_v49, %v780_v45  ;;  %v1038_v63 = vadd.f32 %v4683_v39, %v946_v59  ;;  %v4684_v24 = vld [vmem:[#allocation24_spill] sm:$0xff]  ;;  %v4688_v45 = vld [vmem:[#allocation57_spill] sm:$0xff]  ;;  %v4690_v57 = vld [vmem:[#allocation71_spill] sm:$0xff] }
 0x228   : > { %v1015_v30 = vadd.f32 %v4681_v53, %v923_v32  ;;  %v1016_v0 = vadd.f32 %v4684_v24, %v924_v20  ;;  %v1194_v29 = vadd.f32 %v4685_v31, %v1107_v55  ;;  %v4686_v2 = vld [vmem:[#allocation80_spill] sm:$0xff]  ;;  %v1400_v12 = vadd.f32 %v4106_v61, %v1285_v38  ;;  %v4692_v53 = vld [vmem:[#allocation89_spill] sm:$0xff] }
 0x229   : > { %1981 = vrot.lane.b32.xlu1 %v4094_v41, %s2710_s27  ;;  %1983 = vrot.lane.b32.xlu0 %v4118_v56, %s2710_s27  ;;  %v1195_v28 = vadd.f32 %v4686_v2, %v1108_v51  ;;  %v4687_v4 = vld [vmem:[#allocation32_spill] sm:$0xff]  ;;  %v947_v16 = vadd.f32 %v4688_v45, %v855_v10  ;;  %v4693_v61 = vld [vmem:[#allocation61_spill] sm:$0xff]  ;;  %v4695_v10 = vld [vmem:[#allocation74_spill] sm:$0xff] }
 0x22a   : > { %v967_v32 = vadd.f32 %v4687_v4, %v875_v15  ;;  %v4689_v59 = vld [vmem:[#allocation64_spill] sm:$0xff]  ;;  %v1125_v41 = vadd.f32 %v4690_v57, %v1015_v30  ;;  %v1286_v55 = vadd.f32 %v3951_v52, %v1194_v29  ;;  %v4694_v15 = vld [vmem:[#allocation62_spill] sm:$0xff]  ;;  %v4269_v30 = vstv %s4220_s30  ;;  %v4700_v45 = vld [vmem:[#allocation73_spill] sm:$0xff] }
 0x22b   : > { %v1073_v46 = vadd.f32 %v4689_v59, %v1038_v63  ;;  %v4254_v44 = vpop.permute.xlu1 %1458  ;;  %v1479_v56 = vpop.permute.xlu0 %1478  ;;  %v4691_v8 = vld [vmem:[#allocation72_spill] sm:$0xff]  ;;  %v1287_v51 = vadd.f32 %v4692_v53, %v1195_v28  ;;  %v1039_v38 = vadd.f32 %v4693_v61, %v947_v16  ;;  %v1058_v39 = vadd.f32 %v4694_v15, %v966_v1  ;;  %v4696_v63 = vld [vmem:[#allocation81_spill] sm:$0xff]  ;;  %v4706_v61 = vld [vmem:[#allocation83_spill] sm:$0xff] }
 0x22c   : > { %v1126_v20 = vadd.f32 %v4691_v8, %v1016_v0  ;;  %v4259_v49 = vadd.f32 %v1479_v56, %v1400_v12  ;;  %v1217_v52 = vadd.f32 %v4696_v63, %v1125_v41  ;;  %v4697_v0 = vld [vmem:[#allocation82_spill] sm:$0xff]  ;;  %v1401_v29 = vadd.f32 %v4143_v26, %v1286_v55  ;;  %v4698_v28 = vld [vmem:[#allocation65_spill] sm:$0xff]  ;;  %v4704_v55 = vld [vmem:[#allocation75_spill] sm:$0xff] }
 0x22d   : > { %v1148_v24 = vadd.f32 %v4695_v10, %v1073_v46  ;;  %1998 = vrot.lane.b32.xlu1 %v4126_v36, %s2710_s27  ;;  %2000 = vrot.lane.b32.xlu0 %v4131_v47, %s2710_s27  ;;  %v1402_v2 = vadd.f32 %v4145_v19, %v1287_v51  ;;  %v1074_v1 = vadd.f32 %v4698_v28, %v1039_v38  ;;  %v4699_v12 = vld [vmem:[#allocation66_spill] sm:$0xff]  ;;  %v4701_v36 = vld [vmem:[#allocation84_spill] sm:$0xff]  ;;  %v4703_v19 = vld [vmem:[#allocation63_spill] sm:$0xff] }
 0x22e   : > { %v1218_v31 = vadd.f32 %v4697_v0, %v1126_v20  ;;  %v1086_v4 = vadd.f32 %v4699_v12, %v1058_v39  ;;  %v1127_v16 = vadd.f32 %v4700_v45, %v1017_v9  ;;  %v1309_v57 = vadd.f32 %v3971_v62, %v1217_v52  ;;  %v4702_v41 = vld [vmem:[#allocation90_spill] sm:$0xff]  ;;  %v4705_v51 = vld [vmem:[#allocation76_spill] sm:$0xff]  ;;  %v4707_v10 = vld [vmem:[#allocation67_spill] sm:$0xff] }
 0x22f   : > { %v1240_v59 = vadd.f32 %v4701_v36, %v1148_v24  ;;  %v1481_v46 = vpop.permute.xlu1 %1480  ;;  %v1483_v47 = vpop.permute.xlu0 %1482  ;;  %v1059_v20 = vadd.f32 %v4703_v19, %v967_v32  ;;  %v1149_v53 = vadd.f32 %v4704_v55, %v1074_v1  ;;  %v2061_v62 = vrot.slane %v4202_v27, 2  ;;  %v4708_v63 = vld [vmem:[#allocation85_spill] sm:$0xff]  ;;  %v4709_v0 = vld [vmem:[#allocation86_spill] sm:$0xff]  ;;  %v4316_v1 = vld [vmem:[#allocation3 + $0x10] sm:$0x3f] }
 0x230   : > { %v1310_v56 = vadd.f32 %v4702_v41, %v1218_v31  ;;  %v4283_v8 = vadd.f32 %v1481_v46, %v1401_v29  ;;  %v4285_v26 = vadd.f32 %v1483_v47, %v1402_v2  ;;  %v1168_v9 = vadd.f32 %v4705_v51, %v1086_v4 }
 0x231   : > { %2002 = vrot.lane.b32.xlu1 %v4153_v11, %s2710_s27  ;;  %1949 = vrot.lane.b32.xlu0 %v4162_v40, %s2710_s27  ;;  %v1219_v38 = vadd.f32 %v4706_v61, %v1127_v16  ;;  %v1332_v15 = vadd.f32 %v3998_v23, %v1240_v59  ;;  %v1419_v39 = vadd.f32 %v4173_v25, %v1309_v57  ;;  %v2062_v40 = vrot.slane %v4205_v5, 2  ;;  %v4710_v25 = vld [vmem:[#allocation77_spill] sm:$0xff] }
 0x232   : > { %v1420_v32 = vadd.f32 %v4175_v6, %v1310_v56  ;;  %v1087_v24 = vadd.f32 %v4707_v10, %v1059_v20  ;;  %v1241_v52 = vadd.f32 %v4708_v63, %v1149_v53  ;;  %v1260_v31 = vadd.f32 %v4709_v0, %v1168_v9 }
 0x233   : > { %v1503_v11 = vpop.permute.xlu1 %1502  ;;  %v1505_v29 = vpop.permute.xlu0 %1504  ;;  %v1311_v27 = vadd.f32 %v3996_v17, %v1219_v38  ;;  %v1367_v2 = vadd.f32 %v4053_v34, %v1332_v15  ;;  %v2080_v5 = vmul.f32 %v4128_v3, %v4269_v30  ;;  %v4320_v17 = vmul.f32 %v4316_v1, %v4269_v30 }
 0x234   : > { %v4305_v28 = vadd.f32 %v1503_v11, %v1419_v39  ;;  %v4307_v23 = vadd.f32 %v1505_v29, %v1420_v32  ;;  %v1169_v6 = vadd.f32 %v4710_v25, %v1087_v24  ;;  %v1333_v34 = vadd.f32 %v4022_v7, %v1241_v52 }
 0x235   : > { %1951 = vrot.lane.b32.xlu1 %v4168_v43, %s2710_s27  ;;  %1962 = vrot.lane.b32.xlu0 %v4192_v48, %s2710_s27  ;;  %v1352_v12 = vadd.f32 %v4024_v50, %v1260_v31  ;;  %v1421_v4 = vadd.f32 %v4194_v54, %v1311_v27  ;;  %v1442_v43 = vadd.f32 %v4196_v22, %v1367_v2  ;;  %v4711_v48 = vld [vmem:[#allocation87_spill] sm:$0xff]  ;;  %v2064_v46 = vrot.slane %v4208_v58, 2 }
 0x236   : > { %v1261_v45 = vadd.f32 %v4711_v48, %v1169_v6  ;;  %v2063_v59 = vsel %vm300_vm7, %v2061_v62, %v2062_v40  ;;  %v2012_v47 = vstv %s4279_s4  ;;  %v1368_v57 = vadd.f32 %v4073_v13, %v1333_v34 }
 0x237   : > { %v1507_v16 = vpop.permute.xlu1 %1506  ;;  %v1529_v36 = vpop.permute.xlu0 %1528  ;;  %v1380_v7 = vadd.f32 %v4075_v21, %v1352_v12  ;;  %v2079_v13 = vmul.f32 %v4123_v18, %v4269_v30  ;;  %v2065_v19 = vsel %vm300_vm7, %v2062_v40, %v2064_v46  ;;  %v2086_v20 = vrot.slane %v2080_v5, 2 }
 0x238   : > { %v4334_v50 = vadd.f32 %v1507_v16, %v1421_v4  ;;  %v4336_v54 = vadd.f32 %v1529_v36, %v1442_v43  ;;  %v1353_v22 = vadd.f32 %v4051_v60, %v1261_v45  ;;  %v1443_v58 = vadd.f32 %v4231_v14, %v1368_v57 }
 0x239   : > { %1964 = vrot.lane.b32.xlu1 %v4199_v33, %s2710_s27  ;;  %2066 = vrot.lane.b32.xlu0 %v2063_v59, %s2710_s27  ;;  %v1462_v41 = vadd.f32 %v4233_v37, %v1380_v7  ;;  %v4349_v33 = vld [vmem:[#allocation2] sm:$0xff]  ;;  %v2014_v53 = vmul.f32 %v3736_v42, %v2012_v47  ;;  %v2088_v30 = vrot.slane %v4320_v17, 2  ;;  %v2085_v9 = vrot.slane %v2079_v13, 2 }
 0x23a   : > { %v2013_v55 = vmul.f32 %v4349_v33, %v2012_v47  ;;  %v1381_v60 = vadd.f32 %v4104_v35, %v1353_v22  ;;  %v2032_v62 = vstv %s4326_s5  ;;  %v4363_v35 = vld [vmem:[#allocation2 + $0x10] sm:$0x3f]  ;;  %v2146_v31 = vstv %s4341_s6 }
 0x23b   : > { %v1531_v21 = vpop.permute.xlu1 %1530  ;;  %v1549_v56 = vpop.permute.xlu0 %1548  ;;  %v2020_v39 = vrot.slane %v2014_v53, 2  ;;  %v2015_v32 = vmul.f32 %v4363_v35, %v2012_v47  ;;  %v2034_v10 = vmul.f32 %v4128_v3, %v2032_v62  ;;  %v2089_v52 = vsel %vm300_vm7, %v2086_v20, %v2088_v30 }
 0x23c   : > { %v4354_v14 = vadd.f32 %v1531_v21, %v1443_v58  ;;  %v4356_v37 = vadd.f32 %v1549_v56, %v1462_v41  ;;  %v1463_v51 = vadd.f32 %v4254_v44, %v1381_v60  ;;  %v2019_v15 = vrot.slane %v2013_v55, 2  ;;  %v2581_v55 = vld [vmem:[#allocation2 + $0x8] sm:$0xff] }
 0x23d   : > { %2068 = vrot.lane.b32.xlu1 %v2065_v19, %s2710_s27  ;;  %2070 = vrot.lane.b32.xlu0 %v2064_v46, %s2710_s27  ;;  %v2087_v44 = vsel %vm300_vm7, %v2085_v9, %v2086_v20  ;;  %v2033_v0 = vmul.f32 %v4123_v18, %v2032_v62  ;;  %v2022_v27 = vrot.slane %v2015_v32, 2  ;;  %v2040_v2 = vrot.slane %v2034_v10, 2 }
 0x23e   : > { %v2021_v40 = vsel %vm300_vm7, %v2019_v15, %v2020_v39  ;;  %v2147_v5 = vmul.f32 %v4349_v33, %v2146_v31  ;;  %v2148_v17 = vmul.f32 %v3736_v42, %v2146_v31  ;;  %v2149_v45 = vmul.f32 %v4363_v35, %v2146_v31 }
 0x23f   : > { %v1551_v61 = vpop.permute.xlu1 %1550  ;;  %v1571_v38 = vpop.permute.xlu0 %1570  ;;  %v2039_v34 = vrot.slane %v2033_v0, 2  ;;  %v2023_v43 = vsel %vm300_vm7, %v2020_v39, %v2022_v27  ;;  %v2170_v59 = vstv %s2481_s17  ;;  %v2196_v31 = vstv %s2482_s19 }
 0x240   : > { %v4367_v24 = vadd.f32 %v1551_v61, %v1463_v51  ;;  %v4370_v63 = vadd.f32 %v1571_v38, %v4259_v49  ;;  %v2035_v49 = vmul.f32 %v4316_v1, %v2032_v62  ;;  %v2153_v42 = vrot.slane %v2147_v5, 4 }
 0x241   : > { %2090 = vrot.lane.b32.xlu1 %v2087_v44, %s2710_s27  ;;  %2092 = vrot.lane.b32.xlu0 %v2089_v52, %s2710_s27  ;;  %v2041_v48 = vsel %vm300_vm7, %v2039_v34, %v2040_v2  ;;  %v2154_v36 = vrot.slane %v2148_v17, 4  ;;  %v2156_v7 = vrot.slane %v2149_v45, 4  ;;  %v2172_v22 = vmul.f32 %v4128_v3, %v2170_v59 }
 0x242   : > { %v2173_v13 = vmul.f32 %v4316_v1, %v2170_v59  ;;  %v2171_v21 = vmul.f32 %v4123_v18, %v2170_v59  ;;  %v2124_v61 = vstv %s2479_s8  ;;  %v2197_v17 = vmul.f32 %v4349_v33, %v2196_v31 }
 0x243   : > { %v1573_v11 = vpop.permute.xlu1 %1572  ;;  %v1575_v29 = vpop.permute.xlu0 %1574  ;;  %v2155_v41 = vsel %vm373_vm8, %v2153_v42, %v2154_v36  ;;  %v2157_v20 = vsel %vm373_vm8, %v2154_v36, %v2156_v7  ;;  %v2126_v10 = vmul.f32 %v4128_v3, %v2124_v61  ;;  %v2125_v0 = vmul.f32 %v4123_v18, %v2124_v61 }
 0x244   : > { %v4381_v25 = vadd.f32 %v1573_v11, %v4283_v8  ;;  %v4384_v6 = vadd.f32 %v1575_v29, %v4285_v26  ;;  %v2042_v8 = vrot.slane %v2035_v49, 2  ;;  %v2180_v51 = vrot.slane %v2173_v13, 4 }
 0x245   : > { %2094 = vrot.lane.b32.xlu1 %v2088_v30, %s2710_s27  ;;  %2024 = vrot.lane.b32.xlu0 %v2021_v40, %s2710_s27  ;;  %v2178_v30 = vrot.slane %v2172_v22, 4  ;;  %v2177_v9 = vrot.slane %v2171_v21, 4  ;;  %v2198_v34 = vmul.f32 %v2581_v55, %v2196_v31  ;;  %v2199_v36 = vmul.f32 %v4363_v35, %v2196_v31 }
 0x246   : > { %v2043_v57 = vsel %vm300_vm7, %v2040_v2, %v2042_v8  ;;  %v2132_v2 = vrot.slane %v2126_v10, 4 }
 0x247   : > { %v1595_v12 = vpop.permute.xlu1 %1594  ;;  %v1597_v4 = vpop.permute.xlu0 %1596  ;;  %v2179_v44 = vsel %vm373_vm8, %v2177_v9, %v2178_v30  ;;  %v2181_v52 = vsel %vm373_vm8, %v2178_v30, %v2180_v51 }
 0x248   : > { %v4394_v26 = vadd.f32 %v1595_v12, %v4305_v28  ;;  %v4397_v16 = vadd.f32 %v1597_v4, %v4307_v23  ;;  %v2104_v28 = vstv %s2478_s3  ;;  %v2131_v12 = vrot.slane %v2125_v0, 4 }
 0x249   : > { %2026 = vrot.lane.b32.xlu1 %v2023_v43, %s2710_s27  ;;  %2044 = vrot.lane.b32.xlu0 %v2041_v48, %s2710_s27  ;;  %v2106_v53 = vmul.f32 %v2581_v55, %v2104_v28  ;;  %v2107_v62 = vmul.f32 %v4363_v35, %v2104_v28  ;;  %v2216_v43 = vstv %s2483_s24 }
 0x24a   : > { %v2133_v45 = vsel %vm373_vm8, %v2131_v12, %v2132_v2  ;;  %v2218_v59 = vmul.f32 %v4128_v3, %v2216_v43  ;;  %v2219_v21 = vmul.f32 %v4316_v1, %v2216_v43 }
 0x24b   : > { %v1599_v46 = vpop.permute.xlu1 %1598  ;;  %v1621_v47 = vpop.permute.xlu0 %1620  ;;  %v2112_v32 = vrot.slane %v2106_v53, 4  ;;  %v2114_v11 = vrot.slane %v2107_v62, 4 }
 0x24c   : > { %v4404_v58 = vadd.f32 %v1599_v46, %v4334_v50  ;;  %v1626_v23 = vadd.f32 %v1621_v47, %v4336_v54  ;;  %v2105_v50 = vmul.f32 %v4349_v33, %v2104_v28  ;;  %v2203_v47 = vrot.slane %v2197_v17, 6 }
 0x24d   : > { %2046 = vrot.lane.b32.xlu1 %v2043_v57, %s2710_s27  ;;  %2158 = vrot.lane.b32.xlu0 %v2155_v41, %s2710_s27  ;;  %v2115_v4 = vsel %vm373_vm8, %v2112_v32, %v2114_v11  ;;  %v2204_v57 = vrot.slane %v2198_v34, 6  ;;  %v2206_v41 = vrot.slane %v2199_v36, 6  ;;  %v2224_v13 = vrot.slane %v2218_v59, 6 }
 0x24e   : > { %v2111_v39 = vrot.slane %v2105_v50, 4 }
 0x24f   : > { %v1623_v56 = vpop.permute.xlu1 %1622  ;;  %v1641_v19 = vpop.permute.xlu0 %1640 }
 0x250   : > { %v1627_v54 = vadd.f32 %v1623_v56, %v4354_v14  ;;  %v1646_v60 = vadd.f32 %v1641_v19, %v4356_v37  ;;  %v2113_v27 = vsel %vm373_vm8, %v2111_v39, %v2112_v32 }
 0x251   : > { %2160 = vrot.lane.b32.xlu1 %v2157_v20, %s2710_s27  ;;  %2162 = vrot.lane.b32.xlu0 %v2156_v7, %s2710_s27  ;;  %v2217_v7 = vmul.f32 %v4123_v18, %v2216_v43  ;;  %v2207_v20 = vsel %vm446_vm9, %v2204_v57, %v2206_v41 }
 0x253   : > { %v1643_v38 = vpop.permute.xlu1 %1642  ;;  %v1656_v15 = vpop.permute.xlu0 %1655  ;;  %v2223_v56 = vrot.slane %v2217_v7, 6 }
 0x254   : > { %v1647_v14 = vadd.f32 %v1643_v38, %v4367_v24  ;;  %v1661_v37 = vadd.f32 %v1656_v15, %v1626_v23  ;;  %v2127_v24 = vmul.f32 %v4316_v1, %v2124_v61 }
 0x255   : > { %2182 = vrot.lane.b32.xlu1 %v2179_v44, %s2710_s27  ;;  %2184 = vrot.lane.b32.xlu0 %v2181_v52, %s2710_s27 }
 0x256   : > { %v2134_v42 = vrot.slane %v2127_v24, 4 }
 0x257   : > { %v1658_v29 = vpop.permute.xlu1 %1657  ;;  %v1669_v40 = vpop.permute.xlu0 %1668 }
 0x258   : > { %v1662_v49 = vadd.f32 %v1658_v29, %v1627_v54  ;;  %v1674_v5 = vadd.f32 %v1669_v40, %v1646_v60  ;;  %v2135_v23 = vsel %vm373_vm8, %v2132_v2, %v2134_v42 }
 0x259   : > { %2186 = vrot.lane.b32.xlu1 %v2180_v51, %s2710_s27  ;;  %2116 = vrot.lane.b32.xlu0 %v2113_v27, %s2710_s27 }
 0x25b   : > { %v1671_v48 = vpop.permute.xlu1 %1670  ;;  %v1686_v8 = vpop.permute.xlu0 %1685 }
 0x25c   : > { %v1675_v46 = vadd.f32 %v1671_v48, %v1647_v14  ;;  %v1694_v33 = vadd.f32 %v1686_v8, %v4370_v63  ;;  %v2205_v63 = vsel %vm446_vm9, %v2203_v47, %v2204_v57 }
 0x25d   : > { %2118 = vrot.lane.b32.xlu1 %v2115_v4, %s2710_s27  ;;  %2136 = vrot.lane.b32.xlu0 %v2133_v45, %s2710_s27 }
 0x25f   : > { %v1688_v22 = vpop.permute.xlu1 %1687  ;;  %v1690_v28 = vpop.permute.xlu0 %1689 }
 0x260   : > { %v1695_v35 = vadd.f32 %v1688_v22, %v4381_v25  ;;  %v1696_v3 = vadd.f32 %v1690_v28, %v4384_v6  ;;  %v2225_v25 = vsel %vm446_vm9, %v2223_v56, %v2224_v13  ;;  %v2226_v6 = vrot.slane %v2219_v21, 6 }
 0x261   : > { %2138 = vrot.lane.b32.xlu1 %v2135_v23, %s2710_s27  ;;  %2208 = vrot.lane.b32.xlu0 %v2205_v63, %s2710_s27 }
 0x262   : > { %v2227_v30 = vsel %vm446_vm9, %v2224_v13, %v2226_v6 }
 0x263   : > { %v1705_v18 = vpop.permute.xlu1 %1704  ;;  %v1707_v19 = vpop.permute.xlu0 %1706 }
 0x264   : > { %v1713_v50 = vadd.f32 %v1705_v18, %v4394_v26  ;;  %v1714_v55 = vadd.f32 %v1707_v19, %v4397_v16 }
 0x265   : > { %2210 = vrot.lane.b32.xlu1 %v2207_v20, %s2710_s27  ;;  %2228 = vrot.lane.b32.xlu0 %v2225_v25, %s2710_s27 }
 0x267   : > { %v1709_v1 = vpop.permute.xlu1 %1708  ;;  %v1731_v53 = vpop.permute.xlu0 %1730 }
 0x268   : > { %v1715_v54 = vadd.f32 %v1709_v1, %v4404_v58  ;;  %v1736_v60 = vadd.f32 %v1731_v53, %v1661_v37 }
 0x269   : > { %2230 = vrot.lane.b32.xlu1 %v2227_v30, %s2710_s27  ;;  %s2711_s27 = smov [#allocation9]  }
 0x26a   : > { %s2631_s30 = sshll.u32 %s2711_s27, 4  ;;  %s2632_s30 = int_to_ptr.vmem [resolvable:$false] %s2631_s30 }
 0x26b   : > { %v1733_v51 = vpop.permute.xlu1 %1732  ;;  %v1751_v26 = vpop.permute.xlu0 %1750  ;;  %s2633_s4 = scalar_lea.vmem %s2632_s30, 512  ;;  %p2634_p10 = scmp.lt.s32.totalorder %s4479_s28, %s2632_s30 }
 0x26c   : > { %v1737_v9 = vadd.f32 %v1733_v51, %v1662_v49  ;;  %v1756_v16 = vadd.f32 %v1751_v26, %v1674_v5  ;;  %p2635_p1 = scmp.lt.s32.totalorder %s2633_s4, %s2627_s13 }
 0x26e   : > { %p2636_p4 = por %p2635_p1, %p2634_p10 }
 0x26f   : > { %v1753_v62 = vpop.permute.xlu1 %1752  ;;  %v1773_v61 = vpop.permute.xlu0 %1772 }
 0x270   : > { %v1757_v38 = vadd.f32 %v1753_v62, %v1675_v46  ;;  %v1781_v15 = vadd.f32 %v1773_v61, %v1694_v33  ;;  %p2637_p11 = pnand %p2636_p4, %p2630_p9 }
 0x273   : > { %v1775_v39 = vpop.permute.xlu1 %1774  ;;  %v1777_v32 = vpop.permute.xlu0 %1776 }
 0x274   : > { %v1782_v10 = vadd.f32 %v1775_v39, %v1695_v35  ;;  %v1783_v14 = vadd.f32 %v1777_v32, %v1696_v3 }
 0x277   : > { %v1797_v44 = vpop.permute.xlu1 %1796  ;;  %v1799_v52 = vpop.permute.xlu0 %1798 }
 0x278   : > { %v1805_v58 = vadd.f32 %v1797_v44, %v1713_v50  ;;  %v1806_v37 = vadd.f32 %v1799_v52, %v1714_v55 }
 0x27b   : > { %v1801_v0 = vpop.permute.xlu1 %1800  ;;  %v1823_v31 = vpop.permute.xlu0 %1822 }
 0x27c   : > { %v1807_v11 = vadd.f32 %v1801_v0, %v1715_v54  ;;  %v1828_v29 = vadd.f32 %v1823_v31, %v1736_v60 }
 0x27f   : > { %v1825_v40 = vpop.permute.xlu1 %1824  ;;  %v1843_v27 = vpop.permute.xlu0 %1842 }
 0x280   : > { %v1829_v2 = vadd.f32 %v1825_v40, %v1737_v9  ;;  %v4455_v24 = vadd.f32 %v1843_v27, %v1756_v16 }
 0x283   : > { %v1845_v49 = vpop.permute.xlu1 %1844  ;;  %v1865_v5 = vpop.permute.xlu0 %1864 }
 0x284   : > { %v4457_v17 = vadd.f32 %v1845_v49, %v1757_v38  ;;  %v1873_v34 = vadd.f32 %v1865_v5, %v1781_v15 }
 0x287   : > { %v1867_v12 = vpop.permute.xlu1 %1866  ;;  %v1869_v4 = vpop.permute.xlu0 %1868 }
 0x288   : > { %v1874_v43 = vadd.f32 %v1867_v12, %v1782_v10  ;;  %v1875_v48 = vadd.f32 %v1869_v4, %v1783_v14 }
 0x28b   : > { %v1889_v8 = vpop.permute.xlu1 %1888  ;;  %v1891_v45 = vpop.permute.xlu0 %1890 }
 0x28c   : > { %v1897_v42 = vadd.f32 %v1889_v8, %v1805_v58  ;;  %v1898_v36 = vadd.f32 %v1891_v45, %v1806_v37 }
 0x28f   : > { %v1893_v59 = vpop.permute.xlu1 %1892  ;;  %v1915_v46 = vpop.permute.xlu0 %1914 }
 0x290   : > { %v1899_v33 = vadd.f32 %v1893_v59, %v1807_v11  ;;  %v1920_v47 = vadd.f32 %v1915_v46, %v1828_v29 }
 0x293   : > { %v1917_v57 = vpop.permute.xlu1 %1916  ;;  %v1935_v7 = vpop.permute.xlu0 %1934 }
 0x294   : > { %v4459_v22 = vadd.f32 %v1917_v57, %v1829_v2  ;;  %v1940_v57 = vadd.f32 %v1935_v7, %v4455_v24 }
 0x297   : > { %v4461_v28 = vpop.permute.xlu1 %1936  ;;  %v1980_v23 = vpop.permute.xlu0 %1979 }
 0x298   : > { %v1988_v30 = vadd.f32 %v1980_v23, %v1873_v34 }
 0x29b   : > { %v1982_v41 = vpop.permute.xlu1 %1981  ;;  %v1984_v13 = vpop.permute.xlu0 %1983 }
 0x29c   : > { %v1989_v9 = vadd.f32 %v1982_v41, %v1874_v43  ;;  %v1990_v16 = vadd.f32 %v1984_v13, %v1875_v48 }
 0x29f   : > { %v1999_v35 = vpop.permute.xlu1 %1998  ;;  %v2001_v3 = vpop.permute.xlu0 %2000 }
 0x2a0   : > { %v2007_v39 = vadd.f32 %v1999_v35, %v1897_v42  ;;  %v2008_v14 = vadd.f32 %v2001_v3, %v1898_v36 }
 0x2a3   : > { %v2003_v63 = vpop.permute.xlu1 %2002  ;;  %v1950_v21 = vpop.permute.xlu0 %1949 }
 0x2a4   : > { %v2009_v29 = vadd.f32 %v2003_v63, %v1899_v33  ;;  %v1955_v36 = vadd.f32 %v1950_v21, %v1920_v47 }
 0x2a7   : > { %v1952_v56 = vpop.permute.xlu1 %1951  ;;  %v1963_v18 = vpop.permute.xlu0 %1962 }
 0x2a8   : > { %v1956_v13 = vadd.f32 %v1952_v56, %v4459_v22  ;;  %v1968_v35 = vadd.f32 %v1963_v18, %v1940_v57 }
 0x2ab   : > { %v1965_v19 = vpop.permute.xlu1 %1964  ;;  %v2067_v20 = vpop.permute.xlu0 %2066 }
 0x2ac   : > { %v2075_v62 = vadd.f32 %v2067_v20, %v1988_v30 }
 0x2af   : > { %v2069_v50 = vpop.permute.xlu1 %2068  ;;  %v2071_v55 = vpop.permute.xlu0 %2070 }
 0x2b0   : > { %v2076_v61 = vadd.f32 %v2069_v50, %v1989_v9  ;;  %v2077_v38 = vadd.f32 %v2071_v55, %v1990_v16  ;;  %v1941_v50 = vadd.f32 %v4461_v28, %v4457_v17 }
 0x2b2   : > { %v1969_v21 = vadd.f32 %v1965_v19, %v1941_v50 }
 0x2b3   : > { %v2091_v25 = vpop.permute.xlu1 %2090  ;;  %v2093_v6 = vpop.permute.xlu0 %2092 }
 0x2b4   : > { %v2099_v58 = vadd.f32 %v2091_v25, %v2007_v39  ;;  %v2100_v37 = vadd.f32 %v2093_v6, %v2008_v14 }
 0x2b7   : > { %v2095_v1 = vpop.permute.xlu1 %2094  ;;  %v2025_v53 = vpop.permute.xlu0 %2024 }
 0x2b8   : > { %v2101_v12 = vadd.f32 %v2095_v1, %v2009_v29  ;;  %v2030_v23 = vadd.f32 %v2025_v53, %v1955_v36 }
 0x2bb   : > { %v2027_v54 = vpop.permute.xlu1 %2026  ;;  %v2045_v60 = vpop.permute.xlu0 %2044 }
 0x2bc   : > { %v2031_v55 = vadd.f32 %v2027_v54, %v1956_v13  ;;  %v2050_v25 = vadd.f32 %v2045_v60, %v1968_v35 }
 0x2bf   : > { %v2047_v51 = vpop.permute.xlu1 %2046  ;;  %v2159_v26 = vpop.permute.xlu0 %2158 }
 0x2c0   : > { %v2167_v15 = vadd.f32 %v2159_v26, %v2075_v62  ;;  %v2051_v53 = vadd.f32 %v2047_v51, %v1969_v21 }
 0x2c2   : > { %v2240_v0 = vrot.slane %v2167_v15, 1 }
 0x2c3   : > { %v2161_v32 = vpop.permute.xlu1 %2160  ;;  %v2163_v10 = vpop.permute.xlu0 %2162 }
 0x2c4   : > { %v2168_v44 = vadd.f32 %v2161_v32, %v2076_v61  ;;  %v2169_v52 = vadd.f32 %v2163_v10, %v2077_v38 }
 0x2c6   : > { %v2241_v31 = vrot.slane %v2168_v44, 1  ;;  %v2243_v11 = vrot.slane %v2169_v52, 1 }
 0x2c7   : > { %v2183_v40 = vpop.permute.xlu1 %2182  ;;  %v2185_v27 = vpop.permute.xlu0 %2184 }
 0x2c8   : > { %v2191_v2 = vadd.f32 %v2183_v40, %v2099_v58  ;;  %v2192_v49 = vadd.f32 %v2185_v27, %v2100_v37  ;;  %v2242_v5 = vsel %vm2239_vm10, %v2240_v0, %v2241_v31  ;;  %v2244_v34 = vsel %vm2239_vm10, %v2241_v31, %v2243_v11 }
 0x2ca   : > { %v2252_v4 = vrot.slane %v2191_v2, 1  ;;  %v2253_v43 = vrot.slane %v2192_v49, 1 }
 0x2cb   : > { %v2187_v48 = vpop.permute.xlu1 %2186  ;;  %v2117_v8 = vpop.permute.xlu0 %2116 }
 0x2cc   : > { %v2193_v45 = vadd.f32 %v2187_v48, %v2101_v12  ;;  %v2254_v42 = vsel %vm2239_vm10, %v2252_v4, %v2253_v43  ;;  %v2122_v3 = vadd.f32 %v2117_v8, %v2030_v23 }
 0x2ce   : > { %v2255_v59 = vrot.slane %v2193_v45, 1 }
 0x2cf   : > { %v2119_v46 = vpop.permute.xlu1 %2118  ;;  %v2137_v33 = vpop.permute.xlu0 %2136 }
 0x2d0   : > { %v2256_v41 = vsel %vm2239_vm10, %v2253_v43, %v2255_v59  ;;  %v2123_v6 = vadd.f32 %v2119_v46, %v2031_v55  ;;  %v2142_v1 = vadd.f32 %v2137_v33, %v2050_v25 }
 0x2d3   : > { %v2139_v63 = vpop.permute.xlu1 %2138  ;;  %v2209_v20 = vpop.permute.xlu0 %2208 }
 0x2d4   : > { %v2214_v47 = vadd.f32 %v2209_v20, %v2122_v3  ;;  %v2143_v22 = vadd.f32 %v2139_v63, %v2051_v53 }
 0x2d6   : > { %v2247_v30 = vadd.f32 %v2242_v5, %v2214_v47 }
 0x2d7   : > { %v2211_v24 = vpop.permute.xlu1 %2210  ;;  %v2229_v7 = vpop.permute.xlu0 %2228 }
 0x2d8   : > { %v2215_v26 = vadd.f32 %v2211_v24, %v2123_v6  ;;  %v2234_v9 = vadd.f32 %v2229_v7, %v2142_v1 }
 0x2da   : > { %v2248_v56 = vadd.f32 %v2244_v34, %v2215_v26  ;;  %v2259_v18 = vadd.f32 %v2254_v42, %v2234_v9 }
 0x2db   : > { %v2231_v16 = vpop.permute.xlu1 %2230 }
 0x2dc   : > { %v2261_v62 = vadd.f32 %v2259_v18, %v2247_v30  ;;  %v2235_v17 = vadd.f32 %v2231_v16, %v2143_v22 }
 0x2de   : > { %v2484_v28 = vmul.f32 -1.442695, %v2261_v62  ;;  %v2260_v54 = vadd.f32 %v2256_v41, %v2235_v17 }
 0x2e0   : > { %2562 = vpow2.f32 %v2484_v28  ;;  %v2262_v19 = vadd.f32 %v2260_v54, %v2248_v56 }
 0x2e2   : > { %v2485_v60 = vmul.f32 -1.442695, %v2262_v19 }
 0x2e4   : > { %2564 = vpow2.f32 %v2485_v60 }
 0x2ea   : > { %v2563_v61 = vpop.eup %2562 }
 0x2eb   : > { %v2269_v38 = vadd.f32 1.0, %v2563_v61 }
 0x2ed   : > { %2566 = vrcp.f32 %v2269_v38 }
 0x2ee   : > { %v2565_v51 = vpop.eup %2564 }
 0x2ef   : > { %v2270_v15 = vadd.f32 1.0, %v2565_v51 }
 0x2f1   : > { %2568 = vrcp.f32 %v2270_v15 }
 0x2f7   : > { %v2567_v39 = vpop.eup %2566 }
 0x2f8   : > { %2275 = vst.msk [vmem:[%s175_s23] sm:$0xff] %vm184_vm0, %v2567_v39 }
 0x2fb   : > { %v2569_v32 = vpop.eup %2568 }
 0x2fc   : > { %2276 = vst.msk [vmem:[%s175_s23 + $0x8] sm:$0xff] %vm184_vm0, %v2569_v32 }
 0x2fd   : > { %2640 = shalt.err (!%p2637_p11)
}
 0x2fe   : > { %s2641_s5 = scalar_lea.hbm %s4477_s16, 256  ;;  %s2645_s3 = scalar_lea.hbm %s4526_s2, 512 }
 0x2ff   : > { %p2642_p0 = scmp.ne.s32.totalorder %s4477_s16, %s2641_s5  ;;  %p2646_p6 = scmp.lt.u32.totalorder %s4477_s16, %s4526_s2 }
 0x300   : > { %p2647_p5 = scmp.lt.u32.totalorder %s2645_s3, %s2641_s5  ;;  %p2649_p13 = scmp.lt.u32.totalorder %s2641_s5, %s4477_s16 }
 0x301   : > { %p2643_p2 = pnand %p2642_p0, %p4712_p12 }
 0x302   : > { %p2648_p3 = por %p2647_p5, %p2646_p6 }
 0x303   : > { %p2644_p7 = pneg %p2643_p2 }
 0x304   : > { %p2650_p8 = por %p2649_p13, %p2648_p3 }
 0x306   : > { %p2651_p9 = pnand %p2650_p8, %p2644_p7 }
 0x308   : > { %2654 = shalt.err (!%p2651_p9)
}
 0x309   : > { %s2712_s24 = smov 128   ;;  %s2713_s25 = smov 8  }
 0x30a   : > { %2499 = dma.vmem_to_hbm [thread:$0]  (%p4712_p12), %s4479_s28, 256, %s4477_s16, %s2278_s26, %s2712_s24, %s2712_s24, %s2713_s25  }
 0x30b PF: > { %s2306_s20 = sand.u32 1, %s2685_s9   ;;  %p4713_p10 = scmp.ne.s32.totalorder %s4535_s22, 0 }
 0x30c   : > { %p4714_p1 = scmp.ge.s32.totalorder %s2697_s12, 2  ;;  %s2307_s23 = scalar_lea.sflag [#allocation6], %s2306_s20 }
 0x30e   : > { %p2510_p4 = pnand %p4714_p1, %p4713_p10 }
 0x310   : > { %2680 = dma.done.wait (!%p2510_p4), %s2307_s23, 256  }
 0x311   : > { %2682 = vsyncadd (!%p2510_p4), %s2307_s23, 4294967040  ;;  %p16_p11 = scmp.ge.s32.totalorder %s2754_s15, 4   ;;  %s4715_s9 = smov %s2689_s10 }
 0x312   : > { %s4716_s10 = smov %s2693_s11  ;;  %s4717_s11 = smov %s2766_s18 }
 0x313   : > { %s4718_s12 = smov %s2754_s15  ;;  %18 = sbr.rel (!%p16_p11) target bundleno = 6 (0x6), region = 78 }
 0x31a   :  { %2312 = vsyncpa [#allocation5], 1 }
 0x31b   :  { %2314 = vsyncpa [#allocation5 + $0x1], 1 }
 0x31c   :  { %2315 = vsyncpa [#allocation6], 1 }
 0x31d   :  { %2317 = vsyncpa [#allocation6 + $0x1], 1 }
 0x31e   :  { %2318 = vsyncpa [#allocation7], 1 }
 0x31f   :  { %2320 = vsyncpa [#allocation7 + $0x1], 1 }

</bundles_post_ra>
